<compile_context>
chip_gen: v6e
topology: v6e:2x2x1
jax: 0.10.0
libtpu: 0.0.40
codegen_flags: <defaults>
</compile_context>

<pallas_src>
import functools

import jax
import jax.numpy as jnp
from jax import lax
from jax.experimental import pallas as pl
from jax.experimental.pallas import tpu as pltpu


def _round_up(v, m):
    return (v + m - 1) // m * m


def _pad2(a, rows, cols):
    return jnp.pad(a, ((0, rows - a.shape[0]), (0, cols - a.shape[1])))


# ---------------------------------------------------------------------------
# Fused Residual kernel
# ---------------------------------------------------------------------------
@functools.lru_cache(maxsize=None)
def _build_residual_call(B, H, W, HWp, Cin_p, Cmid_p, Cout, K, has_skip, cdt_name):
    cdt = jnp.dtype(cdt_name)
    HW = H * W
    R = K // 2
    PADW = _round_up(R * (W + 1), 128)   # zeroed side halo, >= max |tap offset|
    taps = [(dh, dw) for dh in range(-R, R + 1) for dw in range(-R, R + 1)]
    pow2_w = (W & (W - 1)) == 0

    def kernel(x_ref, w1_ref, w2_ref, w3_ref, *args):
        if has_skip:
            wsk_ref, cv_ref, mv_ref, ov_ref, o_ref, halo_ref, pat_ref = args
        else:
            cv_ref, mv_ref, ov_ref, o_ref, halo_ref, pat_ref = args

        pos = lax.broadcasted_iota(jnp.int32, (1, HWp), 1)
        if pow2_w:
            col = jnp.bitwise_and(pos, W - 1)
        else:
            col = pos % W  # TODO(synk): non-power-of-two W path is untested.

        x = x_ref[0]                                          # (Cin_p, HWp) f32

        # --- bn1 + relu + conv1 (1x1) ------------------------------------
        t1 = jnp.maximum(x * cv_ref[:, 0:1] + cv_ref[:, 1:2], 0.0)
        a1 = jnp.dot(w1_ref[...], t1.astype(cdt),
                     preferred_element_type=jnp.float32)      # (Cmid_p, HWp)

        # --- bn2 (conv1 bias folded in) + relu -----------------------------
        t2 = jnp.maximum(a1 * mv_ref[:, 0:1] + mv_ref[:, 1:2], 0.0)
        t2c = t2.astype(cdt)
        if HWp > HW:
            # zero padded lane tail so row overflow of the 3x3 taps reads zeros
            t2c = jnp.where(pos < HW, t2c, jnp.zeros_like(t2c))

        # --- im2col for the 3x3 conv: single halo write + K*K windows ------
        zero_pad = jnp.zeros((Cmid_p, PADW), cdt)
        halo_ref[:, :PADW] = zero_pad
        halo_ref[:, PADW + HWp:] = zero_pad
        halo_ref[:, PADW:PADW + HWp] = t2c
        for ti, (dh, dw) in enumerate(taps):
            if dh == 0 and dw == 0:
                v = t2c
            else:
                off = dh * W + dw
                v = halo_ref[:, PADW + off:PADW + off + HWp]
                # row padding handled by the zeroed halo/tail; only column
                # wrap-around needs a (single-compare) mask.
                if dw > 0:
                    v = jnp.where(col < (W - dw), v, jnp.zeros_like(v))
                elif dw < 0:
                    v = jnp.where(col >= (-dw), v, jnp.zeros_like(v))
            pat_ref[ti * Cmid_p:(ti + 1) * Cmid_p, :] = v

        # --- conv2 (3x3) as ONE fused MXU matmul over all taps -------------
        a2 = jnp.dot(w2_ref[...], pat_ref[...],
                     preferred_element_type=jnp.float32)      # (Cmid_p, HWp)

        # --- bn3 (conv2 bias folded in) + relu + conv3 (1x1) ----------------
        t3 = jnp.maximum(a2 * mv_ref[:, 2:3] + mv_ref[:, 3:4], 0.0)
        acc = jnp.dot(w3_ref[...], t3.astype(cdt),
                      preferred_element_type=jnp.float32)     # (Cout, HWp)
        acc = acc + ov_ref[:, 0:1]                            # conv3 bias

        # --- fused residual add (skip conv or identity) ---------------------
        if has_skip:
            sk = jnp.dot(wsk_ref[...], x.astype(cdt),
                         preferred_element_type=jnp.float32)
            acc = acc + (sk + ov_ref[:, 1:2])
        else:
            acc = acc + x[:Cout, :]                           # Cin == Cout here
        o_ref[0] = acc.astype(o_ref.dtype)

    in_specs = [
        pl.BlockSpec((1, Cin_p, HWp), lambda b: (b, 0, 0)),        # x (per batch)
        pl.BlockSpec((Cmid_p, Cin_p), lambda b: (0, 0)),           # w1 (resident)
        pl.BlockSpec((Cmid_p, K * K * Cmid_p), lambda b: (0, 0)),  # w2 (tap-major)
        pl.BlockSpec((Cout, Cmid_p), lambda b: (0, 0)),            # w3
    ]
    if has_skip:
        in_specs.append(pl.BlockSpec((Cout, Cin_p), lambda b: (0, 0)))  # w_skip
    in_specs += [
        pl.BlockSpec((Cin_p, 2), lambda b: (0, 0)),                # [s1, h1]
        pl.BlockSpec((Cmid_p, 4), lambda b: (0, 0)),               # [s2, h2', s3, h3']
        pl.BlockSpec((Cout, 2), lambda b: (0, 0)),                 # [b3, b_skip]
    ]
    return pl.pallas_call(
        kernel,
        out_shape=jax.ShapeDtypeStruct((B, Cout, HWp), jnp.float32),
        grid_spec=pltpu.PrefetchScalarGridSpec(
            num_scalar_prefetch=0,
            grid=(B,),
            in_specs=in_specs,
            out_specs=pl.BlockSpec((1, Cout, HWp), lambda b: (b, 0, 0)),
            scratch_shapes=[
                pltpu.VMEM((Cmid_p, HWp + 2 * PADW), cdt),   # halo shift buffer
                pltpu.VMEM((K * K * Cmid_p, HWp), cdt),      # im2col patches
            ]),
        compiler_params=pltpu.CompilerParams(
            dimension_semantics=("parallel",),
            vmem_limit_bytes=48 * 1024 * 1024),
    )


def _fold_bn(bn):
    gamma, beta, mean, var, eps = bn
    s = gamma * lax.rsqrt(var + eps)
    return s, beta - mean * s


def residual_forward(x, p, compute_dtype=jnp.bfloat16):
    """Forward of one Residual block (eval-mode BatchNorm). NCHW in / NCHW out."""
    B, Cin, H, W = x.shape
    assert Cin == p['conv1']['w'].shape[1], '{} {}'.format(Cin, p['conv1']['w'].shape[1])
    Cmid = p['conv1']['w'].shape[0]
    Cout = p['conv3']['w'].shape[0]
    K = p['conv2']['w'].shape[2]
    assert K % 2 == 1
    HW = H * W
    HWp = _round_up(HW, 128)
    Cin_p = _round_up(Cin, 16)      # 16: bf16 sublane packing
    Cmid_p = _round_up(Cmid, 16)
    has_skip = p['skip'] is not None

    # TODO(synk): BatchNorm uses eval-mode running stats (train-mode batch
    # statistics are not implemented).  conv1/conv2 biases are folded into the
    # *following* BN shift so the kernel does one affine per stage.
    s1, h1 = _fold_bn(p['bn1'])
    s2, h2 = _fold_bn(p['bn2'])
    s3, h3 = _fold_bn(p['bn3'])
    h2 = p['conv1']['b'] * s2 + h2
    h3 = p['conv2']['b'] * s3 + h3
    cin_vec = _pad2(jnp.stack([s1, h1], axis=1), Cin_p, 2).astype(jnp.float32)
    mid_vec = _pad2(jnp.stack([s2, h2, s3, h3], axis=1), Cmid_p, 4).astype(jnp.float32)
    b_skip = p['skip']['b'] if has_skip else jnp.zeros_like(p['conv3']['b'])
    out_vec = jnp.stack([p['conv3']['b'], b_skip], axis=1).astype(jnp.float32)

    # weights: 1x1s as (Cout', Cin'); 3x3 flattened tap-major (Cmid_p, K*K*Cmid_p)
    w1 = _pad2(p['conv1']['w'][:, :, 0, 0], Cmid_p, Cin_p).astype(compute_dtype)
    w3 = _pad2(p['conv3']['w'][:, :, 0, 0], Cout, Cmid_p).astype(compute_dtype)
    w2 = jnp.transpose(p['conv2']['w'], (2, 3, 1, 0))             # (K,K,Cmid,Cmid)
    w2 = jnp.pad(w2, ((0, 0), (0, 0), (0, Cmid_p - Cmid), (0, 0)))
    w2 = w2.reshape(K * K * Cmid_p, Cmid).T
    w2 = _pad2(w2, Cmid_p, K * K * Cmid_p).astype(compute_dtype)
    wsk = (_pad2(p['skip']['w'][:, :, 0, 0], Cout, Cin_p).astype(compute_dtype)
           if has_skip else None)

    # NCHW kept; (H,W) flattened onto the lane axis.  The pads below are no-ops
    # at production sizes (C % 16 == 0, H*W % 128 == 0).
    x3 = jnp.pad(x.reshape(B, Cin, HW).astype(jnp.float32),
                 ((0, 0), (0, Cin_p - Cin), (0, HWp - HW)))

    call = _build_residual_call(B, H, W, HWp, Cin_p, Cmid_p, Cout, K, has_skip,
                                jnp.dtype(compute_dtype).name)
    args = (x3, w1, w2, w3) + ((wsk,) if has_skip else ()) + (cin_vec, mid_vec, out_vec)
    out = call(*args)
    return out[:, :, :HW].reshape(B, Cout, H, W)


# ---------------------------------------------------------------------------
# Hourglass forward (pool / upsample / final add are XLA data-movement glue)
# ---------------------------------------------------------------------------
def max_pool_2x2(x):
    # TODO(synk): nn.MaxPool2d(2,2) left as an XLA reshape+max (pure data movement).
    B, C, H, W = x.shape
    return x.reshape(B, C, H // 2, 2, W // 2, 2).max(axis=(3, 5))


def upsample_nearest_2x(x):
    # TODO(synk): nn.Upsample(scale_factor=2,'nearest') left as an XLA broadcast.
    B, C, H, W = x.shape
    y = jnp.broadcast_to(x[:, :, :, None, :, None], (B, C, H, 2, W, 2))
    return y.reshape(B, C, 2 * H, 2 * W)


def hourglass_forward(x, p, compute_dtype=jnp.bfloat16):
    up1 = residual_forward(x, p['up1'], compute_dtype)
    pool1 = max_pool_2x2(x)
    low1 = residual_forward(pool1, p['low1'], compute_dtype)
    if p['low2_type'] == 'hourglass':
        low2 = hourglass_forward(low1, p['low2'], compute_dtype)
    else:
        low2 = residual_forward(low1, p['low2'], compute_dtype)
    low3 = residual_forward(low2, p['low3'], compute_dtype)
    up2 = upsample_nearest_2x(low3)
    # TODO(synk): the up1+up2 add is left to XLA; fusing it into the low3
    # epilogue would need an upsampled-lane output layout.
    return up1 + up2


# ---------------------------------------------------------------------------
# Parameter construction (deterministic) + pure-JAX reference
# ---------------------------------------------------------------------------
def _init_conv(key, cin, cout, k):
    k1, k2 = jax.random.split(key)
    std = (2.0 / (k * k * cin)) ** 0.5
    return {'w': std * jax.random.normal(k1, (cout, cin, k, k), jnp.float32),
            'b': 0.1 * jax.random.normal(k2, (cout,), jnp.float32)}


def _init_bn(key, c):
    k1, k2, k3, k4 = jax.random.split(key, 4)
    return (1.0 + 0.1 * jax.random.normal(k1, (c,), jnp.float32),    # gamma
            0.1 * jax.random.normal(k2, (c,), jnp.float32),          # beta
            0.1 * jax.random.normal(k3, (c,), jnp.float32),          # running mean
            1.0 + 0.1 * jax.random.uniform(k4, (c,), jnp.float32),   # running var
            1e-5)


def _init_residual(key, inp, out):
    ks = jax.random.split(key, 7)
    mid = out // 2
    return {'bn1': _init_bn(ks[0], inp),
            'conv1': _init_conv(ks[1], inp, mid, 1),
            'bn2': _init_bn(ks[2], mid),
            'conv2': _init_conv(ks[3], mid, mid, 3),
            'bn3': _init_bn(ks[4], mid),
            'conv3': _init_conv(ks[5], mid, out, 1),
            'skip': _init_conv(ks[6], inp, out, 1) if inp != out else None}


def _init_hourglass(key, n, f, increase=0):
    nf = f + increase
    ks = jax.random.split(key, 4)
    p = {'up1': _init_residual(ks[0], f, f),
         'low1': _init_residual(ks[1], f, nf),
         'low3': _init_residual(ks[3], nf, f)}
    if n > 1:
        p['low2_type'] = 'hourglass'
        p['low2'] = _init_hourglass(ks[2], n - 1, nf)
    else:
        p['low2_type'] = 'residual'
        p['low2'] = _init_residual(ks[2], nf, nf)
    return p


def _ref_conv(x, cp):
    k = cp['w'].shape[2]
    pad = (k - 1) // 2
    y = lax.conv_general_dilated(x, cp['w'], (1, 1), [(pad, pad), (pad, pad)],
                                 dimension_numbers=('NCHW', 'OIHW', 'NCHW'),
                                 precision=lax.Precision.HIGHEST)
    return y + cp['b'][None, :, None, None]


def _ref_bn_relu(x, bn):
    gamma, beta, mean, var, eps = bn
    inv = gamma * lax.rsqrt(var + eps)
    y = x * inv[None, :, None, None] + (beta - mean * inv)[None, :, None, None]
    return jnp.maximum(y, 0.0)


def _ref_residual(x, p):
    residual = _ref_conv(x, p['skip']) if p['skip'] is not None else x
    out = _ref_conv(_ref_bn_relu(x, p['bn1']), p['conv1'])
    out = _ref_conv(_ref_bn_relu(out, p['bn2']), p['conv2'])
    out = _ref_conv(_ref_bn_relu(out, p['bn3']), p['conv3'])
    return out + residual


def _ref_hourglass(x, p):
    up1 = _ref_residual(x, p['up1'])
    low1 = _ref_residual(max_pool_2x2(x), p['low1'])
    if p['low2_type'] == 'hourglass':
        low2 = _ref_hourglass(low1, p['low2'])
    else:
        low2 = _ref_residual(low1, p['low2'])
    low3 = _ref_residual(low2, p['low3'])
    return up1 + upsample_nearest_2x(low3)


if __name__ == "__main__":
    B, F, H, W = 2, 4, 16, 16        # batch=2, channels=4, spatial=16x16
    NLEV, INC = 2, 2                 # Hourglass(n=2, f=4, increase=2) -> skip convs too

    key = jax.random.PRNGKey(0)
    kx, kp = jax.random.split(key)
    x = jax.random.normal(kx, (B, F, H, W), jnp.float32)
    params = _init_hourglass(kp, NLEV, F, increase=INC)

    ref = _ref_hourglass(x, params)

    # float32-operand debug path: tight correctness check of the fused kernels.
    fwd32 = jax.jit(lambda inp: hourglass_forward(inp, params, jnp.float32))
    y32 = jax.block_until_ready(fwd32(x))
    assert y32.shape == (B, F, H, W)
    rel32 = float(jnp.max(jnp.abs(y32 - ref)) / (jnp.max(jnp.abs(ref)) + 1e-6))
    assert rel32 < 1e-2, rel32

    # bf16 MXU-operand path (the performance configuration; fp32 accumulation).
    fwd = jax.jit(lambda inp: hourglass_forward(inp, params, jnp.bfloat16))
    y = jax.block_until_ready(fwd(x))
    assert y.shape == (B, F, H, W)
    rel = float(jnp.max(jnp.abs(y - ref)) / (jnp.max(jnp.abs(ref)) + 1e-6))
    assert rel < 5e-2, rel

    print("KERNEL_OK")
</pallas_src>

<mosaic_0001>
module attributes {stable_mosaic.version = 11 : i64} {
  func.func @kernel(%arg0: i32, %arg1: memref<1x16x128xf32, #tpu.memory_space<vmem>>, %arg2: memref<16x16xf32, #tpu.memory_space<vmem>>, %arg3: memref<16x144xf32, #tpu.memory_space<vmem>>, %arg4: memref<6x16xf32, #tpu.memory_space<vmem>>, %arg5: memref<6x16xf32, #tpu.memory_space<vmem>>, %arg6: memref<16x2xf32, #tpu.memory_space<vmem>>, %arg7: memref<16x4xf32, #tpu.memory_space<vmem>>, %arg8: memref<6x2xf32, #tpu.memory_space<vmem>>, %arg9: memref<1x6x128xf32, #tpu.memory_space<vmem>>, %arg10: memref<16x384xf32, #tpu.memory_space<vmem>>, %arg11: memref<144x128xf32, #tpu.memory_space<vmem>>) attributes {dimension_semantics = [#tpu.dimension_semantics<parallel>], iteration_bounds = array<i64: 2>, scalar_prefetch = 0 : i64, scratch_operands = 2 : i64, tpu.core_type = #tpu.core_type<tc>, window_params = [{transform_indices = @transform_0, window_bounds = array<i64: 1, 16, 128>}, {pipeline_mode = #tpu.pipeline_mode<synchronous>, transform_indices = @transform_1, window_bounds = array<i64: 16, 16>}, {pipeline_mode = #tpu.pipeline_mode<synchronous>, transform_indices = @transform_2, window_bounds = array<i64: 16, 144>}, {pipeline_mode = #tpu.pipeline_mode<synchronous>, transform_indices = @transform_3, window_bounds = array<i64: 6, 16>}, {pipeline_mode = #tpu.pipeline_mode<synchronous>, transform_indices = @transform_4, window_bounds = array<i64: 6, 16>}, {pipeline_mode = #tpu.pipeline_mode<synchronous>, transform_indices = @transform_5, window_bounds = array<i64: 16, 2>}, {pipeline_mode = #tpu.pipeline_mode<synchronous>, transform_indices = @transform_6, window_bounds = array<i64: 16, 4>}, {pipeline_mode = #tpu.pipeline_mode<synchronous>, transform_indices = @transform_7, window_bounds = array<i64: 6, 2>}, {transform_indices = @transform_8, window_bounds = array<i64: 1, 6, 128>}]} {
    %0 = tpu.iota {dimensions = array<i32: 1>} : vector<1x128xi32>
    %c7_i32 = arith.constant 7 : i32
    %1 = vector.broadcast %c7_i32 : i32 to vector<1x128xi32>
    %2 = arith.andi %0, %1 : vector<1x128xi32>
    %c0 = arith.constant 0 : index
    %c0_0 = arith.constant 0 : index
    %c0_1 = arith.constant 0 : index
    %3 = vector.load %arg1[%c0, %c0_0, %c0_1] : memref<1x16x128xf32, #tpu.memory_space<vmem>>, vector<1x16x128xf32>
    %4 = vector.shape_cast %3 : vector<1x16x128xf32> to vector<16x128xf32>
    %c0_2 = arith.constant 0 : index
    %c0_3 = arith.constant 0 : index
    %5 = vector.load %arg6[%c0_2, %c0_3] : memref<16x2xf32, #tpu.memory_space<vmem>>, vector<16x1xf32>
    %6 = vector.broadcast %5 : vector<16x1xf32> to vector<16x128xf32>
    %7 = arith.mulf %4, %6 : vector<16x128xf32>
    %c0_4 = arith.constant 0 : index
    %c1 = arith.constant 1 : index
    %8 = vector.load %arg6[%c0_4, %c1] : memref<16x2xf32, #tpu.memory_space<vmem>>, vector<16x1xf32>
    %9 = vector.broadcast %8 : vector<16x1xf32> to vector<16x128xf32>
    %10 = arith.addf %7, %9 : vector<16x128xf32>
    %cst = arith.constant 0.000000e+00 : f32
    %11 = vector.broadcast %cst : f32 to vector<16x128xf32>
    %12 = arith.maximumf %10, %11 : vector<16x128xf32>
    %c0_5 = arith.constant 0 : index
    %c0_6 = arith.constant 0 : index
    %13 = vector.load %arg2[%c0_5, %c0_6] : memref<16x16xf32, #tpu.memory_space<vmem>>, vector<16x16xf32>
    %cst_7 = arith.constant dense<0.000000e+00> : vector<16x128xf32>
    %14 = tpu.matmul %13, %12, %cst_7 {dimension_numbers = #tpu.dot_dimension_numbers<[1], [0], [0], [1], [0, 0, 1, 1], [], []>} : vector<16x16xf32>, vector<16x128xf32>, vector<16x128xf32> -> vector<16x128xf32>
    %c0_8 = arith.constant 0 : index
    %c0_9 = arith.constant 0 : index
    %15 = vector.load %arg7[%c0_8, %c0_9] : memref<16x4xf32, #tpu.memory_space<vmem>>, vector<16x1xf32>
    %16 = vector.broadcast %15 : vector<16x1xf32> to vector<16x128xf32>
    %17 = arith.mulf %14, %16 : vector<16x128xf32>
    %c0_10 = arith.constant 0 : index
    %c1_11 = arith.constant 1 : index
    %18 = vector.load %arg7[%c0_10, %c1_11] : memref<16x4xf32, #tpu.memory_space<vmem>>, vector<16x1xf32>
    %19 = vector.broadcast %18 : vector<16x1xf32> to vector<16x128xf32>
    %20 = arith.addf %17, %19 : vector<16x128xf32>
    %cst_12 = arith.constant 0.000000e+00 : f32
    %21 = vector.broadcast %cst_12 : f32 to vector<16x128xf32>
    %22 = arith.maximumf %20, %21 : vector<16x128xf32>
    %c64_i32 = arith.constant 64 : i32
    %23 = vector.broadcast %c64_i32 : i32 to vector<1x128xi32>
    %24 = arith.cmpi slt, %0, %23 : vector<1x128xi32>
    %cst_13 = arith.constant 0.000000e+00 : f32
    %25 = vector.broadcast %cst_13 : f32 to vector<16x128xf32>
    %26 = vector.shape_cast %24 : vector<1x128xi1> to vector<1x128xi1>
    %27 = vector.broadcast %26 : vector<1x128xi1> to vector<16x128xi1>
    %28 = arith.select %27, %22, %25 : vector<16x128xi1>, vector<16x128xf32>
    %cst_14 = arith.constant 0.000000e+00 : f32
    %29 = vector.broadcast %cst_14 : f32 to vector<16x128xf32>
    %c0_15 = arith.constant 0 : index
    %c0_16 = arith.constant 0 : index
    %30 = vector.load %arg10[%c0_15, %c0_16] : memref<16x384xf32, #tpu.memory_space<vmem>>, vector<16x128xf32>
    tpu.vector_store %arg10[%c0_15, %c0_16], %29 {strides = array<i32>} : memref<16x384xf32, #tpu.memory_space<vmem>>, vector<16x128xf32>,
    %c0_17 = arith.constant 0 : index
    %c256 = arith.constant 256 : index
    %31 = vector.load %arg10[%c0_17, %c256] : memref<16x384xf32, #tpu.memory_space<vmem>>, vector<16x128xf32>
    tpu.vector_store %arg10[%c0_17, %c256], %29 {strides = array<i32>} : memref<16x384xf32, #tpu.memory_space<vmem>>, vector<16x128xf32>,
    %c0_18 = arith.constant 0 : index
    %c128 = arith.constant 128 : index
    %32 = vector.load %arg10[%c0_18, %c128] : memref<16x384xf32, #tpu.memory_space<vmem>>, vector<16x128xf32>
    tpu.vector_store %arg10[%c0_18, %c128], %28 {strides = array<i32>} : memref<16x384xf32, #tpu.memory_space<vmem>>, vector<16x128xf32>,
    %c0_19 = arith.constant 0 : index
    %c119 = arith.constant 119 : index
    %33 = vector.load %arg10[%c0_19, %c119] : memref<16x384xf32, #tpu.memory_space<vmem>>, vector<16x128xf32>
    %c1_i32 = arith.constant 1 : i32
    %34 = vector.broadcast %c1_i32 : i32 to vector<1x128xi32>
    %35 = arith.cmpi sge, %2, %34 : vector<1x128xi32>
    %cst_20 = arith.constant 0.000000e+00 : f32
    %36 = vector.broadcast %cst_20 : f32 to vector<16x128xf32>
    %37 = vector.shape_cast %35 : vector<1x128xi1> to vector<1x128xi1>
    %38 = vector.broadcast %37 : vector<1x128xi1> to vector<16x128xi1>
    %39 = arith.select %38, %33, %36 : vector<16x128xi1>, vector<16x128xf32>
    %c0_21 = arith.constant 0 : index
    %c0_22 = arith.constant 0 : index
    %40 = vector.load %arg11[%c0_21, %c0_22] : memref<144x128xf32, #tpu.memory_space<vmem>>, vector<16x128xf32>
    tpu.vector_store %arg11[%c0_21, %c0_22], %39 {strides = array<i32>} : memref<144x128xf32, #tpu.memory_space<vmem>>, vector<16x128xf32>,
    %c0_23 = arith.constant 0 : index
    %c120 = arith.constant 120 : index
    %41 = vector.load %arg10[%c0_23, %c120] : memref<16x384xf32, #tpu.memory_space<vmem>>, vector<16x128xf32>
    %c16 = arith.constant 16 : index
    %c0_24 = arith.constant 0 : index
    %42 = vector.load %arg11[%c16, %c0_24] : memref<144x128xf32, #tpu.memory_space<vmem>>, vector<16x128xf32>
    tpu.vector_store %arg11[%c16, %c0_24], %41 {strides = array<i32>} : memref<144x128xf32, #tpu.memory_space<vmem>>, vector<16x128xf32>,
    %c0_25 = arith.constant 0 : index
    %c121 = arith.constant 121 : index
    %43 = vector.load %arg10[%c0_25, %c121] : memref<16x384xf32, #tpu.memory_space<vmem>>, vector<16x128xf32>
    %c7_i32_26 = arith.constant 7 : i32
    %44 = vector.broadcast %c7_i32_26 : i32 to vector<1x128xi32>
    %45 = arith.cmpi slt, %2, %44 : vector<1x128xi32>
    %cst_27 = arith.constant 0.000000e+00 : f32
    %46 = vector.broadcast %cst_27 : f32 to vector<16x128xf32>
    %47 = vector.shape_cast %45 : vector<1x128xi1> to vector<1x128xi1>
    %48 = vector.broadcast %47 : vector<1x128xi1> to vector<16x128xi1>
    %49 = arith.select %48, %43, %46 : vector<16x128xi1>, vector<16x128xf32>
    %c32 = arith.constant 32 : index
    %c0_28 = arith.constant 0 : index
    %50 = vector.load %arg11[%c32, %c0_28] : memref<144x128xf32, #tpu.memory_space<vmem>>, vector<16x128xf32>
    tpu.vector_store %arg11[%c32, %c0_28], %49 {strides = array<i32>} : memref<144x128xf32, #tpu.memory_space<vmem>>, vector<16x128xf32>,
    %c0_29 = arith.constant 0 : index
    %c127 = arith.constant 127 : index
    %51 = vector.load %arg10[%c0_29, %c127] : memref<16x384xf32, #tpu.memory_space<vmem>>, vector<16x128xf32>
    %c1_i32_30 = arith.constant 1 : i32
    %52 = vector.broadcast %c1_i32_30 : i32 to vector<1x128xi32>
    %53 = arith.cmpi sge, %2, %52 : vector<1x128xi32>
    %cst_31 = arith.constant 0.000000e+00 : f32
    %54 = vector.broadcast %cst_31 : f32 to vector<16x128xf32>
    %55 = vector.shape_cast %53 : vector<1x128xi1> to vector<1x128xi1>
    %56 = vector.broadcast %55 : vector<1x128xi1> to vector<16x128xi1>
    %57 = arith.select %56, %51, %54 : vector<16x128xi1>, vector<16x128xf32>
    %c48 = arith.constant 48 : index
    %c0_32 = arith.constant 0 : index
    %58 = vector.load %arg11[%c48, %c0_32] : memref<144x128xf32, #tpu.memory_space<vmem>>, vector<16x128xf32>
    tpu.vector_store %arg11[%c48, %c0_32], %57 {strides = array<i32>} : memref<144x128xf32, #tpu.memory_space<vmem>>, vector<16x128xf32>,
    %c64 = arith.constant 64 : index
    %c0_33 = arith.constant 0 : index
    %59 = vector.load %arg11[%c64, %c0_33] : memref<144x128xf32, #tpu.memory_space<vmem>>, vector<16x128xf32>
    tpu.vector_store %arg11[%c64, %c0_33], %28 {strides = array<i32>} : memref<144x128xf32, #tpu.memory_space<vmem>>, vector<16x128xf32>,
    %c0_34 = arith.constant 0 : index
    %c129 = arith.constant 129 : index
    %60 = vector.load %arg10[%c0_34, %c129] : memref<16x384xf32, #tpu.memory_space<vmem>>, vector<16x128xf32>
    %c7_i32_35 = arith.constant 7 : i32
    %61 = vector.broadcast %c7_i32_35 : i32 to vector<1x128xi32>
    %62 = arith.cmpi slt, %2, %61 : vector<1x128xi32>
    %cst_36 = arith.constant 0.000000e+00 : f32
    %63 = vector.broadcast %cst_36 : f32 to vector<16x128xf32>
    %64 = vector.shape_cast %62 : vector<1x128xi1> to vector<1x128xi1>
    %65 = vector.broadcast %64 : vector<1x128xi1> to vector<16x128xi1>
    %66 = arith.select %65, %60, %63 : vector<16x128xi1>, vector<16x128xf32>
    %c80 = arith.constant 80 : index
    %c0_37 = arith.constant 0 : index
    %67 = vector.load %arg11[%c80, %c0_37] : memref<144x128xf32, #tpu.memory_space<vmem>>, vector<16x128xf32>
    tpu.vector_store %arg11[%c80, %c0_37], %66 {strides = array<i32>} : memref<144x128xf32, #tpu.memory_space<vmem>>, vector<16x128xf32>,
    %c0_38 = arith.constant 0 : index
    %c135 = arith.constant 135 : index
    %68 = vector.load %arg10[%c0_38, %c135] : memref<16x384xf32, #tpu.memory_space<vmem>>, vector<16x128xf32>
    %c1_i32_39 = arith.constant 1 : i32
    %69 = vector.broadcast %c1_i32_39 : i32 to vector<1x128xi32>
    %70 = arith.cmpi sge, %2, %69 : vector<1x128xi32>
    %cst_40 = arith.constant 0.000000e+00 : f32
    %71 = vector.broadcast %cst_40 : f32 to vector<16x128xf32>
    %72 = vector.shape_cast %70 : vector<1x128xi1> to vector<1x128xi1>
    %73 = vector.broadcast %72 : vector<1x128xi1> to vector<16x128xi1>
    %74 = arith.select %73, %68, %71 : vector<16x128xi1>, vector<16x128xf32>
    %c96 = arith.constant 96 : index
    %c0_41 = arith.constant 0 : index
    %75 = vector.load %arg11[%c96, %c0_41] : memref<144x128xf32, #tpu.memory_space<vmem>>, vector<16x128xf32>
    tpu.vector_store %arg11[%c96, %c0_41], %74 {strides = array<i32>} : memref<144x128xf32, #tpu.memory_space<vmem>>, vector<16x128xf32>,
    %c0_42 = arith.constant 0 : index
    %c136 = arith.constant 136 : index
    %76 = vector.load %arg10[%c0_42, %c136] : memref<16x384xf32, #tpu.memory_space<vmem>>, vector<16x128xf32>
    %c112 = arith.constant 112 : index
    %c0_43 = arith.constant 0 : index
    %77 = vector.load %arg11[%c112, %c0_43] : memref<144x128xf32, #tpu.memory_space<vmem>>, vector<16x128xf32>
    tpu.vector_store %arg11[%c112, %c0_43], %76 {strides = array<i32>} : memref<144x128xf32, #tpu.memory_space<vmem>>, vector<16x128xf32>,
    %c0_44 = arith.constant 0 : index
    %c137 = arith.constant 137 : index
    %78 = vector.load %arg10[%c0_44, %c137] : memref<16x384xf32, #tpu.memory_space<vmem>>, vector<16x128xf32>
    %c7_i32_45 = arith.constant 7 : i32
    %79 = vector.broadcast %c7_i32_45 : i32 to vector<1x128xi32>
    %80 = arith.cmpi slt, %2, %79 : vector<1x128xi32>
    %cst_46 = arith.constant 0.000000e+00 : f32
    %81 = vector.broadcast %cst_46 : f32 to vector<16x128xf32>
    %82 = vector.shape_cast %80 : vector<1x128xi1> to vector<1x128xi1>
    %83 = vector.broadcast %82 : vector<1x128xi1> to vector<16x128xi1>
    %84 = arith.select %83, %78, %81 : vector<16x128xi1>, vector<16x128xf32>
    %c128_47 = arith.constant 128 : index
    %c0_48 = arith.constant 0 : index
    %85 = vector.load %arg11[%c128_47, %c0_48] : memref<144x128xf32, #tpu.memory_space<vmem>>, vector<16x128xf32>
    tpu.vector_store %arg11[%c128_47, %c0_48], %84 {strides = array<i32>} : memref<144x128xf32, #tpu.memory_space<vmem>>, vector<16x128xf32>,
    %c0_49 = arith.constant 0 : index
    %c0_50 = arith.constant 0 : index
    %86 = vector.load %arg3[%c0_49, %c0_50] : memref<16x144xf32, #tpu.memory_space<vmem>>, vector<16x144xf32>
    %c0_51 = arith.constant 0 : index
    %c0_52 = arith.constant 0 : index
    %87 = vector.load %arg11[%c0_51, %c0_52] : memref<144x128xf32, #tpu.memory_space<vmem>>, vector<144x128xf32>
    %cst_53 = arith.constant dense<0.000000e+00> : vector<16x128xf32>
    %88 = tpu.matmul %86, %87, %cst_53 {dimension_numbers = #tpu.dot_dimension_numbers<[1], [0], [0], [1], [0, 0, 1, 1], [], []>} : vector<16x144xf32>, vector<144x128xf32>, vector<16x128xf32> -> vector<16x128xf32>
    %c0_54 = arith.constant 0 : index
    %c2 = arith.constant 2 : index
    %89 = vector.load %arg7[%c0_54, %c2] : memref<16x4xf32, #tpu.memory_space<vmem>>, vector<16x1xf32>
    %90 = vector.broadcast %89 : vector<16x1xf32> to vector<16x128xf32>
    %91 = arith.mulf %88, %90 : vector<16x128xf32>
    %c0_55 = arith.constant 0 : index
    %c3 = arith.constant 3 : index
    %92 = vector.load %arg7[%c0_55, %c3] : memref<16x4xf32, #tpu.memory_space<vmem>>, vector<16x1xf32>
    %93 = vector.broadcast %92 : vector<16x1xf32> to vector<16x128xf32>
    %94 = arith.addf %91, %93 : vector<16x128xf32>
    %cst_56 = arith.constant 0.000000e+00 : f32
    %95 = vector.broadcast %cst_56 : f32 to vector<16x128xf32>
    %96 = arith.maximumf %94, %95 : vector<16x128xf32>
    %c0_57 = arith.constant 0 : index
    %c0_58 = arith.constant 0 : index
    %97 = vector.load %arg4[%c0_57, %c0_58] : memref<6x16xf32, #tpu.memory_space<vmem>>, vector<6x16xf32>
    %cst_59 = arith.constant dense<0.000000e+00> : vector<6x128xf32>
    %98 = tpu.matmul %97, %96, %cst_59 {dimension_numbers = #tpu.dot_dimension_numbers<[1], [0], [0], [1], [0, 0, 1, 1], [], []>} : vector<6x16xf32>, vector<16x128xf32>, vector<6x128xf32> -> vector<6x128xf32>
    %c0_60 = arith.constant 0 : index
    %c0_61 = arith.constant 0 : index
    %99 = vector.load %arg8[%c0_60, %c0_61] : memref<6x2xf32, #tpu.memory_space<vmem>>, vector<6x1xf32>
    %100 = vector.broadcast %99 : vector<6x1xf32> to vector<6x128xf32>
    %101 = arith.addf %98, %100 : vector<6x128xf32>
    %c0_62 = arith.constant 0 : index
    %c0_63 = arith.constant 0 : index
    %102 = vector.load %arg5[%c0_62, %c0_63] : memref<6x16xf32, #tpu.memory_space<vmem>>, vector<6x16xf32>
    %cst_64 = arith.constant dense<0.000000e+00> : vector<6x128xf32>
    %103 = tpu.matmul %102, %4, %cst_64 {dimension_numbers = #tpu.dot_dimension_numbers<[1], [0], [0], [1], [0, 0, 1, 1], [], []>} : vector<6x16xf32>, vector<16x128xf32>, vector<6x128xf32> -> vector<6x128xf32>
    %c0_65 = arith.constant 0 : index
    %c1_66 = arith.constant 1 : index
    %104 = vector.load %arg8[%c0_65, %c1_66] : memref<6x2xf32, #tpu.memory_space<vmem>>, vector<6x1xf32>
    %105 = vector.broadcast %104 : vector<6x1xf32> to vector<6x128xf32>
    %106 = arith.addf %103, %105 : vector<6x128xf32>
    %107 = arith.addf %101, %106 : vector<6x128xf32>
    %c0_67 = arith.constant 0 : index
    %c0_68 = arith.constant 0 : index
    %c0_69 = arith.constant 0 : index
    %108 = vector.load %arg9[%c0_67, %c0_68, %c0_69] : memref<1x6x128xf32, #tpu.memory_space<vmem>>, vector<1x6x128xf32>
    %109 = vector.shape_cast %108 : vector<1x6x128xf32> to vector<6x128xf32>
    %110 = vector.shape_cast %107 : vector<6x128xf32> to vector<1x6x128xf32>
    tpu.vector_store %arg9[%c0_67, %c0_68, %c0_69], %110 {strides = array<i32>} : memref<1x6x128xf32, #tpu.memory_space<vmem>>, vector<1x6x128xf32>,
    return
  }
  func.func @transform_0(%arg0: i32) -> (i32, i32, i32) {
    %c0_i32 = arith.constant 0 : i32
    %c0_i32_0 = arith.constant 0 : i32
    %c0_i32_1 = arith.constant 0 : i32
    return %arg0, %c0_i32, %c0_i32_0 : i32, i32, i32
  }
  func.func @transform_1(%arg0: i32) -> (i32, i32) {
    %c0_i32 = arith.constant 0 : i32
    %c0_i32_0 = arith.constant 0 : i32
    %c0_i32_1 = arith.constant 0 : i32
    return %c0_i32, %c0_i32_0 : i32, i32
  }
  func.func @transform_2(%arg0: i32) -> (i32, i32) {
    %c0_i32 = arith.constant 0 : i32
    %c0_i32_0 = arith.constant 0 : i32
    %c0_i32_1 = arith.constant 0 : i32
    return %c0_i32, %c0_i32_0 : i32, i32
  }
  func.func @transform_3(%arg0: i32) -> (i32, i32) {
    %c0_i32 = arith.constant 0 : i32
    %c0_i32_0 = arith.constant 0 : i32
    %c0_i32_1 = arith.constant 0 : i32
    return %c0_i32, %c0_i32_0 : i32, i32
  }
  func.func @transform_4(%arg0: i32) -> (i32, i32) {
    %c0_i32 = arith.constant 0 : i32
    %c0_i32_0 = arith.constant 0 : i32
    %c0_i32_1 = arith.constant 0 : i32
    return %c0_i32, %c0_i32_0 : i32, i32
  }
  func.func @transform_5(%arg0: i32) -> (i32, i32) {
    %c0_i32 = arith.constant 0 : i32
    %c0_i32_0 = arith.constant 0 : i32
    %c0_i32_1 = arith.constant 0 : i32
    return %c0_i32, %c0_i32_0 : i32, i32
  }
  func.func @transform_6(%arg0: i32) -> (i32, i32) {
    %c0_i32 = arith.constant 0 : i32
    %c0_i32_0 = arith.constant 0 : i32
    %c0_i32_1 = arith.constant 0 : i32
    return %c0_i32, %c0_i32_0 : i32, i32
  }
  func.func @transform_7(%arg0: i32) -> (i32, i32) {
    %c0_i32 = arith.constant 0 : i32
    %c0_i32_0 = arith.constant 0 : i32
    %c0_i32_1 = arith.constant 0 : i32
    return %c0_i32, %c0_i32_0 : i32, i32
  }
  func.func @transform_8(%arg0: i32) -> (i32, i32, i32) {
    %c0_i32 = arith.constant 0 : i32
    %c0_i32_0 = arith.constant 0 : i32
    %c0_i32_1 = arith.constant 0 : i32
    return %arg0, %c0_i32, %c0_i32_0 : i32, i32, i32
  }
}

module attributes {stable_mosaic.version = 11 : i64} {
  func.func @kernel(%arg0: i32, %arg1: memref<1x16x128xf32, #tpu.memory_space<vmem>>, %arg2: memref<16x16xf32, #tpu.memory_space<vmem>>, %arg3: memref<16x144xf32, #tpu.memory_space<vmem>>, %arg4: memref<6x16xf32, #tpu.memory_space<vmem>>, %arg5: memref<16x2xf32, #tpu.memory_space<vmem>>, %arg6: memref<16x4xf32, #tpu.memory_space<vmem>>, %arg7: memref<6x2xf32, #tpu.memory_space<vmem>>, %arg8: memref<1x6x128xf32, #tpu.memory_space<vmem>>, %arg9: memref<16x384xf32, #tpu.memory_space<vmem>>, %arg10: memref<144x128xf32, #tpu.memory_space<vmem>>) attributes {dimension_semantics = [#tpu.dimension_semantics<parallel>], iteration_bounds = array<i64: 2>, scalar_prefetch = 0 : i64, scratch_operands = 2 : i64, tpu.core_type = #tpu.core_type<tc>, window_params = [{transform_indices = @transform_0, window_bounds = array<i64: 1, 16, 128>}, {pipeline_mode = #tpu.pipeline_mode<synchronous>, transform_indices = @transform_1, window_bounds = array<i64: 16, 16>}, {pipeline_mode = #tpu.pipeline_mode<synchronous>, transform_indices = @transform_2, window_bounds = array<i64: 16, 144>}, {pipeline_mode = #tpu.pipeline_mode<synchronous>, transform_indices = @transform_3, window_bounds = array<i64: 6, 16>}, {pipeline_mode = #tpu.pipeline_mode<synchronous>, transform_indices = @transform_4, window_bounds = array<i64: 16, 2>}, {pipeline_mode = #tpu.pipeline_mode<synchronous>, transform_indices = @transform_5, window_bounds = array<i64: 16, 4>}, {pipeline_mode = #tpu.pipeline_mode<synchronous>, transform_indices = @transform_6, window_bounds = array<i64: 6, 2>}, {transform_indices = @transform_7, window_bounds = array<i64: 1, 6, 128>}]} {
    %0 = tpu.iota {dimensions = array<i32: 1>} : vector<1x128xi32>
    %c3_i32 = arith.constant 3 : i32
    %1 = vector.broadcast %c3_i32 : i32 to vector<1x128xi32>
    %2 = arith.andi %0, %1 : vector<1x128xi32>
    %c0 = arith.constant 0 : index
    %c0_0 = arith.constant 0 : index
    %c0_1 = arith.constant 0 : index
    %3 = vector.load %arg1[%c0, %c0_0, %c0_1] : memref<1x16x128xf32, #tpu.memory_space<vmem>>, vector<1x16x128xf32>
    %4 = vector.shape_cast %3 : vector<1x16x128xf32> to vector<16x128xf32>
    %c0_2 = arith.constant 0 : index
    %c0_3 = arith.constant 0 : index
    %5 = vector.load %arg5[%c0_2, %c0_3] : memref<16x2xf32, #tpu.memory_space<vmem>>, vector<16x1xf32>
    %6 = vector.broadcast %5 : vector<16x1xf32> to vector<16x128xf32>
    %7 = arith.mulf %4, %6 : vector<16x128xf32>
    %c0_4 = arith.constant 0 : index
    %c1 = arith.constant 1 : index
    %8 = vector.load %arg5[%c0_4, %c1] : memref<16x2xf32, #tpu.memory_space<vmem>>, vector<16x1xf32>
    %9 = vector.broadcast %8 : vector<16x1xf32> to vector<16x128xf32>
    %10 = arith.addf %7, %9 : vector<16x128xf32>
    %cst = arith.constant 0.000000e+00 : f32
    %11 = vector.broadcast %cst : f32 to vector<16x128xf32>
    %12 = arith.maximumf %10, %11 : vector<16x128xf32>
    %c0_5 = arith.constant 0 : index
    %c0_6 = arith.constant 0 : index
    %13 = vector.load %arg2[%c0_5, %c0_6] : memref<16x16xf32, #tpu.memory_space<vmem>>, vector<16x16xf32>
    %cst_7 = arith.constant dense<0.000000e+00> : vector<16x128xf32>
    %14 = tpu.matmul %13, %12, %cst_7 {dimension_numbers = #tpu.dot_dimension_numbers<[1], [0], [0], [1], [0, 0, 1, 1], [], []>} : vector<16x16xf32>, vector<16x128xf32>, vector<16x128xf32> -> vector<16x128xf32>
    %c0_8 = arith.constant 0 : index
    %c0_9 = arith.constant 0 : index
    %15 = vector.load %arg6[%c0_8, %c0_9] : memref<16x4xf32, #tpu.memory_space<vmem>>, vector<16x1xf32>
    %16 = vector.broadcast %15 : vector<16x1xf32> to vector<16x128xf32>
    %17 = arith.mulf %14, %16 : vector<16x128xf32>
    %c0_10 = arith.constant 0 : index
    %c1_11 = arith.constant 1 : index
    %18 = vector.load %arg6[%c0_10, %c1_11] : memref<16x4xf32, #tpu.memory_space<vmem>>, vector<16x1xf32>
    %19 = vector.broadcast %18 : vector<16x1xf32> to vector<16x128xf32>
    %20 = arith.addf %17, %19 : vector<16x128xf32>
    %cst_12 = arith.constant 0.000000e+00 : f32
    %21 = vector.broadcast %cst_12 : f32 to vector<16x128xf32>
    %22 = arith.maximumf %20, %21 : vector<16x128xf32>
    %c16_i32 = arith.constant 16 : i32
    %23 = vector.broadcast %c16_i32 : i32 to vector<1x128xi32>
    %24 = arith.cmpi slt, %0, %23 : vector<1x128xi32>
    %cst_13 = arith.constant 0.000000e+00 : f32
    %25 = vector.broadcast %cst_13 : f32 to vector<16x128xf32>
    %26 = vector.shape_cast %24 : vector<1x128xi1> to vector<1x128xi1>
    %27 = vector.broadcast %26 : vector<1x128xi1> to vector<16x128xi1>
    %28 = arith.select %27, %22, %25 : vector<16x128xi1>, vector<16x128xf32>
    %cst_14 = arith.constant 0.000000e+00 : f32
    %29 = vector.broadcast %cst_14 : f32 to vector<16x128xf32>
    %c0_15 = arith.constant 0 : index
    %c0_16 = arith.constant 0 : index
    %30 = vector.load %arg9[%c0_15, %c0_16] : memref<16x384xf32, #tpu.memory_space<vmem>>, vector<16x128xf32>
    tpu.vector_store %arg9[%c0_15, %c0_16], %29 {strides = array<i32>} : memref<16x384xf32, #tpu.memory_space<vmem>>, vector<16x128xf32>,
    %c0_17 = arith.constant 0 : index
    %c256 = arith.constant 256 : index
    %31 = vector.load %arg9[%c0_17, %c256] : memref<16x384xf32, #tpu.memory_space<vmem>>, vector<16x128xf32>
    tpu.vector_store %arg9[%c0_17, %c256], %29 {strides = array<i32>} : memref<16x384xf32, #tpu.memory_space<vmem>>, vector<16x128xf32>,
    %c0_18 = arith.constant 0 : index
    %c128 = arith.constant 128 : index
    %32 = vector.load %arg9[%c0_18, %c128] : memref<16x384xf32, #tpu.memory_space<vmem>>, vector<16x128xf32>
    tpu.vector_store %arg9[%c0_18, %c128], %28 {strides = array<i32>} : memref<16x384xf32, #tpu.memory_space<vmem>>, vector<16x128xf32>,
    %c0_19 = arith.constant 0 : index
    %c123 = arith.constant 123 : index
    %33 = vector.load %arg9[%c0_19, %c123] : memref<16x384xf32, #tpu.memory_space<vmem>>, vector<16x128xf32>
    %c1_i32 = arith.constant 1 : i32
    %34 = vector.broadcast %c1_i32 : i32 to vector<1x128xi32>
    %35 = arith.cmpi sge, %2, %34 : vector<1x128xi32>
    %cst_20 = arith.constant 0.000000e+00 : f32
    %36 = vector.broadcast %cst_20 : f32 to vector<16x128xf32>
    %37 = vector.shape_cast %35 : vector<1x128xi1> to vector<1x128xi1>
    %38 = vector.broadcast %37 : vector<1x128xi1> to vector<16x128xi1>
    %39 = arith.select %38, %33, %36 : vector<16x128xi1>, vector<16x128xf32>
    %c0_21 = arith.constant 0 : index
    %c0_22 = arith.constant 0 : index
    %40 = vector.load %arg10[%c0_21, %c0_22] : memref<144x128xf32, #tpu.memory_space<vmem>>, vector<16x128xf32>
    tpu.vector_store %arg10[%c0_21, %c0_22], %39 {strides = array<i32>} : memref<144x128xf32, #tpu.memory_space<vmem>>, vector<16x128xf32>,
    %c0_23 = arith.constant 0 : index
    %c124 = arith.constant 124 : index
    %41 = vector.load %arg9[%c0_23, %c124] : memref<16x384xf32, #tpu.memory_space<vmem>>, vector<16x128xf32>
    %c16 = arith.constant 16 : index
    %c0_24 = arith.constant 0 : index
    %42 = vector.load %arg10[%c16, %c0_24] : memref<144x128xf32, #tpu.memory_space<vmem>>, vector<16x128xf32>
    tpu.vector_store %arg10[%c16, %c0_24], %41 {strides = array<i32>} : memref<144x128xf32, #tpu.memory_space<vmem>>, vector<16x128xf32>,
    %c0_25 = arith.constant 0 : index
    %c125 = arith.constant 125 : index
    %43 = vector.load %arg9[%c0_25, %c125] : memref<16x384xf32, #tpu.memory_space<vmem>>, vector<16x128xf32>
    %c3_i32_26 = arith.constant 3 : i32
    %44 = vector.broadcast %c3_i32_26 : i32 to vector<1x128xi32>
    %45 = arith.cmpi slt, %2, %44 : vector<1x128xi32>
    %cst_27 = arith.constant 0.000000e+00 : f32
    %46 = vector.broadcast %cst_27 : f32 to vector<16x128xf32>
    %47 = vector.shape_cast %45 : vector<1x128xi1> to vector<1x128xi1>
    %48 = vector.broadcast %47 : vector<1x128xi1> to vector<16x128xi1>
    %49 = arith.select %48, %43, %46 : vector<16x128xi1>, vector<16x128xf32>
    %c32 = arith.constant 32 : index
    %c0_28 = arith.constant 0 : index
    %50 = vector.load %arg10[%c32, %c0_28] : memref<144x128xf32, #tpu.memory_space<vmem>>, vector<16x128xf32>
    tpu.vector_store %arg10[%c32, %c0_28], %49 {strides = array<i32>} : memref<144x128xf32, #tpu.memory_space<vmem>>, vector<16x128xf32>,
    %c0_29 = arith.constant 0 : index
    %c127 = arith.constant 127 : index
    %51 = vector.load %arg9[%c0_29, %c127] : memref<16x384xf32, #tpu.memory_space<vmem>>, vector<16x128xf32>
    %c1_i32_30 = arith.constant 1 : i32
    %52 = vector.broadcast %c1_i32_30 : i32 to vector<1x128xi32>
    %53 = arith.cmpi sge, %2, %52 : vector<1x128xi32>
    %cst_31 = arith.constant 0.000000e+00 : f32
    %54 = vector.broadcast %cst_31 : f32 to vector<16x128xf32>
    %55 = vector.shape_cast %53 : vector<1x128xi1> to vector<1x128xi1>
    %56 = vector.broadcast %55 : vector<1x128xi1> to vector<16x128xi1>
    %57 = arith.select %56, %51, %54 : vector<16x128xi1>, vector<16x128xf32>
    %c48 = arith.constant 48 : index
    %c0_32 = arith.constant 0 : index
    %58 = vector.load %arg10[%c48, %c0_32] : memref<144x128xf32, #tpu.memory_space<vmem>>, vector<16x128xf32>
    tpu.vector_store %arg10[%c48, %c0_32], %57 {strides = array<i32>} : memref<144x128xf32, #tpu.memory_space<vmem>>, vector<16x128xf32>,
    %c64 = arith.constant 64 : index
    %c0_33 = arith.constant 0 : index
    %59 = vector.load %arg10[%c64, %c0_33] : memref<144x128xf32, #tpu.memory_space<vmem>>, vector<16x128xf32>
    tpu.vector_store %arg10[%c64, %c0_33], %28 {strides = array<i32>} : memref<144x128xf32, #tpu.memory_space<vmem>>, vector<16x128xf32>,
    %c0_34 = arith.constant 0 : index
    %c129 = arith.constant 129 : index
    %60 = vector.load %arg9[%c0_34, %c129] : memref<16x384xf32, #tpu.memory_space<vmem>>, vector<16x128xf32>
    %c3_i32_35 = arith.constant 3 : i32
    %61 = vector.broadcast %c3_i32_35 : i32 to vector<1x128xi32>
    %62 = arith.cmpi slt, %2, %61 : vector<1x128xi32>
    %cst_36 = arith.constant 0.000000e+00 : f32
    %63 = vector.broadcast %cst_36 : f32 to vector<16x128xf32>
    %64 = vector.shape_cast %62 : vector<1x128xi1> to vector<1x128xi1>
    %65 = vector.broadcast %64 : vector<1x128xi1> to vector<16x128xi1>
    %66 = arith.select %65, %60, %63 : vector<16x128xi1>, vector<16x128xf32>
    %c80 = arith.constant 80 : index
    %c0_37 = arith.constant 0 : index
    %67 = vector.load %arg10[%c80, %c0_37] : memref<144x128xf32, #tpu.memory_space<vmem>>, vector<16x128xf32>
    tpu.vector_store %arg10[%c80, %c0_37], %66 {strides = array<i32>} : memref<144x128xf32, #tpu.memory_space<vmem>>, vector<16x128xf32>,
    %c0_38 = arith.constant 0 : index
    %c131 = arith.constant 131 : index
    %68 = vector.load %arg9[%c0_38, %c131] : memref<16x384xf32, #tpu.memory_space<vmem>>, vector<16x128xf32>
    %c1_i32_39 = arith.constant 1 : i32
    %69 = vector.broadcast %c1_i32_39 : i32 to vector<1x128xi32>
    %70 = arith.cmpi sge, %2, %69 : vector<1x128xi32>
    %cst_40 = arith.constant 0.000000e+00 : f32
    %71 = vector.broadcast %cst_40 : f32 to vector<16x128xf32>
    %72 = vector.shape_cast %70 : vector<1x128xi1> to vector<1x128xi1>
    %73 = vector.broadcast %72 : vector<1x128xi1> to vector<16x128xi1>
    %74 = arith.select %73, %68, %71 : vector<16x128xi1>, vector<16x128xf32>
    %c96 = arith.constant 96 : index
    %c0_41 = arith.constant 0 : index
    %75 = vector.load %arg10[%c96, %c0_41] : memref<144x128xf32, #tpu.memory_space<vmem>>, vector<16x128xf32>
    tpu.vector_store %arg10[%c96, %c0_41], %74 {strides = array<i32>} : memref<144x128xf32, #tpu.memory_space<vmem>>, vector<16x128xf32>,
    %c0_42 = arith.constant 0 : index
    %c132 = arith.constant 132 : index
    %76 = vector.load %arg9[%c0_42, %c132] : memref<16x384xf32, #tpu.memory_space<vmem>>, vector<16x128xf32>
    %c112 = arith.constant 112 : index
    %c0_43 = arith.constant 0 : index
    %77 = vector.load %arg10[%c112, %c0_43] : memref<144x128xf32, #tpu.memory_space<vmem>>, vector<16x128xf32>
    tpu.vector_store %arg10[%c112, %c0_43], %76 {strides = array<i32>} : memref<144x128xf32, #tpu.memory_space<vmem>>, vector<16x128xf32>,
    %c0_44 = arith.constant 0 : index
    %c133 = arith.constant 133 : index
    %78 = vector.load %arg9[%c0_44, %c133] : memref<16x384xf32, #tpu.memory_space<vmem>>, vector<16x128xf32>
    %c3_i32_45 = arith.constant 3 : i32
    %79 = vector.broadcast %c3_i32_45 : i32 to vector<1x128xi32>
    %80 = arith.cmpi slt, %2, %79 : vector<1x128xi32>
    %cst_46 = arith.constant 0.000000e+00 : f32
    %81 = vector.broadcast %cst_46 : f32 to vector<16x128xf32>
    %82 = vector.shape_cast %80 : vector<1x128xi1> to vector<1x128xi1>
    %83 = vector.broadcast %82 : vector<1x128xi1> to vector<16x128xi1>
    %84 = arith.select %83, %78, %81 : vector<16x128xi1>, vector<16x128xf32>
    %c128_47 = arith.constant 128 : index
    %c0_48 = arith.constant 0 : index
    %85 = vector.load %arg10[%c128_47, %c0_48] : memref<144x128xf32, #tpu.memory_space<vmem>>, vector<16x128xf32>
    tpu.vector_store %arg10[%c128_47, %c0_48], %84 {strides = array<i32>} : memref<144x128xf32, #tpu.memory_space<vmem>>, vector<16x128xf32>,
    %c0_49 = arith.constant 0 : index
    %c0_50 = arith.constant 0 : index
    %86 = vector.load %arg3[%c0_49, %c0_50] : memref<16x144xf32, #tpu.memory_space<vmem>>, vector<16x144xf32>
    %c0_51 = arith.constant 0 : index
    %c0_52 = arith.constant 0 : index
    %87 = vector.load %arg10[%c0_51, %c0_52] : memref<144x128xf32, #tpu.memory_space<vmem>>, vector<144x128xf32>
    %cst_53 = arith.constant dense<0.000000e+00> : vector<16x128xf32>
    %88 = tpu.matmul %86, %87, %cst_53 {dimension_numbers = #tpu.dot_dimension_numbers<[1], [0], [0], [1], [0, 0, 1, 1], [], []>} : vector<16x144xf32>, vector<144x128xf32>, vector<16x128xf32> -> vector<16x128xf32>
    %c0_54 = arith.constant 0 : index
    %c2 = arith.constant 2 : index
    %89 = vector.load %arg6[%c0_54, %c2] : memref<16x4xf32, #tpu.memory_space<vmem>>, vector<16x1xf32>
    %90 = vector.broadcast %89 : vector<16x1xf32> to vector<16x128xf32>
    %91 = arith.mulf %88, %90 : vector<16x128xf32>
    %c0_55 = arith.constant 0 : index
    %c3 = arith.constant 3 : index
    %92 = vector.load %arg6[%c0_55, %c3] : memref<16x4xf32, #tpu.memory_space<vmem>>, vector<16x1xf32>
    %93 = vector.broadcast %92 : vector<16x1xf32> to vector<16x128xf32>
    %94 = arith.addf %91, %93 : vector<16x128xf32>
    %cst_56 = arith.constant 0.000000e+00 : f32
    %95 = vector.broadcast %cst_56 : f32 to vector<16x128xf32>
    %96 = arith.maximumf %94, %95 : vector<16x128xf32>
    %c0_57 = arith.constant 0 : index
    %c0_58 = arith.constant 0 : index
    %97 = vector.load %arg4[%c0_57, %c0_58] : memref<6x16xf32, #tpu.memory_space<vmem>>, vector<6x16xf32>
    %cst_59 = arith.constant dense<0.000000e+00> : vector<6x128xf32>
    %98 = tpu.matmul %97, %96, %cst_59 {dimension_numbers = #tpu.dot_dimension_numbers<[1], [0], [0], [1], [0, 0, 1, 1], [], []>} : vector<6x16xf32>, vector<16x128xf32>, vector<6x128xf32> -> vector<6x128xf32>
    %c0_60 = arith.constant 0 : index
    %c0_61 = arith.constant 0 : index
    %99 = vector.load %arg7[%c0_60, %c0_61] : memref<6x2xf32, #tpu.memory_space<vmem>>, vector<6x1xf32>
    %100 = vector.broadcast %99 : vector<6x1xf32> to vector<6x128xf32>
    %101 = arith.addf %98, %100 : vector<6x128xf32>
    %102 = vector.extract_strided_slice %4 {offsets = [0, 0], sizes = [6, 128], strides = [1, 1]} : vector<16x128xf32> to vector<6x128xf32>
    %103 = arith.addf %101, %102 : vector<6x128xf32>
    %c0_62 = arith.constant 0 : index
    %c0_63 = arith.constant 0 : index
    %c0_64 = arith.constant 0 : index
    %104 = vector.load %arg8[%c0_62, %c0_63, %c0_64] : memref<1x6x128xf32, #tpu.memory_space<vmem>>, vector<1x6x128xf32>
    %105 = vector.shape_cast %104 : vector<1x6x128xf32> to vector<6x128xf32>
    %106 = vector.shape_cast %103 : vector<6x128xf32> to vector<1x6x128xf32>
    tpu.vector_store %arg8[%c0_62, %c0_63, %c0_64], %106 {strides = array<i32>} : memref<1x6x128xf32, #tpu.memory_space<vmem>>, vector<1x6x128xf32>,
    return
  }
  func.func @transform_0(%arg0: i32) -> (i32, i32, i32) {
    %c0_i32 = arith.constant 0 : i32
    %c0_i32_0 = arith.constant 0 : i32
    %c0_i32_1 = arith.constant 0 : i32
    return %arg0, %c0_i32, %c0_i32_0 : i32, i32, i32
  }
  func.func @transform_1(%arg0: i32) -> (i32, i32) {
    %c0_i32 = arith.constant 0 : i32
    %c0_i32_0 = arith.constant 0 : i32
    %c0_i32_1 = arith.constant 0 : i32
    return %c0_i32, %c0_i32_0 : i32, i32
  }
  func.func @transform_2(%arg0: i32) -> (i32, i32) {
    %c0_i32 = arith.constant 0 : i32
    %c0_i32_0 = arith.constant 0 : i32
    %c0_i32_1 = arith.constant 0 : i32
    return %c0_i32, %c0_i32_0 : i32, i32
  }
  func.func @transform_3(%arg0: i32) -> (i32, i32) {
    %c0_i32 = arith.constant 0 : i32
    %c0_i32_0 = arith.constant 0 : i32
    %c0_i32_1 = arith.constant 0 : i32
    return %c0_i32, %c0_i32_0 : i32, i32
  }
  func.func @transform_4(%arg0: i32) -> (i32, i32) {
    %c0_i32 = arith.constant 0 : i32
    %c0_i32_0 = arith.constant 0 : i32
    %c0_i32_1 = arith.constant 0 : i32
    return %c0_i32, %c0_i32_0 : i32, i32
  }
  func.func @transform_5(%arg0: i32) -> (i32, i32) {
    %c0_i32 = arith.constant 0 : i32
    %c0_i32_0 = arith.constant 0 : i32
    %c0_i32_1 = arith.constant 0 : i32
    return %c0_i32, %c0_i32_0 : i32, i32
  }
  func.func @transform_6(%arg0: i32) -> (i32, i32) {
    %c0_i32 = arith.constant 0 : i32
    %c0_i32_0 = arith.constant 0 : i32
    %c0_i32_1 = arith.constant 0 : i32
    return %c0_i32, %c0_i32_0 : i32, i32
  }
  func.func @transform_7(%arg0: i32) -> (i32, i32, i32) {
    %c0_i32 = arith.constant 0 : i32
    %c0_i32_0 = arith.constant 0 : i32
    %c0_i32_1 = arith.constant 0 : i32
    return %arg0, %c0_i32, %c0_i32_0 : i32, i32, i32
  }
}

module attributes {stable_mosaic.version = 11 : i64} {
  func.func @kernel(%arg0: i32, %arg1: memref<1x16x128xf32, #tpu.memory_space<vmem>>, %arg2: memref<16x16xf32, #tpu.memory_space<vmem>>, %arg3: memref<16x144xf32, #tpu.memory_space<vmem>>, %arg4: memref<6x16xf32, #tpu.memory_space<vmem>>, %arg5: memref<16x2xf32, #tpu.memory_space<vmem>>, %arg6: memref<16x4xf32, #tpu.memory_space<vmem>>, %arg7: memref<6x2xf32, #tpu.memory_space<vmem>>, %arg8: memref<1x6x128xf32, #tpu.memory_space<vmem>>, %arg9: memref<16x384xf32, #tpu.memory_space<vmem>>, %arg10: memref<144x128xf32, #tpu.memory_space<vmem>>) attributes {dimension_semantics = [#tpu.dimension_semantics<parallel>], iteration_bounds = array<i64: 2>, scalar_prefetch = 0 : i64, scratch_operands = 2 : i64, tpu.core_type = #tpu.core_type<tc>, window_params = [{transform_indices = @transform_0, window_bounds = array<i64: 1, 16, 128>}, {pipeline_mode = #tpu.pipeline_mode<synchronous>, transform_indices = @transform_1, window_bounds = array<i64: 16, 16>}, {pipeline_mode = #tpu.pipeline_mode<synchronous>, transform_indices = @transform_2, window_bounds = array<i64: 16, 144>}, {pipeline_mode = #tpu.pipeline_mode<synchronous>, transform_indices = @transform_3, window_bounds = array<i64: 6, 16>}, {pipeline_mode = #tpu.pipeline_mode<synchronous>, transform_indices = @transform_4, window_bounds = array<i64: 16, 2>}, {pipeline_mode = #tpu.pipeline_mode<synchronous>, transform_indices = @transform_5, window_bounds = array<i64: 16, 4>}, {pipeline_mode = #tpu.pipeline_mode<synchronous>, transform_indices = @transform_6, window_bounds = array<i64: 6, 2>}, {transform_indices = @transform_7, window_bounds = array<i64: 1, 6, 128>}]} {
    %0 = tpu.iota {dimensions = array<i32: 1>} : vector<1x128xi32>
    %c7_i32 = arith.constant 7 : i32
    %1 = vector.broadcast %c7_i32 : i32 to vector<1x128xi32>
    %2 = arith.andi %0, %1 : vector<1x128xi32>
    %c0 = arith.constant 0 : index
    %c0_0 = arith.constant 0 : index
    %c0_1 = arith.constant 0 : index
    %3 = vector.load %arg1[%c0, %c0_0, %c0_1] : memref<1x16x128xf32, #tpu.memory_space<vmem>>, vector<1x16x128xf32>
    %4 = vector.shape_cast %3 : vector<1x16x128xf32> to vector<16x128xf32>
    %c0_2 = arith.constant 0 : index
    %c0_3 = arith.constant 0 : index
    %5 = vector.load %arg5[%c0_2, %c0_3] : memref<16x2xf32, #tpu.memory_space<vmem>>, vector<16x1xf32>
    %6 = vector.broadcast %5 : vector<16x1xf32> to vector<16x128xf32>
    %7 = arith.mulf %4, %6 : vector<16x128xf32>
    %c0_4 = arith.constant 0 : index
    %c1 = arith.constant 1 : index
    %8 = vector.load %arg5[%c0_4, %c1] : memref<16x2xf32, #tpu.memory_space<vmem>>, vector<16x1xf32>
    %9 = vector.broadcast %8 : vector<16x1xf32> to vector<16x128xf32>
    %10 = arith.addf %7, %9 : vector<16x128xf32>
    %cst = arith.constant 0.000000e+00 : f32
    %11 = vector.broadcast %cst : f32 to vector<16x128xf32>
    %12 = arith.maximumf %10, %11 : vector<16x128xf32>
    %c0_5 = arith.constant 0 : index
    %c0_6 = arith.constant 0 : index
    %13 = vector.load %arg2[%c0_5, %c0_6] : memref<16x16xf32, #tpu.memory_space<vmem>>, vector<16x16xf32>
    %cst_7 = arith.constant dense<0.000000e+00> : vector<16x128xf32>
    %14 = tpu.matmul %13, %12, %cst_7 {dimension_numbers = #tpu.dot_dimension_numbers<[1], [0], [0], [1], [0, 0, 1, 1], [], []>} : vector<16x16xf32>, vector<16x128xf32>, vector<16x128xf32> -> vector<16x128xf32>
    %c0_8 = arith.constant 0 : index
    %c0_9 = arith.constant 0 : index
    %15 = vector.load %arg6[%c0_8, %c0_9] : memref<16x4xf32, #tpu.memory_space<vmem>>, vector<16x1xf32>
    %16 = vector.broadcast %15 : vector<16x1xf32> to vector<16x128xf32>
    %17 = arith.mulf %14, %16 : vector<16x128xf32>
    %c0_10 = arith.constant 0 : index
    %c1_11 = arith.constant 1 : index
    %18 = vector.load %arg6[%c0_10, %c1_11] : memref<16x4xf32, #tpu.memory_space<vmem>>, vector<16x1xf32>
    %19 = vector.broadcast %18 : vector<16x1xf32> to vector<16x128xf32>
    %20 = arith.addf %17, %19 : vector<16x128xf32>
    %cst_12 = arith.constant 0.000000e+00 : f32
    %21 = vector.broadcast %cst_12 : f32 to vector<16x128xf32>
    %22 = arith.maximumf %20, %21 : vector<16x128xf32>
    %c64_i32 = arith.constant 64 : i32
    %23 = vector.broadcast %c64_i32 : i32 to vector<1x128xi32>
    %24 = arith.cmpi slt, %0, %23 : vector<1x128xi32>
    %cst_13 = arith.constant 0.000000e+00 : f32
    %25 = vector.broadcast %cst_13 : f32 to vector<16x128xf32>
    %26 = vector.shape_cast %24 : vector<1x128xi1> to vector<1x128xi1>
    %27 = vector.broadcast %26 : vector<1x128xi1> to vector<16x128xi1>
    %28 = arith.select %27, %22, %25 : vector<16x128xi1>, vector<16x128xf32>
    %cst_14 = arith.constant 0.000000e+00 : f32
    %29 = vector.broadcast %cst_14 : f32 to vector<16x128xf32>
    %c0_15 = arith.constant 0 : index
    %c0_16 = arith.constant 0 : index
    %30 = vector.load %arg9[%c0_15, %c0_16] : memref<16x384xf32, #tpu.memory_space<vmem>>, vector<16x128xf32>
    tpu.vector_store %arg9[%c0_15, %c0_16], %29 {strides = array<i32>} : memref<16x384xf32, #tpu.memory_space<vmem>>, vector<16x128xf32>,
    %c0_17 = arith.constant 0 : index
    %c256 = arith.constant 256 : index
    %31 = vector.load %arg9[%c0_17, %c256] : memref<16x384xf32, #tpu.memory_space<vmem>>, vector<16x128xf32>
    tpu.vector_store %arg9[%c0_17, %c256], %29 {strides = array<i32>} : memref<16x384xf32, #tpu.memory_space<vmem>>, vector<16x128xf32>,
    %c0_18 = arith.constant 0 : index
    %c128 = arith.constant 128 : index
    %32 = vector.load %arg9[%c0_18, %c128] : memref<16x384xf32, #tpu.memory_space<vmem>>, vector<16x128xf32>
    tpu.vector_store %arg9[%c0_18, %c128], %28 {strides = array<i32>} : memref<16x384xf32, #tpu.memory_space<vmem>>, vector<16x128xf32>,
    %c0_19 = arith.constant 0 : index
    %c119 = arith.constant 119 : index
    %33 = vector.load %arg9[%c0_19, %c119] : memref<16x384xf32, #tpu.memory_space<vmem>>, vector<16x128xf32>
    %c1_i32 = arith.constant 1 : i32
    %34 = vector.broadcast %c1_i32 : i32 to vector<1x128xi32>
    %35 = arith.cmpi sge, %2, %34 : vector<1x128xi32>
    %cst_20 = arith.constant 0.000000e+00 : f32
    %36 = vector.broadcast %cst_20 : f32 to vector<16x128xf32>
    %37 = vector.shape_cast %35 : vector<1x128xi1> to vector<1x128xi1>
    %38 = vector.broadcast %37 : vector<1x128xi1> to vector<16x128xi1>
    %39 = arith.select %38, %33, %36 : vector<16x128xi1>, vector<16x128xf32>
    %c0_21 = arith.constant 0 : index
    %c0_22 = arith.constant 0 : index
    %40 = vector.load %arg10[%c0_21, %c0_22] : memref<144x128xf32, #tpu.memory_space<vmem>>, vector<16x128xf32>
    tpu.vector_store %arg10[%c0_21, %c0_22], %39 {strides = array<i32>} : memref<144x128xf32, #tpu.memory_space<vmem>>, vector<16x128xf32>,
    %c0_23 = arith.constant 0 : index
    %c120 = arith.constant 120 : index
    %41 = vector.load %arg9[%c0_23, %c120] : memref<16x384xf32, #tpu.memory_space<vmem>>, vector<16x128xf32>
    %c16 = arith.constant 16 : index
    %c0_24 = arith.constant 0 : index
    %42 = vector.load %arg10[%c16, %c0_24] : memref<144x128xf32, #tpu.memory_space<vmem>>, vector<16x128xf32>
    tpu.vector_store %arg10[%c16, %c0_24], %41 {strides = array<i32>} : memref<144x128xf32, #tpu.memory_space<vmem>>, vector<16x128xf32>,
    %c0_25 = arith.constant 0 : index
    %c121 = arith.constant 121 : index
    %43 = vector.load %arg9[%c0_25, %c121] : memref<16x384xf32, #tpu.memory_space<vmem>>, vector<16x128xf32>
    %c7_i32_26 = arith.constant 7 : i32
    %44 = vector.broadcast %c7_i32_26 : i32 to vector<1x128xi32>
    %45 = arith.cmpi slt, %2, %44 : vector<1x128xi32>
    %cst_27 = arith.constant 0.000000e+00 : f32
    %46 = vector.broadcast %cst_27 : f32 to vector<16x128xf32>
    %47 = vector.shape_cast %45 : vector<1x128xi1> to vector<1x128xi1>
    %48 = vector.broadcast %47 : vector<1x128xi1> to vector<16x128xi1>
    %49 = arith.select %48, %43, %46 : vector<16x128xi1>, vector<16x128xf32>
    %c32 = arith.constant 32 : index
    %c0_28 = arith.constant 0 : index
    %50 = vector.load %arg10[%c32, %c0_28] : memref<144x128xf32, #tpu.memory_space<vmem>>, vector<16x128xf32>
    tpu.vector_store %arg10[%c32, %c0_28], %49 {strides = array<i32>} : memref<144x128xf32, #tpu.memory_space<vmem>>, vector<16x128xf32>,
    %c0_29 = arith.constant 0 : index
    %c127 = arith.constant 127 : index
    %51 = vector.load %arg9[%c0_29, %c127] : memref<16x384xf32, #tpu.memory_space<vmem>>, vector<16x128xf32>
    %c1_i32_30 = arith.constant 1 : i32
    %52 = vector.broadcast %c1_i32_30 : i32 to vector<1x128xi32>
    %53 = arith.cmpi sge, %2, %52 : vector<1x128xi32>
    %cst_31 = arith.constant 0.000000e+00 : f32
    %54 = vector.broadcast %cst_31 : f32 to vector<16x128xf32>
    %55 = vector.shape_cast %53 : vector<1x128xi1> to vector<1x128xi1>
    %56 = vector.broadcast %55 : vector<1x128xi1> to vector<16x128xi1>
    %57 = arith.select %56, %51, %54 : vector<16x128xi1>, vector<16x128xf32>
    %c48 = arith.constant 48 : index
    %c0_32 = arith.constant 0 : index
    %58 = vector.load %arg10[%c48, %c0_32] : memref<144x128xf32, #tpu.memory_space<vmem>>, vector<16x128xf32>
    tpu.vector_store %arg10[%c48, %c0_32], %57 {strides = array<i32>} : memref<144x128xf32, #tpu.memory_space<vmem>>, vector<16x128xf32>,
    %c64 = arith.constant 64 : index
    %c0_33 = arith.constant 0 : index
    %59 = vector.load %arg10[%c64, %c0_33] : memref<144x128xf32, #tpu.memory_space<vmem>>, vector<16x128xf32>
    tpu.vector_store %arg10[%c64, %c0_33], %28 {strides = array<i32>} : memref<144x128xf32, #tpu.memory_space<vmem>>, vector<16x128xf32>,
    %c0_34 = arith.constant 0 : index
    %c129 = arith.constant 129 : index
    %60 = vector.load %arg9[%c0_34, %c129] : memref<16x384xf32, #tpu.memory_space<vmem>>, vector<16x128xf32>
    %c7_i32_35 = arith.constant 7 : i32
    %61 = vector.broadcast %c7_i32_35 : i32 to vector<1x128xi32>
    %62 = arith.cmpi slt, %2, %61 : vector<1x128xi32>
    %cst_36 = arith.constant 0.000000e+00 : f32
    %63 = vector.broadcast %cst_36 : f32 to vector<16x128xf32>
    %64 = vector.shape_cast %62 : vector<1x128xi1> to vector<1x128xi1>
    %65 = vector.broadcast %64 : vector<1x128xi1> to vector<16x128xi1>
    %66 = arith.select %65, %60, %63 : vector<16x128xi1>, vector<16x128xf32>
    %c80 = arith.constant 80 : index
    %c0_37 = arith.constant 0 : index
    %67 = vector.load %arg10[%c80, %c0_37] : memref<144x128xf32, #tpu.memory_space<vmem>>, vector<16x128xf32>
    tpu.vector_store %arg10[%c80, %c0_37], %66 {strides = array<i32>} : memref<144x128xf32, #tpu.memory_space<vmem>>, vector<16x128xf32>,
    %c0_38 = arith.constant 0 : index
    %c135 = arith.constant 135 : index
    %68 = vector.load %arg9[%c0_38, %c135] : memref<16x384xf32, #tpu.memory_space<vmem>>, vector<16x128xf32>
    %c1_i32_39 = arith.constant 1 : i32
    %69 = vector.broadcast %c1_i32_39 : i32 to vector<1x128xi32>
    %70 = arith.cmpi sge, %2, %69 : vector<1x128xi32>
    %cst_40 = arith.constant 0.000000e+00 : f32
    %71 = vector.broadcast %cst_40 : f32 to vector<16x128xf32>
    %72 = vector.shape_cast %70 : vector<1x128xi1> to vector<1x128xi1>
    %73 = vector.broadcast %72 : vector<1x128xi1> to vector<16x128xi1>
    %74 = arith.select %73, %68, %71 : vector<16x128xi1>, vector<16x128xf32>
    %c96 = arith.constant 96 : index
    %c0_41 = arith.constant 0 : index
    %75 = vector.load %arg10[%c96, %c0_41] : memref<144x128xf32, #tpu.memory_space<vmem>>, vector<16x128xf32>
    tpu.vector_store %arg10[%c96, %c0_41], %74 {strides = array<i32>} : memref<144x128xf32, #tpu.memory_space<vmem>>, vector<16x128xf32>,
    %c0_42 = arith.constant 0 : index
    %c136 = arith.constant 136 : index
    %76 = vector.load %arg9[%c0_42, %c136] : memref<16x384xf32, #tpu.memory_space<vmem>>, vector<16x128xf32>
    %c112 = arith.constant 112 : index
    %c0_43 = arith.constant 0 : index
    %77 = vector.load %arg10[%c112, %c0_43] : memref<144x128xf32, #tpu.memory_space<vmem>>, vector<16x128xf32>
    tpu.vector_store %arg10[%c112, %c0_43], %76 {strides = array<i32>} : memref<144x128xf32, #tpu.memory_space<vmem>>, vector<16x128xf32>,
    %c0_44 = arith.constant 0 : index
    %c137 = arith.constant 137 : index
    %78 = vector.load %arg9[%c0_44, %c137] : memref<16x384xf32, #tpu.memory_space<vmem>>, vector<16x128xf32>
    %c7_i32_45 = arith.constant 7 : i32
    %79 = vector.broadcast %c7_i32_45 : i32 to vector<1x128xi32>
    %80 = arith.cmpi slt, %2, %79 : vector<1x128xi32>
    %cst_46 = arith.constant 0.000000e+00 : f32
    %81 = vector.broadcast %cst_46 : f32 to vector<16x128xf32>
    %82 = vector.shape_cast %80 : vector<1x128xi1> to vector<1x128xi1>
    %83 = vector.broadcast %82 : vector<1x128xi1> to vector<16x128xi1>
    %84 = arith.select %83, %78, %81 : vector<16x128xi1>, vector<16x128xf32>
    %c128_47 = arith.constant 128 : index
    %c0_48 = arith.constant 0 : index
    %85 = vector.load %arg10[%c128_47, %c0_48] : memref<144x128xf32, #tpu.memory_space<vmem>>, vector<16x128xf32>
    tpu.vector_store %arg10[%c128_47, %c0_48], %84 {strides = array<i32>} : memref<144x128xf32, #tpu.memory_space<vmem>>, vector<16x128xf32>,
    %c0_49 = arith.constant 0 : index
    %c0_50 = arith.constant 0 : index
    %86 = vector.load %arg3[%c0_49, %c0_50] : memref<16x144xf32, #tpu.memory_space<vmem>>, vector<16x144xf32>
    %c0_51 = arith.constant 0 : index
    %c0_52 = arith.constant 0 : index
    %87 = vector.load %arg10[%c0_51, %c0_52] : memref<144x128xf32, #tpu.memory_space<vmem>>, vector<144x128xf32>
    %cst_53 = arith.constant dense<0.000000e+00> : vector<16x128xf32>
    %88 = tpu.matmul %86, %87, %cst_53 {dimension_numbers = #tpu.dot_dimension_numbers<[1], [0], [0], [1], [0, 0, 1, 1], [], []>} : vector<16x144xf32>, vector<144x128xf32>, vector<16x128xf32> -> vector<16x128xf32>
    %c0_54 = arith.constant 0 : index
    %c2 = arith.constant 2 : index
    %89 = vector.load %arg6[%c0_54, %c2] : memref<16x4xf32, #tpu.memory_space<vmem>>, vector<16x1xf32>
    %90 = vector.broadcast %89 : vector<16x1xf32> to vector<16x128xf32>
    %91 = arith.mulf %88, %90 : vector<16x128xf32>
    %c0_55 = arith.constant 0 : index
    %c3 = arith.constant 3 : index
    %92 = vector.load %arg6[%c0_55, %c3] : memref<16x4xf32, #tpu.memory_space<vmem>>, vector<16x1xf32>
    %93 = vector.broadcast %92 : vector<16x1xf32> to vector<16x128xf32>
    %94 = arith.addf %91, %93 : vector<16x128xf32>
    %cst_56 = arith.constant 0.000000e+00 : f32
    %95 = vector.broadcast %cst_56 : f32 to vector<16x128xf32>
    %96 = arith.maximumf %94, %95 : vector<16x128xf32>
    %c0_57 = arith.constant 0 : index
    %c0_58 = arith.constant 0 : index
    %97 = vector.load %arg4[%c0_57, %c0_58] : memref<6x16xf32, #tpu.memory_space<vmem>>, vector<6x16xf32>
    %cst_59 = arith.constant dense<0.000000e+00> : vector<6x128xf32>
    %98 = tpu.matmul %97, %96, %cst_59 {dimension_numbers = #tpu.dot_dimension_numbers<[1], [0], [0], [1], [0, 0, 1, 1], [], []>} : vector<6x16xf32>, vector<16x128xf32>, vector<6x128xf32> -> vector<6x128xf32>
    %c0_60 = arith.constant 0 : index
    %c0_61 = arith.constant 0 : index
    %99 = vector.load %arg7[%c0_60, %c0_61] : memref<6x2xf32, #tpu.memory_space<vmem>>, vector<6x1xf32>
    %100 = vector.broadcast %99 : vector<6x1xf32> to vector<6x128xf32>
    %101 = arith.addf %98, %100 : vector<6x128xf32>
    %102 = vector.extract_strided_slice %4 {offsets = [0, 0], sizes = [6, 128], strides = [1, 1]} : vector<16x128xf32> to vector<6x128xf32>
    %103 = arith.addf %101, %102 : vector<6x128xf32>
    %c0_62 = arith.constant 0 : index
    %c0_63 = arith.constant 0 : index
    %c0_64 = arith.constant 0 : index
    %104 = vector.load %arg8[%c0_62, %c0_63, %c0_64] : memref<1x6x128xf32, #tpu.memory_space<vmem>>, vector<1x6x128xf32>
    %105 = vector.shape_cast %104 : vector<1x6x128xf32> to vector<6x128xf32>
    %106 = vector.shape_cast %103 : vector<6x128xf32> to vector<1x6x128xf32>
    tpu.vector_store %arg8[%c0_62, %c0_63, %c0_64], %106 {strides = array<i32>} : memref<1x6x128xf32, #tpu.memory_space<vmem>>, vector<1x6x128xf32>,
    return
  }
  func.func @transform_0(%arg0: i32) -> (i32, i32, i32) {
    %c0_i32 = arith.constant 0 : i32
    %c0_i32_0 = arith.constant 0 : i32
    %c0_i32_1 = arith.constant 0 : i32
    return %arg0, %c0_i32, %c0_i32_0 : i32, i32, i32
  }
  func.func @transform_1(%arg0: i32) -> (i32, i32) {
    %c0_i32 = arith.constant 0 : i32
    %c0_i32_0 = arith.constant 0 : i32
    %c0_i32_1 = arith.constant 0 : i32
    return %c0_i32, %c0_i32_0 : i32, i32
  }
  func.func @transform_2(%arg0: i32) -> (i32, i32) {
    %c0_i32 = arith.constant 0 : i32
    %c0_i32_0 = arith.constant 0 : i32
    %c0_i32_1 = arith.constant 0 : i32
    return %c0_i32, %c0_i32_0 : i32, i32
  }
  func.func @transform_3(%arg0: i32) -> (i32, i32) {
    %c0_i32 = arith.constant 0 : i32
    %c0_i32_0 = arith.constant 0 : i32
    %c0_i32_1 = arith.constant 0 : i32
    return %c0_i32, %c0_i32_0 : i32, i32
  }
  func.func @transform_4(%arg0: i32) -> (i32, i32) {
    %c0_i32 = arith.constant 0 : i32
    %c0_i32_0 = arith.constant 0 : i32
    %c0_i32_1 = arith.constant 0 : i32
    return %c0_i32, %c0_i32_0 : i32, i32
  }
  func.func @transform_5(%arg0: i32) -> (i32, i32) {
    %c0_i32 = arith.constant 0 : i32
    %c0_i32_0 = arith.constant 0 : i32
    %c0_i32_1 = arith.constant 0 : i32
    return %c0_i32, %c0_i32_0 : i32, i32
  }
  func.func @transform_6(%arg0: i32) -> (i32, i32) {
    %c0_i32 = arith.constant 0 : i32
    %c0_i32_0 = arith.constant 0 : i32
    %c0_i32_1 = arith.constant 0 : i32
    return %c0_i32, %c0_i32_0 : i32, i32
  }
  func.func @transform_7(%arg0: i32) -> (i32, i32, i32) {
    %c0_i32 = arith.constant 0 : i32
    %c0_i32_0 = arith.constant 0 : i32
    %c0_i32_1 = arith.constant 0 : i32
    return %arg0, %c0_i32, %c0_i32_0 : i32, i32, i32
  }
}

module attributes {stable_mosaic.version = 11 : i64} {
  func.func @kernel(%arg0: i32, %arg1: memref<1x16x128xf32, #tpu.memory_space<vmem>>, %arg2: memref<16x16xf32, #tpu.memory_space<vmem>>, %arg3: memref<16x144xf32, #tpu.memory_space<vmem>>, %arg4: memref<4x16xf32, #tpu.memory_space<vmem>>, %arg5: memref<4x16xf32, #tpu.memory_space<vmem>>, %arg6: memref<16x2xf32, #tpu.memory_space<vmem>>, %arg7: memref<16x4xf32, #tpu.memory_space<vmem>>, %arg8: memref<4x2xf32, #tpu.memory_space<vmem>>, %arg9: memref<1x4x128xf32, #tpu.memory_space<vmem>>, %arg10: memref<16x384xf32, #tpu.memory_space<vmem>>, %arg11: memref<144x128xf32, #tpu.memory_space<vmem>>) attributes {dimension_semantics = [#tpu.dimension_semantics<parallel>], iteration_bounds = array<i64: 2>, scalar_prefetch = 0 : i64, scratch_operands = 2 : i64, tpu.core_type = #tpu.core_type<tc>, window_params = [{transform_indices = @transform_0, window_bounds = array<i64: 1, 16, 128>}, {pipeline_mode = #tpu.pipeline_mode<synchronous>, transform_indices = @transform_1, window_bounds = array<i64: 16, 16>}, {pipeline_mode = #tpu.pipeline_mode<synchronous>, transform_indices = @transform_2, window_bounds = array<i64: 16, 144>}, {pipeline_mode = #tpu.pipeline_mode<synchronous>, transform_indices = @transform_3, window_bounds = array<i64: 4, 16>}, {pipeline_mode = #tpu.pipeline_mode<synchronous>, transform_indices = @transform_4, window_bounds = array<i64: 4, 16>}, {pipeline_mode = #tpu.pipeline_mode<synchronous>, transform_indices = @transform_5, window_bounds = array<i64: 16, 2>}, {pipeline_mode = #tpu.pipeline_mode<synchronous>, transform_indices = @transform_6, window_bounds = array<i64: 16, 4>}, {pipeline_mode = #tpu.pipeline_mode<synchronous>, transform_indices = @transform_7, window_bounds = array<i64: 4, 2>}, {transform_indices = @transform_8, window_bounds = array<i64: 1, 4, 128>}]} {
    %0 = tpu.iota {dimensions = array<i32: 1>} : vector<1x128xi32>
    %c7_i32 = arith.constant 7 : i32
    %1 = vector.broadcast %c7_i32 : i32 to vector<1x128xi32>
    %2 = arith.andi %0, %1 : vector<1x128xi32>
    %c0 = arith.constant 0 : index
    %c0_0 = arith.constant 0 : index
    %c0_1 = arith.constant 0 : index
    %3 = vector.load %arg1[%c0, %c0_0, %c0_1] : memref<1x16x128xf32, #tpu.memory_space<vmem>>, vector<1x16x128xf32>
    %4 = vector.shape_cast %3 : vector<1x16x128xf32> to vector<16x128xf32>
    %c0_2 = arith.constant 0 : index
    %c0_3 = arith.constant 0 : index
    %5 = vector.load %arg6[%c0_2, %c0_3] : memref<16x2xf32, #tpu.memory_space<vmem>>, vector<16x1xf32>
    %6 = vector.broadcast %5 : vector<16x1xf32> to vector<16x128xf32>
    %7 = arith.mulf %4, %6 : vector<16x128xf32>
    %c0_4 = arith.constant 0 : index
    %c1 = arith.constant 1 : index
    %8 = vector.load %arg6[%c0_4, %c1] : memref<16x2xf32, #tpu.memory_space<vmem>>, vector<16x1xf32>
    %9 = vector.broadcast %8 : vector<16x1xf32> to vector<16x128xf32>
    %10 = arith.addf %7, %9 : vector<16x128xf32>
    %cst = arith.constant 0.000000e+00 : f32
    %11 = vector.broadcast %cst : f32 to vector<16x128xf32>
    %12 = arith.maximumf %10, %11 : vector<16x128xf32>
    %c0_5 = arith.constant 0 : index
    %c0_6 = arith.constant 0 : index
    %13 = vector.load %arg2[%c0_5, %c0_6] : memref<16x16xf32, #tpu.memory_space<vmem>>, vector<16x16xf32>
    %cst_7 = arith.constant dense<0.000000e+00> : vector<16x128xf32>
    %14 = tpu.matmul %13, %12, %cst_7 {dimension_numbers = #tpu.dot_dimension_numbers<[1], [0], [0], [1], [0, 0, 1, 1], [], []>} : vector<16x16xf32>, vector<16x128xf32>, vector<16x128xf32> -> vector<16x128xf32>
    %c0_8 = arith.constant 0 : index
    %c0_9 = arith.constant 0 : index
    %15 = vector.load %arg7[%c0_8, %c0_9] : memref<16x4xf32, #tpu.memory_space<vmem>>, vector<16x1xf32>
    %16 = vector.broadcast %15 : vector<16x1xf32> to vector<16x128xf32>
    %17 = arith.mulf %14, %16 : vector<16x128xf32>
    %c0_10 = arith.constant 0 : index
    %c1_11 = arith.constant 1 : index
    %18 = vector.load %arg7[%c0_10, %c1_11] : memref<16x4xf32, #tpu.memory_space<vmem>>, vector<16x1xf32>
    %19 = vector.broadcast %18 : vector<16x1xf32> to vector<16x128xf32>
    %20 = arith.addf %17, %19 : vector<16x128xf32>
    %cst_12 = arith.constant 0.000000e+00 : f32
    %21 = vector.broadcast %cst_12 : f32 to vector<16x128xf32>
    %22 = arith.maximumf %20, %21 : vector<16x128xf32>
    %c64_i32 = arith.constant 64 : i32
    %23 = vector.broadcast %c64_i32 : i32 to vector<1x128xi32>
    %24 = arith.cmpi slt, %0, %23 : vector<1x128xi32>
    %cst_13 = arith.constant 0.000000e+00 : f32
    %25 = vector.broadcast %cst_13 : f32 to vector<16x128xf32>
    %26 = vector.shape_cast %24 : vector<1x128xi1> to vector<1x128xi1>
    %27 = vector.broadcast %26 : vector<1x128xi1> to vector<16x128xi1>
    %28 = arith.select %27, %22, %25 : vector<16x128xi1>, vector<16x128xf32>
    %cst_14 = arith.constant 0.000000e+00 : f32
    %29 = vector.broadcast %cst_14 : f32 to vector<16x128xf32>
    %c0_15 = arith.constant 0 : index
    %c0_16 = arith.constant 0 : index
    %30 = vector.load %arg10[%c0_15, %c0_16] : memref<16x384xf32, #tpu.memory_space<vmem>>, vector<16x128xf32>
    tpu.vector_store %arg10[%c0_15, %c0_16], %29 {strides = array<i32>} : memref<16x384xf32, #tpu.memory_space<vmem>>, vector<16x128xf32>,
    %c0_17 = arith.constant 0 : index
    %c256 = arith.constant 256 : index
    %31 = vector.load %arg10[%c0_17, %c256] : memref<16x384xf32, #tpu.memory_space<vmem>>, vector<16x128xf32>
    tpu.vector_store %arg10[%c0_17, %c256], %29 {strides = array<i32>} : memref<16x384xf32, #tpu.memory_space<vmem>>, vector<16x128xf32>,
    %c0_18 = arith.constant 0 : index
    %c128 = arith.constant 128 : index
    %32 = vector.load %arg10[%c0_18, %c128] : memref<16x384xf32, #tpu.memory_space<vmem>>, vector<16x128xf32>
    tpu.vector_store %arg10[%c0_18, %c128], %28 {strides = array<i32>} : memref<16x384xf32, #tpu.memory_space<vmem>>, vector<16x128xf32>,
    %c0_19 = arith.constant 0 : index
    %c119 = arith.constant 119 : index
    %33 = vector.load %arg10[%c0_19, %c119] : memref<16x384xf32, #tpu.memory_space<vmem>>, vector<16x128xf32>
    %c1_i32 = arith.constant 1 : i32
    %34 = vector.broadcast %c1_i32 : i32 to vector<1x128xi32>
    %35 = arith.cmpi sge, %2, %34 : vector<1x128xi32>
    %cst_20 = arith.constant 0.000000e+00 : f32
    %36 = vector.broadcast %cst_20 : f32 to vector<16x128xf32>
    %37 = vector.shape_cast %35 : vector<1x128xi1> to vector<1x128xi1>
    %38 = vector.broadcast %37 : vector<1x128xi1> to vector<16x128xi1>
    %39 = arith.select %38, %33, %36 : vector<16x128xi1>, vector<16x128xf32>
    %c0_21 = arith.constant 0 : index
    %c0_22 = arith.constant 0 : index
    %40 = vector.load %arg11[%c0_21, %c0_22] : memref<144x128xf32, #tpu.memory_space<vmem>>, vector<16x128xf32>
    tpu.vector_store %arg11[%c0_21, %c0_22], %39 {strides = array<i32>} : memref<144x128xf32, #tpu.memory_space<vmem>>, vector<16x128xf32>,
    %c0_23 = arith.constant 0 : index
    %c120 = arith.constant 120 : index
    %41 = vector.load %arg10[%c0_23, %c120] : memref<16x384xf32, #tpu.memory_space<vmem>>, vector<16x128xf32>
    %c16 = arith.constant 16 : index
    %c0_24 = arith.constant 0 : index
    %42 = vector.load %arg11[%c16, %c0_24] : memref<144x128xf32, #tpu.memory_space<vmem>>, vector<16x128xf32>
    tpu.vector_store %arg11[%c16, %c0_24], %41 {strides = array<i32>} : memref<144x128xf32, #tpu.memory_space<vmem>>, vector<16x128xf32>,
    %c0_25 = arith.constant 0 : index
    %c121 = arith.constant 121 : index
    %43 = vector.load %arg10[%c0_25, %c121] : memref<16x384xf32, #tpu.memory_space<vmem>>, vector<16x128xf32>
    %c7_i32_26 = arith.constant 7 : i32
    %44 = vector.broadcast %c7_i32_26 : i32 to vector<1x128xi32>
    %45 = arith.cmpi slt, %2, %44 : vector<1x128xi32>
    %cst_27 = arith.constant 0.000000e+00 : f32
    %46 = vector.broadcast %cst_27 : f32 to vector<16x128xf32>
    %47 = vector.shape_cast %45 : vector<1x128xi1> to vector<1x128xi1>
    %48 = vector.broadcast %47 : vector<1x128xi1> to vector<16x128xi1>
    %49 = arith.select %48, %43, %46 : vector<16x128xi1>, vector<16x128xf32>
    %c32 = arith.constant 32 : index
    %c0_28 = arith.constant 0 : index
    %50 = vector.load %arg11[%c32, %c0_28] : memref<144x128xf32, #tpu.memory_space<vmem>>, vector<16x128xf32>
    tpu.vector_store %arg11[%c32, %c0_28], %49 {strides = array<i32>} : memref<144x128xf32, #tpu.memory_space<vmem>>, vector<16x128xf32>,
    %c0_29 = arith.constant 0 : index
    %c127 = arith.constant 127 : index
    %51 = vector.load %arg10[%c0_29, %c127] : memref<16x384xf32, #tpu.memory_space<vmem>>, vector<16x128xf32>
    %c1_i32_30 = arith.constant 1 : i32
    %52 = vector.broadcast %c1_i32_30 : i32 to vector<1x128xi32>
    %53 = arith.cmpi sge, %2, %52 : vector<1x128xi32>
    %cst_31 = arith.constant 0.000000e+00 : f32
    %54 = vector.broadcast %cst_31 : f32 to vector<16x128xf32>
    %55 = vector.shape_cast %53 : vector<1x128xi1> to vector<1x128xi1>
    %56 = vector.broadcast %55 : vector<1x128xi1> to vector<16x128xi1>
    %57 = arith.select %56, %51, %54 : vector<16x128xi1>, vector<16x128xf32>
    %c48 = arith.constant 48 : index
    %c0_32 = arith.constant 0 : index
    %58 = vector.load %arg11[%c48, %c0_32] : memref<144x128xf32, #tpu.memory_space<vmem>>, vector<16x128xf32>
    tpu.vector_store %arg11[%c48, %c0_32], %57 {strides = array<i32>} : memref<144x128xf32, #tpu.memory_space<vmem>>, vector<16x128xf32>,
    %c64 = arith.constant 64 : index
    %c0_33 = arith.constant 0 : index
    %59 = vector.load %arg11[%c64, %c0_33] : memref<144x128xf32, #tpu.memory_space<vmem>>, vector<16x128xf32>
    tpu.vector_store %arg11[%c64, %c0_33], %28 {strides = array<i32>} : memref<144x128xf32, #tpu.memory_space<vmem>>, vector<16x128xf32>,
    %c0_34 = arith.constant 0 : index
    %c129 = arith.constant 129 : index
    %60 = vector.load %arg10[%c0_34, %c129] : memref<16x384xf32, #tpu.memory_space<vmem>>, vector<16x128xf32>
    %c7_i32_35 = arith.constant 7 : i32
    %61 = vector.broadcast %c7_i32_35 : i32 to vector<1x128xi32>
    %62 = arith.cmpi slt, %2, %61 : vector<1x128xi32>
    %cst_36 = arith.constant 0.000000e+00 : f32
    %63 = vector.broadcast %cst_36 : f32 to vector<16x128xf32>
    %64 = vector.shape_cast %62 : vector<1x128xi1> to vector<1x128xi1>
    %65 = vector.broadcast %64 : vector<1x128xi1> to vector<16x128xi1>
    %66 = arith.select %65, %60, %63 : vector<16x128xi1>, vector<16x128xf32>
    %c80 = arith.constant 80 : index
    %c0_37 = arith.constant 0 : index
    %67 = vector.load %arg11[%c80, %c0_37] : memref<144x128xf32, #tpu.memory_space<vmem>>, vector<16x128xf32>
    tpu.vector_store %arg11[%c80, %c0_37], %66 {strides = array<i32>} : memref<144x128xf32, #tpu.memory_space<vmem>>, vector<16x128xf32>,
    %c0_38 = arith.constant 0 : index
    %c135 = arith.constant 135 : index
    %68 = vector.load %arg10[%c0_38, %c135] : memref<16x384xf32, #tpu.memory_space<vmem>>, vector<16x128xf32>
    %c1_i32_39 = arith.constant 1 : i32
    %69 = vector.broadcast %c1_i32_39 : i32 to vector<1x128xi32>
    %70 = arith.cmpi sge, %2, %69 : vector<1x128xi32>
    %cst_40 = arith.constant 0.000000e+00 : f32
    %71 = vector.broadcast %cst_40 : f32 to vector<16x128xf32>
    %72 = vector.shape_cast %70 : vector<1x128xi1> to vector<1x128xi1>
    %73 = vector.broadcast %72 : vector<1x128xi1> to vector<16x128xi1>
    %74 = arith.select %73, %68, %71 : vector<16x128xi1>, vector<16x128xf32>
    %c96 = arith.constant 96 : index
    %c0_41 = arith.constant 0 : index
    %75 = vector.load %arg11[%c96, %c0_41] : memref<144x128xf32, #tpu.memory_space<vmem>>, vector<16x128xf32>
    tpu.vector_store %arg11[%c96, %c0_41], %74 {strides = array<i32>} : memref<144x128xf32, #tpu.memory_space<vmem>>, vector<16x128xf32>,
    %c0_42 = arith.constant 0 : index
    %c136 = arith.constant 136 : index
    %76 = vector.load %arg10[%c0_42, %c136] : memref<16x384xf32, #tpu.memory_space<vmem>>, vector<16x128xf32>
    %c112 = arith.constant 112 : index
    %c0_43 = arith.constant 0 : index
    %77 = vector.load %arg11[%c112, %c0_43] : memref<144x128xf32, #tpu.memory_space<vmem>>, vector<16x128xf32>
    tpu.vector_store %arg11[%c112, %c0_43], %76 {strides = array<i32>} : memref<144x128xf32, #tpu.memory_space<vmem>>, vector<16x128xf32>,
    %c0_44 = arith.constant 0 : index
    %c137 = arith.constant 137 : index
    %78 = vector.load %arg10[%c0_44, %c137] : memref<16x384xf32, #tpu.memory_space<vmem>>, vector<16x128xf32>
    %c7_i32_45 = arith.constant 7 : i32
    %79 = vector.broadcast %c7_i32_45 : i32 to vector<1x128xi32>
    %80 = arith.cmpi slt, %2, %79 : vector<1x128xi32>
    %cst_46 = arith.constant 0.000000e+00 : f32
    %81 = vector.broadcast %cst_46 : f32 to vector<16x128xf32>
    %82 = vector.shape_cast %80 : vector<1x128xi1> to vector<1x128xi1>
    %83 = vector.broadcast %82 : vector<1x128xi1> to vector<16x128xi1>
    %84 = arith.select %83, %78, %81 : vector<16x128xi1>, vector<16x128xf32>
    %c128_47 = arith.constant 128 : index
    %c0_48 = arith.constant 0 : index
    %85 = vector.load %arg11[%c128_47, %c0_48] : memref<144x128xf32, #tpu.memory_space<vmem>>, vector<16x128xf32>
    tpu.vector_store %arg11[%c128_47, %c0_48], %84 {strides = array<i32>} : memref<144x128xf32, #tpu.memory_space<vmem>>, vector<16x128xf32>,
    %c0_49 = arith.constant 0 : index
    %c0_50 = arith.constant 0 : index
    %86 = vector.load %arg3[%c0_49, %c0_50] : memref<16x144xf32, #tpu.memory_space<vmem>>, vector<16x144xf32>
    %c0_51 = arith.constant 0 : index
    %c0_52 = arith.constant 0 : index
    %87 = vector.load %arg11[%c0_51, %c0_52] : memref<144x128xf32, #tpu.memory_space<vmem>>, vector<144x128xf32>
    %cst_53 = arith.constant dense<0.000000e+00> : vector<16x128xf32>
    %88 = tpu.matmul %86, %87, %cst_53 {dimension_numbers = #tpu.dot_dimension_numbers<[1], [0], [0], [1], [0, 0, 1, 1], [], []>} : vector<16x144xf32>, vector<144x128xf32>, vector<16x128xf32> -> vector<16x128xf32>
    %c0_54 = arith.constant 0 : index
    %c2 = arith.constant 2 : index
    %89 = vector.load %arg7[%c0_54, %c2] : memref<16x4xf32, #tpu.memory_space<vmem>>, vector<16x1xf32>
    %90 = vector.broadcast %89 : vector<16x1xf32> to vector<16x128xf32>
    %91 = arith.mulf %88, %90 : vector<16x128xf32>
    %c0_55 = arith.constant 0 : index
    %c3 = arith.constant 3 : index
    %92 = vector.load %arg7[%c0_55, %c3] : memref<16x4xf32, #tpu.memory_space<vmem>>, vector<16x1xf32>
    %93 = vector.broadcast %92 : vector<16x1xf32> to vector<16x128xf32>
    %94 = arith.addf %91, %93 : vector<16x128xf32>
    %cst_56 = arith.constant 0.000000e+00 : f32
    %95 = vector.broadcast %cst_56 : f32 to vector<16x128xf32>
    %96 = arith.maximumf %94, %95 : vector<16x128xf32>
    %c0_57 = arith.constant 0 : index
    %c0_58 = arith.constant 0 : index
    %97 = vector.load %arg4[%c0_57, %c0_58] : memref<4x16xf32, #tpu.memory_space<vmem>>, vector<4x16xf32>
    %cst_59 = arith.constant dense<0.000000e+00> : vector<4x128xf32>
    %98 = tpu.matmul %97, %96, %cst_59 {dimension_numbers = #tpu.dot_dimension_numbers<[1], [0], [0], [1], [0, 0, 1, 1], [], []>} : vector<4x16xf32>, vector<16x128xf32>, vector<4x128xf32> -> vector<4x128xf32>
    %c0_60 = arith.constant 0 : index
    %c0_61 = arith.constant 0 : index
    %99 = vector.load %arg8[%c0_60, %c0_61] : memref<4x2xf32, #tpu.memory_space<vmem>>, vector<4x1xf32>
    %100 = vector.broadcast %99 : vector<4x1xf32> to vector<4x128xf32>
    %101 = arith.addf %98, %100 : vector<4x128xf32>
    %c0_62 = arith.constant 0 : index
    %c0_63 = arith.constant 0 : index
    %102 = vector.load %arg5[%c0_62, %c0_63] : memref<4x16xf32, #tpu.memory_space<vmem>>, vector<4x16xf32>
    %cst_64 = arith.constant dense<0.000000e+00> : vector<4x128xf32>
    %103 = tpu.matmul %102, %4, %cst_64 {dimension_numbers = #tpu.dot_dimension_numbers<[1], [0], [0], [1], [0, 0, 1, 1], [], []>} : vector<4x16xf32>, vector<16x128xf32>, vector<4x128xf32> -> vector<4x128xf32>
    %c0_65 = arith.constant 0 : index
    %c1_66 = arith.constant 1 : index
    %104 = vector.load %arg8[%c0_65, %c1_66] : memref<4x2xf32, #tpu.memory_space<vmem>>, vector<4x1xf32>
    %105 = vector.broadcast %104 : vector<4x1xf32> to vector<4x128xf32>
    %106 = arith.addf %103, %105 : vector<4x128xf32>
    %107 = arith.addf %101, %106 : vector<4x128xf32>
    %c0_67 = arith.constant 0 : index
    %c0_68 = arith.constant 0 : index
    %c0_69 = arith.constant 0 : index
    %108 = vector.load %arg9[%c0_67, %c0_68, %c0_69] : memref<1x4x128xf32, #tpu.memory_space<vmem>>, vector<1x4x128xf32>
    %109 = vector.shape_cast %108 : vector<1x4x128xf32> to vector<4x128xf32>
    %110 = vector.shape_cast %107 : vector<4x128xf32> to vector<1x4x128xf32>
    tpu.vector_store %arg9[%c0_67, %c0_68, %c0_69], %110 {strides = array<i32>} : memref<1x4x128xf32, #tpu.memory_space<vmem>>, vector<1x4x128xf32>,
    return
  }
  func.func @transform_0(%arg0: i32) -> (i32, i32, i32) {
    %c0_i32 = arith.constant 0 : i32
    %c0_i32_0 = arith.constant 0 : i32
    %c0_i32_1 = arith.constant 0 : i32
    return %arg0, %c0_i32, %c0_i32_0 : i32, i32, i32
  }
  func.func @transform_1(%arg0: i32) -> (i32, i32) {
    %c0_i32 = arith.constant 0 : i32
    %c0_i32_0 = arith.constant 0 : i32
    %c0_i32_1 = arith.constant 0 : i32
    return %c0_i32, %c0_i32_0 : i32, i32
  }
  func.func @transform_2(%arg0: i32) -> (i32, i32) {
    %c0_i32 = arith.constant 0 : i32
    %c0_i32_0 = arith.constant 0 : i32
    %c0_i32_1 = arith.constant 0 : i32
    return %c0_i32, %c0_i32_0 : i32, i32
  }
  func.func @transform_3(%arg0: i32) -> (i32, i32) {
    %c0_i32 = arith.constant 0 : i32
    %c0_i32_0 = arith.constant 0 : i32
    %c0_i32_1 = arith.constant 0 : i32
    return %c0_i32, %c0_i32_0 : i32, i32
  }
  func.func @transform_4(%arg0: i32) -> (i32, i32) {
    %c0_i32 = arith.constant 0 : i32
    %c0_i32_0 = arith.constant 0 : i32
    %c0_i32_1 = arith.constant 0 : i32
    return %c0_i32, %c0_i32_0 : i32, i32
  }
  func.func @transform_5(%arg0: i32) -> (i32, i32) {
    %c0_i32 = arith.constant 0 : i32
    %c0_i32_0 = arith.constant 0 : i32
    %c0_i32_1 = arith.constant 0 : i32
    return %c0_i32, %c0_i32_0 : i32, i32
  }
  func.func @transform_6(%arg0: i32) -> (i32, i32) {
    %c0_i32 = arith.constant 0 : i32
    %c0_i32_0 = arith.constant 0 : i32
    %c0_i32_1 = arith.constant 0 : i32
    return %c0_i32, %c0_i32_0 : i32, i32
  }
  func.func @transform_7(%arg0: i32) -> (i32, i32) {
    %c0_i32 = arith.constant 0 : i32
    %c0_i32_0 = arith.constant 0 : i32
    %c0_i32_1 = arith.constant 0 : i32
    return %c0_i32, %c0_i32_0 : i32, i32
  }
  func.func @transform_8(%arg0: i32) -> (i32, i32, i32) {
    %c0_i32 = arith.constant 0 : i32
    %c0_i32_0 = arith.constant 0 : i32
    %c0_i32_1 = arith.constant 0 : i32
    return %arg0, %c0_i32, %c0_i32_0 : i32, i32, i32
  }
}

module attributes {stable_mosaic.version = 11 : i64} {
  func.func @kernel(%arg0: i32, %arg1: memref<1x16x256xf32, #tpu.memory_space<vmem>>, %arg2: memref<16x16xf32, #tpu.memory_space<vmem>>, %arg3: memref<16x144xf32, #tpu.memory_space<vmem>>, %arg4: memref<4x16xf32, #tpu.memory_space<vmem>>, %arg5: memref<16x2xf32, #tpu.memory_space<vmem>>, %arg6: memref<16x4xf32, #tpu.memory_space<vmem>>, %arg7: memref<4x2xf32, #tpu.memory_space<vmem>>, %arg8: memref<1x4x256xf32, #tpu.memory_space<vmem>>, %arg9: memref<16x512xf32, #tpu.memory_space<vmem>>, %arg10: memref<144x256xf32, #tpu.memory_space<vmem>>) attributes {dimension_semantics = [#tpu.dimension_semantics<parallel>], iteration_bounds = array<i64: 2>, scalar_prefetch = 0 : i64, scratch_operands = 2 : i64, tpu.core_type = #tpu.core_type<tc>, window_params = [{transform_indices = @transform_0, window_bounds = array<i64: 1, 16, 256>}, {pipeline_mode = #tpu.pipeline_mode<synchronous>, transform_indices = @transform_1, window_bounds = array<i64: 16, 16>}, {pipeline_mode = #tpu.pipeline_mode<synchronous>, transform_indices = @transform_2, window_bounds = array<i64: 16, 144>}, {pipeline_mode = #tpu.pipeline_mode<synchronous>, transform_indices = @transform_3, window_bounds = array<i64: 4, 16>}, {pipeline_mode = #tpu.pipeline_mode<synchronous>, transform_indices = @transform_4, window_bounds = array<i64: 16, 2>}, {pipeline_mode = #tpu.pipeline_mode<synchronous>, transform_indices = @transform_5, window_bounds = array<i64: 16, 4>}, {pipeline_mode = #tpu.pipeline_mode<synchronous>, transform_indices = @transform_6, window_bounds = array<i64: 4, 2>}, {transform_indices = @transform_7, window_bounds = array<i64: 1, 4, 256>}]} {
    %0 = tpu.iota {dimensions = array<i32: 1>} : vector<1x256xi32>
    %c15_i32 = arith.constant 15 : i32
    %1 = vector.broadcast %c15_i32 : i32 to vector<1x256xi32>
    %2 = arith.andi %0, %1 : vector<1x256xi32>
    %c0 = arith.constant 0 : index
    %c0_0 = arith.constant 0 : index
    %c0_1 = arith.constant 0 : index
    %3 = vector.load %arg1[%c0, %c0_0, %c0_1] : memref<1x16x256xf32, #tpu.memory_space<vmem>>, vector<1x16x256xf32>
    %4 = vector.shape_cast %3 : vector<1x16x256xf32> to vector<16x256xf32>
    %c0_2 = arith.constant 0 : index
    %c0_3 = arith.constant 0 : index
    %5 = vector.load %arg5[%c0_2, %c0_3] : memref<16x2xf32, #tpu.memory_space<vmem>>, vector<16x1xf32>
    %6 = vector.broadcast %5 : vector<16x1xf32> to vector<16x256xf32>
    %7 = arith.mulf %4, %6 : vector<16x256xf32>
    %c0_4 = arith.constant 0 : index
    %c1 = arith.constant 1 : index
    %8 = vector.load %arg5[%c0_4, %c1] : memref<16x2xf32, #tpu.memory_space<vmem>>, vector<16x1xf32>
    %9 = vector.broadcast %8 : vector<16x1xf32> to vector<16x256xf32>
    %10 = arith.addf %7, %9 : vector<16x256xf32>
    %cst = arith.constant 0.000000e+00 : f32
    %11 = vector.broadcast %cst : f32 to vector<16x256xf32>
    %12 = arith.maximumf %10, %11 : vector<16x256xf32>
    %c0_5 = arith.constant 0 : index
    %c0_6 = arith.constant 0 : index
    %13 = vector.load %arg2[%c0_5, %c0_6] : memref<16x16xf32, #tpu.memory_space<vmem>>, vector<16x16xf32>
    %cst_7 = arith.constant dense<0.000000e+00> : vector<16x256xf32>
    %14 = tpu.matmul %13, %12, %cst_7 {dimension_numbers = #tpu.dot_dimension_numbers<[1], [0], [0], [1], [0, 0, 1, 1], [], []>} : vector<16x16xf32>, vector<16x256xf32>, vector<16x256xf32> -> vector<16x256xf32>
    %c0_8 = arith.constant 0 : index
    %c0_9 = arith.constant 0 : index
    %15 = vector.load %arg6[%c0_8, %c0_9] : memref<16x4xf32, #tpu.memory_space<vmem>>, vector<16x1xf32>
    %16 = vector.broadcast %15 : vector<16x1xf32> to vector<16x256xf32>
    %17 = arith.mulf %14, %16 : vector<16x256xf32>
    %c0_10 = arith.constant 0 : index
    %c1_11 = arith.constant 1 : index
    %18 = vector.load %arg6[%c0_10, %c1_11] : memref<16x4xf32, #tpu.memory_space<vmem>>, vector<16x1xf32>
    %19 = vector.broadcast %18 : vector<16x1xf32> to vector<16x256xf32>
    %20 = arith.addf %17, %19 : vector<16x256xf32>
    %cst_12 = arith.constant 0.000000e+00 : f32
    %21 = vector.broadcast %cst_12 : f32 to vector<16x256xf32>
    %22 = arith.maximumf %20, %21 : vector<16x256xf32>
    %cst_13 = arith.constant 0.000000e+00 : f32
    %23 = vector.broadcast %cst_13 : f32 to vector<16x128xf32>
    %c0_14 = arith.constant 0 : index
    %c0_15 = arith.constant 0 : index
    %24 = vector.load %arg9[%c0_14, %c0_15] : memref<16x512xf32, #tpu.memory_space<vmem>>, vector<16x128xf32>
    tpu.vector_store %arg9[%c0_14, %c0_15], %23 {strides = array<i32>} : memref<16x512xf32, #tpu.memory_space<vmem>>, vector<16x128xf32>,
    %c0_16 = arith.constant 0 : index
    %c384 = arith.constant 384 : index
    %25 = vector.load %arg9[%c0_16, %c384] : memref<16x512xf32, #tpu.memory_space<vmem>>, vector<16x128xf32>
    tpu.vector_store %arg9[%c0_16, %c384], %23 {strides = array<i32>} : memref<16x512xf32, #tpu.memory_space<vmem>>, vector<16x128xf32>,
    %c0_17 = arith.constant 0 : index
    %c128 = arith.constant 128 : index
    %26 = vector.load %arg9[%c0_17, %c128] : memref<16x512xf32, #tpu.memory_space<vmem>>, vector<16x256xf32>
    tpu.vector_store %arg9[%c0_17, %c128], %22 {strides = array<i32>} : memref<16x512xf32, #tpu.memory_space<vmem>>, vector<16x256xf32>,
    %c0_18 = arith.constant 0 : index
    %c111 = arith.constant 111 : index
    %27 = vector.load %arg9[%c0_18, %c111] : memref<16x512xf32, #tpu.memory_space<vmem>>, vector<16x256xf32>
    %c1_i32 = arith.constant 1 : i32
    %28 = vector.broadcast %c1_i32 : i32 to vector<1x256xi32>
    %29 = arith.cmpi sge, %2, %28 : vector<1x256xi32>
    %cst_19 = arith.constant 0.000000e+00 : f32
    %30 = vector.broadcast %cst_19 : f32 to vector<16x256xf32>
    %31 = vector.shape_cast %29 : vector<1x256xi1> to vector<1x256xi1>
    %32 = vector.broadcast %31 : vector<1x256xi1> to vector<16x256xi1>
    %33 = arith.select %32, %27, %30 : vector<16x256xi1>, vector<16x256xf32>
    %c0_20 = arith.constant 0 : index
    %c0_21 = arith.constant 0 : index
    %34 = vector.load %arg10[%c0_20, %c0_21] : memref<144x256xf32, #tpu.memory_space<vmem>>, vector<16x256xf32>
    tpu.vector_store %arg10[%c0_20, %c0_21], %33 {strides = array<i32>} : memref<144x256xf32, #tpu.memory_space<vmem>>, vector<16x256xf32>,
    %c0_22 = arith.constant 0 : index
    %c112 = arith.constant 112 : index
    %35 = vector.load %arg9[%c0_22, %c112] : memref<16x512xf32, #tpu.memory_space<vmem>>, vector<16x256xf32>
    %c16 = arith.constant 16 : index
    %c0_23 = arith.constant 0 : index
    %36 = vector.load %arg10[%c16, %c0_23] : memref<144x256xf32, #tpu.memory_space<vmem>>, vector<16x256xf32>
    tpu.vector_store %arg10[%c16, %c0_23], %35 {strides = array<i32>} : memref<144x256xf32, #tpu.memory_space<vmem>>, vector<16x256xf32>,
    %c0_24 = arith.constant 0 : index
    %c113 = arith.constant 113 : index
    %37 = vector.load %arg9[%c0_24, %c113] : memref<16x512xf32, #tpu.memory_space<vmem>>, vector<16x256xf32>
    %c15_i32_25 = arith.constant 15 : i32
    %38 = vector.broadcast %c15_i32_25 : i32 to vector<1x256xi32>
    %39 = arith.cmpi slt, %2, %38 : vector<1x256xi32>
    %cst_26 = arith.constant 0.000000e+00 : f32
    %40 = vector.broadcast %cst_26 : f32 to vector<16x256xf32>
    %41 = vector.shape_cast %39 : vector<1x256xi1> to vector<1x256xi1>
    %42 = vector.broadcast %41 : vector<1x256xi1> to vector<16x256xi1>
    %43 = arith.select %42, %37, %40 : vector<16x256xi1>, vector<16x256xf32>
    %c32 = arith.constant 32 : index
    %c0_27 = arith.constant 0 : index
    %44 = vector.load %arg10[%c32, %c0_27] : memref<144x256xf32, #tpu.memory_space<vmem>>, vector<16x256xf32>
    tpu.vector_store %arg10[%c32, %c0_27], %43 {strides = array<i32>} : memref<144x256xf32, #tpu.memory_space<vmem>>, vector<16x256xf32>,
    %c0_28 = arith.constant 0 : index
    %c127 = arith.constant 127 : index
    %45 = vector.load %arg9[%c0_28, %c127] : memref<16x512xf32, #tpu.memory_space<vmem>>, vector<16x256xf32>
    %c1_i32_29 = arith.constant 1 : i32
    %46 = vector.broadcast %c1_i32_29 : i32 to vector<1x256xi32>
    %47 = arith.cmpi sge, %2, %46 : vector<1x256xi32>
    %cst_30 = arith.constant 0.000000e+00 : f32
    %48 = vector.broadcast %cst_30 : f32 to vector<16x256xf32>
    %49 = vector.shape_cast %47 : vector<1x256xi1> to vector<1x256xi1>
    %50 = vector.broadcast %49 : vector<1x256xi1> to vector<16x256xi1>
    %51 = arith.select %50, %45, %48 : vector<16x256xi1>, vector<16x256xf32>
    %c48 = arith.constant 48 : index
    %c0_31 = arith.constant 0 : index
    %52 = vector.load %arg10[%c48, %c0_31] : memref<144x256xf32, #tpu.memory_space<vmem>>, vector<16x256xf32>
    tpu.vector_store %arg10[%c48, %c0_31], %51 {strides = array<i32>} : memref<144x256xf32, #tpu.memory_space<vmem>>, vector<16x256xf32>,
    %c64 = arith.constant 64 : index
    %c0_32 = arith.constant 0 : index
    %53 = vector.load %arg10[%c64, %c0_32] : memref<144x256xf32, #tpu.memory_space<vmem>>, vector<16x256xf32>
    tpu.vector_store %arg10[%c64, %c0_32], %22 {strides = array<i32>} : memref<144x256xf32, #tpu.memory_space<vmem>>, vector<16x256xf32>,
    %c0_33 = arith.constant 0 : index
    %c129 = arith.constant 129 : index
    %54 = vector.load %arg9[%c0_33, %c129] : memref<16x512xf32, #tpu.memory_space<vmem>>, vector<16x256xf32>
    %c15_i32_34 = arith.constant 15 : i32
    %55 = vector.broadcast %c15_i32_34 : i32 to vector<1x256xi32>
    %56 = arith.cmpi slt, %2, %55 : vector<1x256xi32>
    %cst_35 = arith.constant 0.000000e+00 : f32
    %57 = vector.broadcast %cst_35 : f32 to vector<16x256xf32>
    %58 = vector.shape_cast %56 : vector<1x256xi1> to vector<1x256xi1>
    %59 = vector.broadcast %58 : vector<1x256xi1> to vector<16x256xi1>
    %60 = arith.select %59, %54, %57 : vector<16x256xi1>, vector<16x256xf32>
    %c80 = arith.constant 80 : index
    %c0_36 = arith.constant 0 : index
    %61 = vector.load %arg10[%c80, %c0_36] : memref<144x256xf32, #tpu.memory_space<vmem>>, vector<16x256xf32>
    tpu.vector_store %arg10[%c80, %c0_36], %60 {strides = array<i32>} : memref<144x256xf32, #tpu.memory_space<vmem>>, vector<16x256xf32>,
    %c0_37 = arith.constant 0 : index
    %c143 = arith.constant 143 : index
    %62 = vector.load %arg9[%c0_37, %c143] : memref<16x512xf32, #tpu.memory_space<vmem>>, vector<16x256xf32>
    %c1_i32_38 = arith.constant 1 : i32
    %63 = vector.broadcast %c1_i32_38 : i32 to vector<1x256xi32>
    %64 = arith.cmpi sge, %2, %63 : vector<1x256xi32>
    %cst_39 = arith.constant 0.000000e+00 : f32
    %65 = vector.broadcast %cst_39 : f32 to vector<16x256xf32>
    %66 = vector.shape_cast %64 : vector<1x256xi1> to vector<1x256xi1>
    %67 = vector.broadcast %66 : vector<1x256xi1> to vector<16x256xi1>
    %68 = arith.select %67, %62, %65 : vector<16x256xi1>, vector<16x256xf32>
    %c96 = arith.constant 96 : index
    %c0_40 = arith.constant 0 : index
    %69 = vector.load %arg10[%c96, %c0_40] : memref<144x256xf32, #tpu.memory_space<vmem>>, vector<16x256xf32>
    tpu.vector_store %arg10[%c96, %c0_40], %68 {strides = array<i32>} : memref<144x256xf32, #tpu.memory_space<vmem>>, vector<16x256xf32>,
    %c0_41 = arith.constant 0 : index
    %c144 = arith.constant 144 : index
    %70 = vector.load %arg9[%c0_41, %c144] : memref<16x512xf32, #tpu.memory_space<vmem>>, vector<16x256xf32>
    %c112_42 = arith.constant 112 : index
    %c0_43 = arith.constant 0 : index
    %71 = vector.load %arg10[%c112_42, %c0_43] : memref<144x256xf32, #tpu.memory_space<vmem>>, vector<16x256xf32>
    tpu.vector_store %arg10[%c112_42, %c0_43], %70 {strides = array<i32>} : memref<144x256xf32, #tpu.memory_space<vmem>>, vector<16x256xf32>,
    %c0_44 = arith.constant 0 : index
    %c145 = arith.constant 145 : index
    %72 = vector.load %arg9[%c0_44, %c145] : memref<16x512xf32, #tpu.memory_space<vmem>>, vector<16x256xf32>
    %c15_i32_45 = arith.constant 15 : i32
    %73 = vector.broadcast %c15_i32_45 : i32 to vector<1x256xi32>
    %74 = arith.cmpi slt, %2, %73 : vector<1x256xi32>
    %cst_46 = arith.constant 0.000000e+00 : f32
    %75 = vector.broadcast %cst_46 : f32 to vector<16x256xf32>
    %76 = vector.shape_cast %74 : vector<1x256xi1> to vector<1x256xi1>
    %77 = vector.broadcast %76 : vector<1x256xi1> to vector<16x256xi1>
    %78 = arith.select %77, %72, %75 : vector<16x256xi1>, vector<16x256xf32>
    %c128_47 = arith.constant 128 : index
    %c0_48 = arith.constant 0 : index
    %79 = vector.load %arg10[%c128_47, %c0_48] : memref<144x256xf32, #tpu.memory_space<vmem>>, vector<16x256xf32>
    tpu.vector_store %arg10[%c128_47, %c0_48], %78 {strides = array<i32>} : memref<144x256xf32, #tpu.memory_space<vmem>>, vector<16x256xf32>,
    %c0_49 = arith.constant 0 : index
    %c0_50 = arith.constant 0 : index
    %80 = vector.load %arg3[%c0_49, %c0_50] : memref<16x144xf32, #tpu.memory_space<vmem>>, vector<16x144xf32>
    %c0_51 = arith.constant 0 : index
    %c0_52 = arith.constant 0 : index
    %81 = vector.load %arg10[%c0_51, %c0_52] : memref<144x256xf32, #tpu.memory_space<vmem>>, vector<144x256xf32>
    %cst_53 = arith.constant dense<0.000000e+00> : vector<16x256xf32>
    %82 = tpu.matmul %80, %81, %cst_53 {dimension_numbers = #tpu.dot_dimension_numbers<[1], [0], [0], [1], [0, 0, 1, 1], [], []>} : vector<16x144xf32>, vector<144x256xf32>, vector<16x256xf32> -> vector<16x256xf32>
    %c0_54 = arith.constant 0 : index
    %c2 = arith.constant 2 : index
    %83 = vector.load %arg6[%c0_54, %c2] : memref<16x4xf32, #tpu.memory_space<vmem>>, vector<16x1xf32>
    %84 = vector.broadcast %83 : vector<16x1xf32> to vector<16x256xf32>
    %85 = arith.mulf %82, %84 : vector<16x256xf32>
    %c0_55 = arith.constant 0 : index
    %c3 = arith.constant 3 : index
    %86 = vector.load %arg6[%c0_55, %c3] : memref<16x4xf32, #tpu.memory_space<vmem>>, vector<16x1xf32>
    %87 = vector.broadcast %86 : vector<16x1xf32> to vector<16x256xf32>
    %88 = arith.addf %85, %87 : vector<16x256xf32>
    %cst_56 = arith.constant 0.000000e+00 : f32
    %89 = vector.broadcast %cst_56 : f32 to vector<16x256xf32>
    %90 = arith.maximumf %88, %89 : vector<16x256xf32>
    %c0_57 = arith.constant 0 : index
    %c0_58 = arith.constant 0 : index
    %91 = vector.load %arg4[%c0_57, %c0_58] : memref<4x16xf32, #tpu.memory_space<vmem>>, vector<4x16xf32>
    %cst_59 = arith.constant dense<0.000000e+00> : vector<4x256xf32>
    %92 = tpu.matmul %91, %90, %cst_59 {dimension_numbers = #tpu.dot_dimension_numbers<[1], [0], [0], [1], [0, 0, 1, 1], [], []>} : vector<4x16xf32>, vector<16x256xf32>, vector<4x256xf32> -> vector<4x256xf32>
    %c0_60 = arith.constant 0 : index
    %c0_61 = arith.constant 0 : index
    %93 = vector.load %arg7[%c0_60, %c0_61] : memref<4x2xf32, #tpu.memory_space<vmem>>, vector<4x1xf32>
    %94 = vector.broadcast %93 : vector<4x1xf32> to vector<4x256xf32>
    %95 = arith.addf %92, %94 : vector<4x256xf32>
    %96 = vector.extract_strided_slice %4 {offsets = [0, 0], sizes = [4, 256], strides = [1, 1]} : vector<16x256xf32> to vector<4x256xf32>
    %97 = arith.addf %95, %96 : vector<4x256xf32>
    %c0_62 = arith.constant 0 : index
    %c0_63 = arith.constant 0 : index
    %c0_64 = arith.constant 0 : index
    %98 = vector.load %arg8[%c0_62, %c0_63, %c0_64] : memref<1x4x256xf32, #tpu.memory_space<vmem>>, vector<1x4x256xf32>
    %99 = vector.shape_cast %98 : vector<1x4x256xf32> to vector<4x256xf32>
    %100 = vector.shape_cast %97 : vector<4x256xf32> to vector<1x4x256xf32>
    tpu.vector_store %arg8[%c0_62, %c0_63, %c0_64], %100 {strides = array<i32>} : memref<1x4x256xf32, #tpu.memory_space<vmem>>, vector<1x4x256xf32>,
    return
  }
  func.func @transform_0(%arg0: i32) -> (i32, i32, i32) {
    %c0_i32 = arith.constant 0 : i32
    %c0_i32_0 = arith.constant 0 : i32
    %c0_i32_1 = arith.constant 0 : i32
    return %arg0, %c0_i32, %c0_i32_0 : i32, i32, i32
  }
  func.func @transform_1(%arg0: i32) -> (i32, i32) {
    %c0_i32 = arith.constant 0 : i32
    %c0_i32_0 = arith.constant 0 : i32
    %c0_i32_1 = arith.constant 0 : i32
    return %c0_i32, %c0_i32_0 : i32, i32
  }
  func.func @transform_2(%arg0: i32) -> (i32, i32) {
    %c0_i32 = arith.constant 0 : i32
    %c0_i32_0 = arith.constant 0 : i32
    %c0_i32_1 = arith.constant 0 : i32
    return %c0_i32, %c0_i32_0 : i32, i32
  }
  func.func @transform_3(%arg0: i32) -> (i32, i32) {
    %c0_i32 = arith.constant 0 : i32
    %c0_i32_0 = arith.constant 0 : i32
    %c0_i32_1 = arith.constant 0 : i32
    return %c0_i32, %c0_i32_0 : i32, i32
  }
  func.func @transform_4(%arg0: i32) -> (i32, i32) {
    %c0_i32 = arith.constant 0 : i32
    %c0_i32_0 = arith.constant 0 : i32
    %c0_i32_1 = arith.constant 0 : i32
    return %c0_i32, %c0_i32_0 : i32, i32
  }
  func.func @transform_5(%arg0: i32) -> (i32, i32) {
    %c0_i32 = arith.constant 0 : i32
    %c0_i32_0 = arith.constant 0 : i32
    %c0_i32_1 = arith.constant 0 : i32
    return %c0_i32, %c0_i32_0 : i32, i32
  }
  func.func @transform_6(%arg0: i32) -> (i32, i32) {
    %c0_i32 = arith.constant 0 : i32
    %c0_i32_0 = arith.constant 0 : i32
    %c0_i32_1 = arith.constant 0 : i32
    return %c0_i32, %c0_i32_0 : i32, i32
  }
  func.func @transform_7(%arg0: i32) -> (i32, i32, i32) {
    %c0_i32 = arith.constant 0 : i32
    %c0_i32_0 = arith.constant 0 : i32
    %c0_i32_1 = arith.constant 0 : i32
    return %arg0, %c0_i32, %c0_i32_0 : i32, i32, i32
  }
}

</mosaic_0001>

<bundles_post_ra>
// kernel: _lambda_.8
= control target key start
LH: loop header
LB: loop body
LE: loop exit
PB: predicated region body
PF: predicated region fallthrough
CT: control target
= control target key end

     0   :  { %s1200_s27 = smov 0   ;;  %s1397_s0 = inlined_call_operand.vmem [shape: f32[2,16,128], index: 0, kind: input, shape index: {}]   ;;  %s1398_s1 = inlined_call_operand.vmem [shape: f32[16,16], index: 1, kind: input, shape index: {}]   ;;  %s1399_s2 = inlined_call_operand.vmem [shape: f32[16,144], index: 2, kind: input, shape index: {}]   ;;  %s1400_s3 = inlined_call_operand.vmem [shape: f32[6,16], index: 3, kind: input, shape index: {}]   ;;  %s1401_s4 = inlined_call_operand.vmem [shape: f32[6,16], index: 4, kind: input, shape index: {}]   ;;  %s1402_s5 = inlined_call_operand.vmem [shape: f32[16,2], index: 5, kind: input, shape index: {}]   ;;  %s1403_s6 = inlined_call_operand.vmem [shape: f32[16,4], index: 6, kind: input, shape index: {}]   ;;  %s1404_s7 = inlined_call_operand.vmem [shape: f32[6,2], index: 7, kind: input, shape index: {}]   ;;  %s1405_s8 = inlined_call_operand.vmem [shape: f32[2,6,128], index: 8, kind: output, shape index: {}]  }
   0x1 LB: > { %s1002_s28 = sadd.s32 4294967295, %s1139_s27   ;;  %p1006_p0 = scmp.ge.s32.totalorder %s1139_s27, 1  ;;  %s1139_s27 = sphi %s1200_s27, %s18_s27  }
   0x2   : > { %p262_p1 = scmp.lt.s32.totalorder %s1139_s27, 3 }
   0x4   : > { %p263_p2 = pnand %p1006_p0, %p262_p1 }
   0x5   : > { %s1144_s17 = smov (!%p263_p2), 120   ;;  %s1145_s18 = smov (!%p263_p2), 127  }
   0x6   : > { %266 = sbr.rel (%p263_p2) target bundleno = 918 (0x396), region = 52  ;;  %p295_p3 = scmp.lt.s32.totalorder (!%p263_p2), %s1002_s28, 1 }
   0x7   : > { %s1146_s25 = smov (!%p263_p2), 121   ;;  %s1147_s26 = smov (!%p263_p2), 1  }
   0x8   : > { %s1148_s29 = smov (!%p263_p2), 7   ;;  %s1149_s30 = smov (!%p263_p2), 8  }
   0x9   : > { %s1150_s9 = smov (!%p263_p2), 9   ;;  %s1151_s10 = smov (!%p263_p2), 119  }
   0xb   : > { %v310_v0 = vld [vmem:[%s1402_s5 + $0x8] sm:$0xff]  ;;  %v1141_v1 = vmov 1   ;;  %v1142_v2 = vmov 0   ;;  %v309_v3 = vld [vmem:[%s1402_s5] sm:$0xff]  ;;  %vm337_vm0 = vcmask 130048   ;;  %v1143_v7 = vmov 0.0  }
   0xc   : > { %1087 = vset.pattern.permute.xlu1 %v1141_v1  ;;  %1086 = vset.pattern.permute.xlu0 %v1142_v2  ;;  %v1219_v4 = vld [vmem:[%s1403_s6 + $0x8] sm:$0xff]  ;;  %v335_v5 = vld [vmem:[%s1398_s1] sm:$0xff]  ;;  %s1411_s28 = smov (!%p295_p3, %s1002_s28), 1  ;;  %v304_v23 = vlaneseq  ;;  %v1152_v38 = vmov 2   ;;  %v1153_v39 = vmov 3   ;;  %vm628_vm2 = vcmask 982016  }
   0xd   : > { %328 = vperm.xlu1 %1087, %v310_v0   ;;  %318 = vperm.xlu0 %1086, %v310_v0   ;;  %v1230_v6 = vld [vmem:[%s1403_s6] sm:$0xff]  ;;  %s1018_s19 = sshll.u32 %s1411_s28, 4  ;;  %v336_v20 = vld [vmem:[%s1398_s1 + $0x8] sm:$0xff]  ;;  %vm603_vm3 = vcmask 990208   ;;  %vm578_vm5 = vcmask 1039360   ;;  %vm551_vm7 = vcmask 7168  }
   0xe   : > { %1047 = vmatprep.mubr.msk.f32.mxu0 %vm337_vm0, %v335_v5  ;;  %688 = vmatprep.subr.mxu1 %v1143_v7  ;;  %s299_s22 = scalar_lea.vmem %s1397_s0, %s1018_s19  ;;  %v1265_v26 = vand.u32 127, %v304_v23  ;;  %v661_v37 = vld [vmem:[%s1399_s2 + $0x8] sm:$0xff]  ;;  %vm526_vm8 = vcmask 56320   ;;  %vm500_vm9 = vcmask 64512   ;;  %vm475_vm10 = vcmask 72704  }
   0xf   : > { %v1252_v8 = vld [vmem:[%s299_s22 + $0x8] sm:$0xff]  ;;  %v1255_v12 = vld [vmem:[%s299_s22] sm:$0xff]  ;;  %1012 = vmatprep.mubr.msk.f32.mxu1 %vm337_vm0, %v661_v37  ;;  %vm651_vm11 = vcmask 973824   ;;  %vm1154_vm12 = vmmov 0  }
  0x10   : > { %vm445_vm1 = vcmp.lt.s32.totalorder %v1265_v26, 64  ;;  %v306_v52 = vand.u32 7, %v1265_v26  ;;  %v660_v37 = vld [vmem:[%s1399_s2] sm:$0xff] }
  0x11   : > { %324 = vperm.xlu1 %1087, %v309_v3   ;;  %313 = vperm.xlu0 %1086, %v309_v3  }
  0x12   : > { %vm1303_vm4 = vcmp.ge.s32.totalorder %v306_v52, 1  ;;  %vm1311_vm6 = vcmp.lt.s32.totalorder %v306_v52, 7 }
  0x15   : > { %428 = vperm.xlu0 %1086, %v1219_v4   ;;  %1088 = vset.pattern.permute.xlu1 %v1142_v2 }
  0x16   : > { %423 = vperm.xlu1 %1088, %v1230_v6  }
  0x19   : > { %1089 = vset.pattern.permute.xlu0 %v1141_v1 }
  0x1a   : > { %438 = vperm.xlu0 %1089, %v1219_v4   ;;  %1090 = vset.pattern.permute.xlu1 %v1141_v1 }
  0x1b   : > { %434 = vperm.xlu1 %1090, %v1230_v6  }
  0x1e   : > { %1092 = vrot.lane.b32.xlu0 %v1143_v7, %s1144_s17 }
  0x1f   : > { %1097 = vrot.lane.b32.xlu1 %v1143_v7, %s1146_s25  ;;  %1126 = vset.pattern.permute.xlu0 %v1152_v38 }
  0x20   : > { %1127 = vset.pattern.permute.xlu1 %v1152_v38 }
  0x22   : > { %1102 = vrot.lane.b32.xlu0 %v1143_v7, %s1145_s18 }
  0x26   : > { %1107 = vrot.lane.b32.xlu0 %v1143_v7, %s1147_s26 }
  0x88   : > { %v329_v9 = vpop.permute.xlu1 %328  ;;  %v319_v10 = vpop.permute.xlu0 %318 }
  0x89   : > { %v322_v11 = vmul.f32 %v319_v10, %v1252_v8 }
  0x8b   : > { %v332_v13 = vadd.f32 %v329_v9, %v322_v11 }
  0x8c   : > { %v314_v14 = vpop.permute.xlu0 %313  ;;  %v325_v17 = vpop.permute.xlu1 %324 }
  0x8d   : > { %v321_v15 = vmul.f32 %v314_v14, %v1255_v12  ;;  %v334_v16 = vmax.f32 %v332_v13, 0.0 }
  0x8f   : > { %v331_v18 = vadd.f32 %v325_v17, %v321_v15  ;;  %1043 = vmatprep.subr.mxu0 %v334_v16 }
  0x90   : > { %1044 = vmatpush3.msra.mxu0 %v334_v16  ;;  %v429_v21 = vpop.permute.xlu0 %428 }
  0x91   : > { %v333_v19 = vmax.f32 %v331_v18, 0.0  ;;  %v424_v22 = vpop.permute.xlu1 %423 }
  0x93   : > { %1045 = vmatprep.subr.mxu0 %v333_v19 }
  0x94   : > { %1046 = vmatpush3.msra.mxu0 %v333_v19 }
  0x95   : > { %1048 = vmatmul.mubr.msk.f32.vlgmr.msra.gmra.mxu0 %vm337_vm0, %v336_v20  ;;  %1050 = vmatprep.subr.mxu0 %v1143_v7  ;;  %v439_v25 = vpop.permute.xlu0 %438 }
  0x96   : > { %v435_v29 = vpop.permute.xlu1 %434  ;;  %1054 = vmatprep.mubr.msk.f32.mxu0 %vm1154_vm12, %v1143_v7 }
  0x99   : > { %v1093_v40 = vpop.permute.xlu0 %1092 }
  0x9a   : > { %v1098_v42 = vpop.permute.xlu1 %1097  ;;  %v1094_v44 = vunpack.i.l.bf16 %v1093_v40  ;;  %v1095_v53 = vunpack.i.h.bf16 %v1093_v40  ;;  %v662_v40 = vld [vmem:[%s1399_s2 + $0x10] sm:$0xff] }
  0x9b   : > { %v1099_v55 = vunpack.i.l.bf16 %v1098_v42  ;;  %v1100_v60 = vunpack.i.h.bf16 %v1098_v42 }
  0x9d   : > { %v1103_v41 = vpop.permute.xlu0 %1102 }
  0x9e   : > { %v1104_v59 = vunpack.i.l.bf16 %v1103_v41 }
  0xa1   : > { %v1108_v43 = vpop.permute.xlu0 %1107 }
  0xa2   : > { %v1109_v9 = vunpack.i.l.bf16 %v1108_v43  ;;  %v1110_v13 = vunpack.i.h.bf16 %v1108_v43 }
 0x155   : > { %v1049_v24 = vpop.f32.mrf.mxu0 }
 0x156   : > { %v432_v27 = vmul.f32 %v1049_v24, %v429_v21 }
 0x157   : > { %v410_v28 = vpop.f32.mrf.mxu0 }
 0x158   : > { %v1267_v30 = vadd.f32 %v439_v25, %v432_v27  ;;  %v431_v31 = vmul.f32 %v424_v22, %v410_v28 }
 0x15a   : > { %v444_v32 = vmax.f32 %v1267_v30, 0.0  ;;  %v1271_v33 = vadd.f32 %v435_v29, %v431_v31 }
 0x15c   : > { %v449_v34 = vsel %vm445_vm1, %v444_v32, 0.0  ;;  %v443_v35 = vmax.f32 %v1271_v33, 0.0 }
 0x15d   : > { %599 = vrot.lane.b32.xlu0 %v449_v34, %s1146_s25  ;;  %624 = vrot.lane.b32.xlu1 %v449_v34, %s1144_s17 }
 0x15e   : > { %v448_v36 = vsel %vm445_vm1, %v443_v35, 0.0 }
 0x161   : > { %574 = vrot.lane.b32.xlu1 %v449_v34, %s1145_s18  ;;  %595 = vrot.lane.b32.xlu0 %v448_v36, %s1146_s25  ;;  %s1009_s25 = sshll.u32 %s1411_s28, 3 }
 0x165   : > { %549 = vrot.lane.b32.xlu1 %v449_v34, %s1147_s26  ;;  %524 = vrot.lane.b32.xlu0 %v449_v34, %s1148_s29 }
 0x169   : > { %1117 = vrot.lane.b32.xlu0 %v1143_v7, %s1149_s30  ;;  %620 = vrot.lane.b32.xlu1 %v448_v36, %s1144_s17 }
 0x16d   : > { %545 = vrot.lane.b32.xlu0 %v448_v36, %s1147_s26  ;;  %1112 = vrot.lane.b32.xlu1 %v1143_v7, %s1148_s29 }
 0x171   : > { %473 = vrot.lane.b32.xlu0 %v449_v34, %s1150_s9  ;;  %570 = vrot.lane.b32.xlu1 %v448_v36, %s1145_s18 }
 0x175   : > { %494 = vrot.lane.b32.xlu0 %v448_v36, %s1149_s30  ;;  %498 = vrot.lane.b32.xlu1 %v449_v34, %s1149_s30  ;;  %s303_s30 = scalar_lea.vmem %s1405_s8, %s1009_s25 }
 0x179   : > { %647 = vrot.lane.b32.xlu0 %v449_v34, %s1151_s10  ;;  %1122 = vrot.lane.b32.xlu1 %v1143_v7, %s1150_s9 }
 0x17d   : > { %643 = vrot.lane.b32.xlu0 %v448_v36, %s1151_s10  ;;  %520 = vrot.lane.b32.xlu1 %v448_v36, %s1148_s29 }
 0x181   : > { %649 = vrot.lane.b32.xlu1 %v1143_v7, %s1151_s10  ;;  %772 = vperm.xlu0 %1126, %v1219_v4  }
 0x185   : > { %469 = vrot.lane.b32.xlu1 %v448_v36, %s1150_s9  ;;  %1129 = vset.pattern.permute.xlu0 %v1153_v39 }
 0x186   : > { %778 = vperm.xlu0 %1129, %v1230_v6  }
 0x189   : > { %645 = vrot.lane.b32.xlu1 %v1143_v7, %s1151_s10 }
 0x18a   : > { %1132 = vset.pattern.permute.xlu0 %v1141_v1 }
 0x18d   : > { %767 = vperm.xlu1 %1127, %v1230_v6  }
 0x191   : > { %1128 = vset.pattern.permute.xlu1 %v1153_v39  ;;  %v663_v39 = vld [vmem:[%s1399_s2 + $0x18] sm:$0xff] }
 0x192   : > { %782 = vperm.xlu1 %1128, %v1219_v4  }
 0x196   : > { %1130 = vset.pattern.permute.xlu1 %v1142_v2  ;;  %v1105_v2 = vunpack.i.h.bf16 %v1103_v41  ;;  %v790_v41 = vld [vmem:[%s1404_s7] sm:$0x3f] }
 0x197   : > { %793 = vperm.xlu1 %1130, %v790_v41  }
 0x19b   : > { %1131 = vset.pattern.permute.xlu1 %v1141_v1  ;;  %v789_v1 = vld [vmem:[%s1400_s3] sm:$0x3f] }
 0x19c   : > { %871 = vperm.xlu1 %1131, %v790_v41  }
 0x1cf   : > { %v600_v45 = vpop.permute.xlu0 %599  ;;  %v625_v46 = vpop.permute.xlu1 %624 }
 0x1d0   : > { %v630_v47 = vsel %vm628_vm2, %v625_v46, %v1094_v44  ;;  %v605_v61 = vsel %vm603_vm3, %v600_v45, %v1099_v55 }
 0x1d1   : > { %689 = vmatpush1.msra.mxu1 %v630_v47 }
 0x1d2   : > { %690 = vmatprep.subr.mxu1 %v1143_v7 }
 0x1d3   : > { %v575_v48 = vpop.permute.xlu1 %574  ;;  %v596_v49 = vpop.permute.xlu0 %595 }
 0x1d4   : > { %v604_v63 = vsel %vm603_vm3, %v596_v49, %v1100_v60  ;;  %v580_v3 = vsel %vm578_vm5, %v575_v48, %v1104_v59 }
 0x1d7   : > { %v550_v50 = vpop.permute.xlu1 %549  ;;  %v525_v51 = vpop.permute.xlu0 %524 }
 0x1d8   : > { %v553_v14 = vsel %vm551_vm7, %v1109_v9, %v550_v50 }
 0x1db   : > { %v621_v54 = vpop.permute.xlu1 %620  ;;  %v1118_v58 = vpop.permute.xlu0 %1117 }
 0x1dc   : > { %v629_v56 = vsel %vm628_vm2, %v621_v54, %v1095_v53  ;;  %v1119_v18 = vunpack.i.l.bf16 %v1118_v58  ;;  %v1120_v23 = vunpack.i.h.bf16 %v1118_v58 }
 0x1dd   : > { %691 = vmatpush1.msra.mxu1 %v629_v56  ;;  %v869_v56 = vld [vmem:[%s1401_s4] sm:$0x3f] }
 0x1de   : > { %692 = vmatprep.subr.mxu1 %v1143_v7 }
 0x1df   : > { %1019 = vmatpush1.msk.msra.mxu1 %vm1303_vm4, %v605_v61  ;;  %v1113_v62 = vpop.permute.xlu1 %1112  ;;  %v546_v4 = vpop.permute.xlu0 %545 }
 0x1e0   : > { %694 = vmatprep.subr.mxu1 %v1143_v7  ;;  %v1114_v15 = vunpack.i.l.bf16 %v1113_v62  ;;  %v552_v17 = vsel %vm551_vm7, %v1110_v13, %v546_v4  ;;  %v1115_v19 = vunpack.i.h.bf16 %v1113_v62 }
 0x1e1   : > { %1020 = vmatpush1.msk.msra.mxu1 %vm1303_vm4, %v604_v63 }
 0x1e2   : > { %696 = vmatprep.subr.mxu1 %v1143_v7  ;;  %v528_v20 = vsel %vm526_vm8, %v1114_v15, %v525_v51 }
 0x1e3   : > { %1021 = vmatpush1.msk.msra.mxu1 %vm1311_vm6, %v580_v3  ;;  %v571_v5 = vpop.permute.xlu1 %570  ;;  %v474_v11 = vpop.permute.xlu0 %473 }
 0x1e4   : > { %v579_v6 = vsel %vm578_vm5, %v571_v5, %v1105_v2  ;;  %698 = vmatprep.subr.mxu1 %v1143_v7 }
 0x1e5   : > { %1022 = vmatpush1.msk.msra.mxu1 %vm1311_vm6, %v579_v6 }
 0x1e6   : > { %700 = vmatprep.subr.mxu1 %v1143_v7 }
 0x1e7   : > { %1023 = vmatpush1.msk.msra.mxu1 %vm445_vm1, %v444_v32  ;;  %v499_v10 = vpop.permute.xlu1 %498  ;;  %v495_v21 = vpop.permute.xlu0 %494 }
 0x1e8   : > { %702 = vmatprep.subr.mxu1 %v1143_v7  ;;  %v502_v26 = vsel %vm500_vm9, %v1119_v18, %v499_v10  ;;  %v501_v28 = vsel %vm500_vm9, %v1120_v23, %v495_v21 }
 0x1e9   : > { %1024 = vmatpush1.msk.msra.mxu1 %vm445_vm1, %v443_v35 }
 0x1ea   : > { %704 = vmatprep.subr.mxu1 %v1143_v7 }
 0x1eb   : > { %1025 = vmatpush1.msk.msra.mxu1 %vm1303_vm4, %v553_v14  ;;  %v1123_v16 = vpop.permute.xlu1 %1122  ;;  %v648_v29 = vpop.permute.xlu0 %647 }
 0x1ec   : > { %706 = vmatprep.subr.mxu1 %v1143_v7  ;;  %v1124_v25 = vunpack.i.l.bf16 %v1123_v16  ;;  %v1125_v30 = vunpack.i.h.bf16 %v1123_v16 }
 0x1ed   : > { %1026 = vmatpush1.msk.msra.mxu1 %vm1303_vm4, %v552_v17 }
 0x1ee   : > { %708 = vmatprep.subr.mxu1 %v1143_v7  ;;  %v477_v31 = vsel %vm475_vm10, %v1124_v25, %v474_v11 }
 0x1ef   : > { %v521_v22 = vpop.permute.xlu1 %520  ;;  %1027 = vmatpush1.msk.msra.mxu1 %vm1311_vm6, %v528_v20  ;;  %v644_v35 = vpop.permute.xlu0 %643 }
 0x1f0   : > { %v527_v24 = vsel %vm526_vm8, %v1115_v19, %v521_v22  ;;  %710 = vmatprep.subr.mxu1 %v1143_v7 }
 0x1f1   : > { %1028 = vmatpush1.msk.msra.mxu1 %vm1311_vm6, %v527_v24 }
 0x1f2   : > { %712 = vmatprep.subr.mxu1 %v1143_v7 }
 0x1f3   : > { %v650_v27 = vpop.permute.xlu1 %649  ;;  %713 = vmatpush1.msra.mxu1 %v502_v26 }
 0x1f4   : > { %714 = vmatprep.subr.mxu1 %v1143_v7  ;;  %v653_v34 = vsel %vm651_vm11, %v648_v29, %v650_v27 }
 0x1f5   : > { %715 = vmatpush1.msra.mxu1 %v501_v28 }
 0x1f6   : > { %716 = vmatprep.subr.mxu1 %v1143_v7 }
 0x1f7   : > { %v470_v32 = vpop.permute.xlu1 %469  ;;  %1029 = vmatpush1.msk.msra.mxu1 %vm1303_vm4, %v477_v31 }
 0x1f8   : > { %v476_v33 = vsel %vm475_vm10, %v1125_v30, %v470_v32  ;;  %718 = vmatprep.subr.mxu1 %v1143_v7 }
 0x1f9   : > { %1030 = vmatpush1.msk.msra.mxu1 %vm1303_vm4, %v476_v33 }
 0x1fa   : > { %748 = vmatprep.subr.mxu1 %v1143_v7 }
 0x1fb   : > { %v646_v36 = vpop.permute.xlu1 %645  ;;  %1031 = vmatpush2.msk.msra.mxu1 %vm1311_vm6, %v653_v34 }
 0x1fc   : > { %v652_v38 = vsel %vm651_vm11, %v644_v35, %v646_v36  ;;  %750 = vmatprep.subr.mxu1 %v1143_v7  ;;  %v773_v42 = vpop.permute.xlu0 %772 }
 0x1fd   : > { %1032 = vmatpush2.msk.msra.mxu1 %vm1311_vm6, %v652_v38 }
 0x1fe   : > { %753 = vmatmul.mubr.f32.vlgmr.msra.gmra.mxu1 %v660_v37 }
 0x1ff   : > { %1013 = vmatprep.mubr.msk.f32.mxu1 %vm337_vm0, %v663_v39 }
 0x201   : > { %v779_v47 = vpop.permute.xlu0 %778 }
 0x202   : > { %758 = vmatmul.mubr.f32.gmra.mxu1 %v662_v40 }
 0x208   : > { %v768_v43 = vpop.permute.xlu1 %767 }
 0x20d   : > { %v783_v49 = vpop.permute.xlu1 %782 }
 0x212   : > { %v794_v57 = vpop.permute.xlu1 %793 }
 0x217   : > { %v872_v60 = vpop.permute.xlu1 %871 }
 0x2be   : > { %v754_v44 = vpop.f32.mrf.mxu1 }
 0x2bf   : > { %v775_v46 = vmul.f32 %v768_v43, %v754_v44 }
 0x2c0   : > { %v756_v45 = vpop.f32.mrf.mxu1 }
 0x2c1   : > { %v785_v52 = vadd.f32 %v779_v47, %v775_v46 }
 0x2c2   : > { %v759_v48 = vpop.f32.mrf.mxu1 }
 0x2c3   : > { %v776_v50 = vmul.f32 %v773_v42, %v759_v48  ;;  %v787_v55 = vmax.f32 %v785_v52, 0.0 }
 0x2c4   : > { %v761_v51 = vpop.f32.mrf.mxu1 }
 0x2c5   : > { %v786_v53 = vadd.f32 %v783_v49, %v776_v50 }
 0x2c7   : > { %v788_v54 = vmax.f32 %v786_v53, 0.0 }
 0x2c9   : > { %1051 = vmatpush3.msra.mxu0 %v788_v54 }
 0x2ca   : > { %1052 = vmatprep.subr.mxu0 %v1143_v7 }
 0x2cb   : > { %1053 = vmatpush3.msra.mxu0 %v787_v55 }
 0x2cc   : > { %1055 = vmatmul.mubr.msk.f32.vlgmr.msra.gmra.mxu0 %vm337_vm0, %v789_v1  ;;  %1057 = vmatprep.subr.mxu0 %v1143_v7 }
 0x2cd   : > { %1058 = vmatpush3.msra.mxu0 %v1252_v8  ;;  %1061 = vmatprep.mubr.msk.f32.mxu0 %vm1154_vm12, %v1143_v7 }
 0x2ce   : > { %1059 = vmatprep.subr.mxu0 %v1143_v7 }
 0x2cf   : > { %1060 = vmatpush3.msra.mxu0 %v1255_v12 }
 0x2d0   : > { %1062 = vmatmul.mubr.msk.f32.vlgmr.msra.gmra.mxu0 %vm337_vm0, %v869_v56 }
 0x38c   : > { %v865_v58 = vpop.f32.mrf.mxu0 }
 0x38d   : > { %v866_v8 = vadd.f32 %v865_v58, %v794_v57 }
 0x38e   : > { %v1056_v59 = vpop.f32.mrf.mxu0 }
 0x390   : > { %v943_v61 = vpop.f32.mrf.mxu0 }
 0x391   : > { %v944_v62 = vadd.f32 %v943_v61, %v872_v60 }
 0x392   : > { %v1063_v63 = vpop.f32.mrf.mxu0 }
 0x393   : > { %v947_v0 = vadd.f32 %v944_v62, %v866_v8 }
 0x395   : > { %948 = vst [vmem:[%s303_s30] sm:$0x3f] %v947_v0 }
 0x396 PF: > { %s18_s27 = sadd.s32 1, %s1139_s27  }
 0x397   : > { %p15_p4 = scmp.ge.s32.totalorder %s18_s27, 4  }
 0x399   :  { %17 = sbr.rel (!%p15_p4) target bundleno = 1 (0x1), region = 82 }

// kernel: _lambda_.10
= control target key start
LH: loop header
LB: loop body
LE: loop exit
PB: predicated region body
PF: predicated region fallthrough
CT: control target
= control target key end

     0   :  { %s1078_s24 = smov 0   ;;  %s1258_s0 = inlined_call_operand.vmem [shape: f32[2,16,128], index: 0, kind: input, shape index: {}]   ;;  %s1259_s1 = inlined_call_operand.vmem [shape: f32[16,16], index: 1, kind: input, shape index: {}]   ;;  %s1260_s2 = inlined_call_operand.vmem [shape: f32[16,144], index: 2, kind: input, shape index: {}]   ;;  %s1261_s3 = inlined_call_operand.vmem [shape: f32[6,16], index: 3, kind: input, shape index: {}]   ;;  %s1262_s4 = inlined_call_operand.vmem [shape: f32[16,2], index: 4, kind: input, shape index: {}]   ;;  %s1263_s5 = inlined_call_operand.vmem [shape: f32[16,4], index: 5, kind: input, shape index: {}]   ;;  %s1264_s6 = inlined_call_operand.vmem [shape: f32[6,2], index: 6, kind: input, shape index: {}]   ;;  %s1265_s7 = inlined_call_operand.vmem [shape: f32[2,6,128], index: 7, kind: output, shape index: {}]  }
   0x1 LB: > { %s897_s25 = sadd.s32 4294967295, %s1022_s24   ;;  %p901_p0 = scmp.ge.s32.totalorder %s1022_s24, 1  ;;  %s1022_s24 = sphi %s1078_s24, %s17_s24  }
   0x2   : > { %p237_p1 = scmp.lt.s32.totalorder %s1022_s24, 3 }
   0x4   : > { %p238_p2 = pnand %p901_p0, %p237_p1 }
   0x5   : > { %s1027_s13 = smov (!%p238_p2), 124   ;;  %s1028_s14 = smov (!%p238_p2), 127  }
   0x6   : > { %241 = sbr.rel (%p238_p2) target bundleno = 914 (0x392), region = 48  ;;  %p268_p3 = scmp.lt.s32.totalorder (!%p238_p2), %s897_s25, 1 }
   0x7   : > { %s1029_s21 = smov (!%p238_p2), 125   ;;  %s1030_s22 = smov (!%p238_p2), 1  }
   0x8   : > { %s1031_s23 = smov (!%p238_p2), 3   ;;  %s1032_s26 = smov (!%p238_p2), 4  }
   0x9   : > { %s1033_s27 = smov (!%p238_p2), 5   ;;  %s1034_s28 = smov (!%p238_p2), 123  }
   0xb   : > { %v283_v0 = vld [vmem:[%s1262_s4 + $0x8] sm:$0xff]  ;;  %v1024_v1 = vmov 1   ;;  %v1025_v2 = vmov 0   ;;  %v282_v3 = vld [vmem:[%s1262_s4] sm:$0xff]  ;;  %vm310_vm0 = vcmask 130048   ;;  %v1026_v7 = vmov 0.0  }
   0xc   : > { %971 = vset.pattern.permute.xlu1 %v1024_v1  ;;  %970 = vset.pattern.permute.xlu0 %v1025_v2  ;;  %v1096_v4 = vld [vmem:[%s1263_s5 + $0x8] sm:$0xff]  ;;  %v308_v5 = vld [vmem:[%s1259_s1] sm:$0xff]  ;;  %s1271_s25 = smov (!%p268_p3, %s897_s25), 1  ;;  %v277_v23 = vlaneseq  ;;  %v1035_v38 = vmov 2   ;;  %v1036_v39 = vmov 3   ;;  %vm601_vm2 = vcmask 1014784  }
   0xd   : > { %301 = vperm.xlu1 %971, %v283_v0   ;;  %291 = vperm.xlu0 %970, %v283_v0   ;;  %v1107_v6 = vld [vmem:[%s1263_s5] sm:$0xff]  ;;  %s912_s15 = sshll.u32 %s1271_s25, 4  ;;  %v309_v20 = vld [vmem:[%s1259_s1 + $0x8] sm:$0xff]  ;;  %vm576_vm3 = vcmask 1022976   ;;  %vm551_vm5 = vcmask 1039360   ;;  %vm524_vm7 = vcmask 7168  }
   0xe   : > { %938 = vmatprep.mubr.msk.f32.mxu0 %vm310_vm0, %v308_v5  ;;  %661 = vmatprep.subr.mxu1 %v1026_v7  ;;  %s272_s18 = scalar_lea.vmem %s1258_s0, %s912_s15  ;;  %v1137_v26 = vand.u32 127, %v277_v23  ;;  %v634_v37 = vld [vmem:[%s1260_s2 + $0x8] sm:$0xff]  ;;  %vm499_vm8 = vcmask 23552   ;;  %vm473_vm9 = vcmask 31744   ;;  %vm448_vm10 = vcmask 39936  }
   0xf   : > { %v281_v8 = vld [vmem:[%s272_s18 + $0x8] sm:$0xff]  ;;  %v1127_v12 = vld [vmem:[%s272_s18] sm:$0xff]  ;;  %907 = vmatprep.mubr.msk.f32.mxu1 %vm310_vm0, %v634_v37  ;;  %vm624_vm11 = vcmask 1006592   ;;  %v636_v37 = vld [vmem:[%s1260_s2 + $0x18] sm:$0xff]  ;;  %vm1037_vm12 = vmmov 0   ;;  %s904_s18 = sshll.u32 %s1271_s25, 3 }
  0x10   : > { %vm418_vm1 = vcmp.lt.s32.totalorder %v1137_v26, 16  ;;  %v279_v52 = vand.u32 3, %v1137_v26 }
  0x11   : > { %297 = vperm.xlu1 %971, %v282_v3   ;;  %286 = vperm.xlu0 %970, %v282_v3  }
  0x12   : > { %vm1175_vm4 = vcmp.ge.s32.totalorder %v279_v52, 1  ;;  %vm1183_vm6 = vcmp.lt.s32.totalorder %v279_v52, 3 }
  0x15   : > { %401 = vperm.xlu0 %970, %v1096_v4   ;;  %972 = vset.pattern.permute.xlu1 %v1025_v2 }
  0x16   : > { %396 = vperm.xlu1 %972, %v1107_v6  }
  0x19   : > { %973 = vset.pattern.permute.xlu0 %v1024_v1 }
  0x1a   : > { %411 = vperm.xlu0 %973, %v1096_v4   ;;  %974 = vset.pattern.permute.xlu1 %v1024_v1 }
  0x1b   : > { %407 = vperm.xlu1 %974, %v1107_v6  }
  0x1e   : > { %976 = vrot.lane.b32.xlu0 %v1026_v7, %s1027_s13 }
  0x1f   : > { %981 = vrot.lane.b32.xlu1 %v1026_v7, %s1029_s21  ;;  %1010 = vset.pattern.permute.xlu0 %v1035_v38 }
  0x20   : > { %1011 = vset.pattern.permute.xlu1 %v1035_v38  ;;  %v635_v38 = vld [vmem:[%s1260_s2 + $0x10] sm:$0xff] }
  0x22   : > { %986 = vrot.lane.b32.xlu0 %v1026_v7, %s1028_s14 }
  0x26   : > { %991 = vrot.lane.b32.xlu0 %v1026_v7, %s1030_s22 }
  0x88   : > { %v302_v9 = vpop.permute.xlu1 %301  ;;  %v292_v10 = vpop.permute.xlu0 %291 }
  0x89   : > { %v295_v11 = vmul.f32 %v292_v10, %v281_v8 }
  0x8b   : > { %v305_v13 = vadd.f32 %v302_v9, %v295_v11 }
  0x8c   : > { %v287_v14 = vpop.permute.xlu0 %286  ;;  %v298_v17 = vpop.permute.xlu1 %297 }
  0x8d   : > { %v294_v15 = vmul.f32 %v287_v14, %v1127_v12  ;;  %v307_v16 = vmax.f32 %v305_v13, 0.0 }
  0x8f   : > { %v304_v18 = vadd.f32 %v298_v17, %v294_v15  ;;  %934 = vmatprep.subr.mxu0 %v307_v16 }
  0x90   : > { %935 = vmatpush3.msra.mxu0 %v307_v16  ;;  %v402_v21 = vpop.permute.xlu0 %401 }
  0x91   : > { %v306_v19 = vmax.f32 %v304_v18, 0.0  ;;  %v397_v22 = vpop.permute.xlu1 %396 }
  0x93   : > { %936 = vmatprep.subr.mxu0 %v306_v19 }
  0x94   : > { %937 = vmatpush3.msra.mxu0 %v306_v19 }
  0x95   : > { %939 = vmatmul.mubr.msk.f32.vlgmr.msra.gmra.mxu0 %vm310_vm0, %v309_v20  ;;  %941 = vmatprep.subr.mxu0 %v1026_v7  ;;  %v412_v25 = vpop.permute.xlu0 %411 }
  0x96   : > { %v408_v29 = vpop.permute.xlu1 %407  ;;  %945 = vmatprep.mubr.msk.f32.mxu0 %vm1037_vm12, %v1026_v7 }
  0x99   : > { %v977_v40 = vpop.permute.xlu0 %976 }
  0x9a   : > { %v982_v42 = vpop.permute.xlu1 %981  ;;  %v978_v44 = vunpack.i.l.bf16 %v977_v40  ;;  %v979_v53 = vunpack.i.h.bf16 %v977_v40 }
  0x9b   : > { %v983_v55 = vunpack.i.l.bf16 %v982_v42  ;;  %v984_v60 = vunpack.i.h.bf16 %v982_v42 }
  0x9d   : > { %v987_v41 = vpop.permute.xlu0 %986 }
  0x9e   : > { %v988_v59 = vunpack.i.l.bf16 %v987_v41  ;;  %v989_v1 = vunpack.i.h.bf16 %v987_v41 }
  0xa1   : > { %v992_v43 = vpop.permute.xlu0 %991 }
  0xa2   : > { %v994_v10 = vunpack.i.h.bf16 %v992_v43 }
 0x155   : > { %v940_v24 = vpop.f32.mrf.mxu0 }
 0x156   : > { %v405_v27 = vmul.f32 %v940_v24, %v402_v21 }
 0x157   : > { %v383_v28 = vpop.f32.mrf.mxu0 }
 0x158   : > { %v1139_v30 = vadd.f32 %v412_v25, %v405_v27  ;;  %v404_v31 = vmul.f32 %v397_v22, %v383_v28 }
 0x15a   : > { %v417_v32 = vmax.f32 %v1139_v30, 0.0  ;;  %v1143_v33 = vadd.f32 %v408_v29, %v404_v31 }
 0x15c   : > { %v422_v34 = vsel %vm418_vm1, %v417_v32, 0.0  ;;  %v416_v35 = vmax.f32 %v1143_v33, 0.0 }
 0x15d   : > { %572 = vrot.lane.b32.xlu0 %v422_v34, %s1029_s21  ;;  %597 = vrot.lane.b32.xlu1 %v422_v34, %s1027_s13 }
 0x15e   : > { %v421_v36 = vsel %vm418_vm1, %v416_v35, 0.0 }
 0x161   : > { %547 = vrot.lane.b32.xlu1 %v422_v34, %s1028_s14  ;;  %568 = vrot.lane.b32.xlu0 %v421_v36, %s1029_s21  ;;  %s276_s21 = scalar_lea.vmem %s1265_s7, %s904_s18 }
 0x165   : > { %522 = vrot.lane.b32.xlu1 %v422_v34, %s1030_s22  ;;  %497 = vrot.lane.b32.xlu0 %v422_v34, %s1031_s23 }
 0x169   : > { %1001 = vrot.lane.b32.xlu0 %v1026_v7, %s1032_s26  ;;  %593 = vrot.lane.b32.xlu1 %v421_v36, %s1027_s13 }
 0x16d   : > { %518 = vrot.lane.b32.xlu0 %v421_v36, %s1030_s22  ;;  %996 = vrot.lane.b32.xlu1 %v1026_v7, %s1031_s23 }
 0x171   : > { %446 = vrot.lane.b32.xlu0 %v422_v34, %s1033_s27  ;;  %543 = vrot.lane.b32.xlu1 %v421_v36, %s1028_s14 }
 0x175   : > { %467 = vrot.lane.b32.xlu0 %v421_v36, %s1032_s26  ;;  %471 = vrot.lane.b32.xlu1 %v422_v34, %s1032_s26 }
 0x179   : > { %620 = vrot.lane.b32.xlu0 %v422_v34, %s1034_s28  ;;  %1006 = vrot.lane.b32.xlu1 %v1026_v7, %s1033_s27 }
 0x17d   : > { %616 = vrot.lane.b32.xlu0 %v421_v36, %s1034_s28  ;;  %493 = vrot.lane.b32.xlu1 %v421_v36, %s1031_s23 }
 0x181   : > { %622 = vrot.lane.b32.xlu1 %v1026_v7, %s1034_s28  ;;  %745 = vperm.xlu0 %1010, %v1096_v4  }
 0x185   : > { %442 = vrot.lane.b32.xlu1 %v421_v36, %s1033_s27  ;;  %1013 = vset.pattern.permute.xlu0 %v1036_v39 }
 0x186   : > { %751 = vperm.xlu0 %1013, %v1107_v6  }
 0x189   : > { %618 = vrot.lane.b32.xlu1 %v1026_v7, %s1034_s28 }
 0x18a   : > { %1015 = vset.pattern.permute.xlu0 %v1025_v2 }
 0x18d   : > { %740 = vperm.xlu1 %1011, %v1107_v6   ;;  %v993_v6 = vunpack.i.l.bf16 %v992_v43 }
 0x191   : > { %1012 = vset.pattern.permute.xlu1 %v1036_v39  ;;  %v763_v39 = vld [vmem:[%s1264_s6] sm:$0x3f] }
 0x192   : > { %755 = vperm.xlu1 %1012, %v1096_v4  }
 0x196   : > { %1014 = vset.pattern.permute.xlu1 %v1025_v2 }
 0x197   : > { %766 = vperm.xlu1 %1014, %v763_v39  }
 0x1cf   : > { %v573_v45 = vpop.permute.xlu0 %572  ;;  %v598_v46 = vpop.permute.xlu1 %597 }
 0x1d0   : > { %v603_v47 = vsel %vm601_vm2, %v598_v46, %v978_v44  ;;  %v578_v61 = vsel %vm576_vm3, %v573_v45, %v983_v55 }
 0x1d1   : > { %662 = vmatpush1.msra.mxu1 %v603_v47 }
 0x1d2   : > { %663 = vmatprep.subr.mxu1 %v1026_v7 }
 0x1d3   : > { %v548_v48 = vpop.permute.xlu1 %547  ;;  %v569_v49 = vpop.permute.xlu0 %568 }
 0x1d4   : > { %v577_v63 = vsel %vm576_vm3, %v569_v49, %v984_v60  ;;  %v553_v2 = vsel %vm551_vm5, %v548_v48, %v988_v59 }
 0x1d7   : > { %v523_v50 = vpop.permute.xlu1 %522  ;;  %v498_v51 = vpop.permute.xlu0 %497 }
 0x1d8   : > { %v526_v11 = vsel %vm524_vm7, %v993_v6, %v523_v50 }
 0x1db   : > { %v594_v54 = vpop.permute.xlu1 %593  ;;  %v1002_v58 = vpop.permute.xlu0 %1001 }
 0x1dc   : > { %v602_v56 = vsel %vm601_vm2, %v594_v54, %v979_v53  ;;  %v1003_v16 = vunpack.i.l.bf16 %v1002_v58  ;;  %v1004_v21 = vunpack.i.h.bf16 %v1002_v58  ;;  %v762_v54 = vld [vmem:[%s1261_s3] sm:$0x3f] }
 0x1dd   : > { %664 = vmatpush1.msra.mxu1 %v602_v56 }
 0x1de   : > { %665 = vmatprep.subr.mxu1 %v1026_v7 }
 0x1df   : > { %913 = vmatpush1.msk.msra.mxu1 %vm1175_vm4, %v578_v61  ;;  %v997_v62 = vpop.permute.xlu1 %996  ;;  %v519_v3 = vpop.permute.xlu0 %518 }
 0x1e0   : > { %667 = vmatprep.subr.mxu1 %v1026_v7  ;;  %v998_v13 = vunpack.i.l.bf16 %v997_v62  ;;  %v525_v15 = vsel %vm524_vm7, %v994_v10, %v519_v3  ;;  %v999_v17 = vunpack.i.h.bf16 %v997_v62 }
 0x1e1   : > { %914 = vmatpush1.msk.msra.mxu1 %vm1175_vm4, %v577_v63 }
 0x1e2   : > { %669 = vmatprep.subr.mxu1 %v1026_v7  ;;  %v501_v18 = vsel %vm499_vm8, %v998_v13, %v498_v51 }
 0x1e3   : > { %915 = vmatpush1.msk.msra.mxu1 %vm1183_vm6, %v553_v2  ;;  %v544_v4 = vpop.permute.xlu1 %543  ;;  %v447_v9 = vpop.permute.xlu0 %446 }
 0x1e4   : > { %v552_v5 = vsel %vm551_vm5, %v544_v4, %v989_v1  ;;  %671 = vmatprep.subr.mxu1 %v1026_v7 }
 0x1e5   : > { %916 = vmatpush1.msk.msra.mxu1 %vm1183_vm6, %v552_v5 }
 0x1e6   : > { %673 = vmatprep.subr.mxu1 %v1026_v7 }
 0x1e7   : > { %917 = vmatpush1.msk.msra.mxu1 %vm418_vm1, %v417_v32  ;;  %v472_v8 = vpop.permute.xlu1 %471  ;;  %v468_v19 = vpop.permute.xlu0 %467 }
 0x1e8   : > { %675 = vmatprep.subr.mxu1 %v1026_v7  ;;  %v475_v24 = vsel %vm473_vm9, %v1003_v16, %v472_v8  ;;  %v474_v26 = vsel %vm473_vm9, %v1004_v21, %v468_v19 }
 0x1e9   : > { %918 = vmatpush1.msk.msra.mxu1 %vm418_vm1, %v416_v35  ;;  %v633_v35 = vld [vmem:[%s1260_s2] sm:$0xff] }
 0x1ea   : > { %677 = vmatprep.subr.mxu1 %v1026_v7 }
 0x1eb   : > { %919 = vmatpush1.msk.msra.mxu1 %vm1175_vm4, %v526_v11  ;;  %v1007_v14 = vpop.permute.xlu1 %1006  ;;  %v621_v27 = vpop.permute.xlu0 %620 }
 0x1ec   : > { %679 = vmatprep.subr.mxu1 %v1026_v7  ;;  %v1008_v23 = vunpack.i.l.bf16 %v1007_v14  ;;  %v1009_v28 = vunpack.i.h.bf16 %v1007_v14 }
 0x1ed   : > { %920 = vmatpush1.msk.msra.mxu1 %vm1175_vm4, %v525_v15 }
 0x1ee   : > { %681 = vmatprep.subr.mxu1 %v1026_v7  ;;  %v450_v29 = vsel %vm448_vm10, %v1008_v23, %v447_v9 }
 0x1ef   : > { %v494_v20 = vpop.permute.xlu1 %493  ;;  %921 = vmatpush1.msk.msra.mxu1 %vm1183_vm6, %v501_v18  ;;  %v617_v33 = vpop.permute.xlu0 %616 }
 0x1f0   : > { %v500_v22 = vsel %vm499_vm8, %v999_v17, %v494_v20  ;;  %683 = vmatprep.subr.mxu1 %v1026_v7 }
 0x1f1   : > { %922 = vmatpush1.msk.msra.mxu1 %vm1183_vm6, %v500_v22 }
 0x1f2   : > { %685 = vmatprep.subr.mxu1 %v1026_v7 }
 0x1f3   : > { %v623_v25 = vpop.permute.xlu1 %622  ;;  %686 = vmatpush1.msra.mxu1 %v475_v24 }
 0x1f4   : > { %687 = vmatprep.subr.mxu1 %v1026_v7  ;;  %v626_v32 = vsel %vm624_vm11, %v621_v27, %v623_v25 }
 0x1f5   : > { %688 = vmatpush1.msra.mxu1 %v474_v26 }
 0x1f6   : > { %689 = vmatprep.subr.mxu1 %v1026_v7 }
 0x1f7   : > { %v443_v30 = vpop.permute.xlu1 %442  ;;  %923 = vmatpush1.msk.msra.mxu1 %vm1175_vm4, %v450_v29 }
 0x1f8   : > { %v449_v31 = vsel %vm448_vm10, %v1009_v28, %v443_v30  ;;  %691 = vmatprep.subr.mxu1 %v1026_v7 }
 0x1f9   : > { %924 = vmatpush1.msk.msra.mxu1 %vm1175_vm4, %v449_v31 }
 0x1fa   : > { %721 = vmatprep.subr.mxu1 %v1026_v7 }
 0x1fb   : > { %v619_v34 = vpop.permute.xlu1 %618  ;;  %925 = vmatpush2.msk.msra.mxu1 %vm1183_vm6, %v626_v32 }
 0x1fc   : > { %v625_v36 = vsel %vm624_vm11, %v617_v33, %v619_v34  ;;  %723 = vmatprep.subr.mxu1 %v1026_v7  ;;  %v746_v40 = vpop.permute.xlu0 %745 }
 0x1fd   : > { %926 = vmatpush2.msk.msra.mxu1 %vm1183_vm6, %v625_v36 }
 0x1fe   : > { %726 = vmatmul.mubr.f32.vlgmr.msra.gmra.mxu1 %v633_v35 }
 0x1ff   : > { %908 = vmatprep.mubr.msk.f32.mxu1 %vm310_vm0, %v636_v37 }
 0x201   : > { %v752_v45 = vpop.permute.xlu0 %751 }
 0x202   : > { %731 = vmatmul.mubr.f32.gmra.mxu1 %v635_v38 }
 0x208   : > { %v741_v41 = vpop.permute.xlu1 %740 }
 0x20d   : > { %v756_v47 = vpop.permute.xlu1 %755 }
 0x212   : > { %v767_v55 = vpop.permute.xlu1 %766 }
 0x2be   : > { %v727_v42 = vpop.f32.mrf.mxu1 }
 0x2bf   : > { %v748_v44 = vmul.f32 %v741_v41, %v727_v42 }
 0x2c0   : > { %v729_v43 = vpop.f32.mrf.mxu1 }
 0x2c1   : > { %v758_v50 = vadd.f32 %v752_v45, %v748_v44 }
 0x2c2   : > { %v732_v46 = vpop.f32.mrf.mxu1 }
 0x2c3   : > { %v749_v48 = vmul.f32 %v746_v40, %v732_v46  ;;  %v760_v53 = vmax.f32 %v758_v50, 0.0 }
 0x2c4   : > { %v734_v49 = vpop.f32.mrf.mxu1 }
 0x2c5   : > { %v759_v51 = vadd.f32 %v756_v47, %v749_v48 }
 0x2c7   : > { %v761_v52 = vmax.f32 %v759_v51, 0.0 }
 0x2c9   : > { %942 = vmatpush3.msra.mxu0 %v761_v52 }
 0x2ca   : > { %943 = vmatprep.subr.mxu0 %v1026_v7 }
 0x2cb   : > { %944 = vmatpush3.msra.mxu0 %v760_v53 }
 0x2cc   : > { %946 = vmatmul.mubr.msk.f32.vlgmr.msra.gmra.mxu0 %vm310_vm0, %v762_v54 }
 0x38c   : > { %v838_v56 = vpop.f32.mrf.mxu0 }
 0x38d   : > { %v839_v57 = vadd.f32 %v838_v56, %v767_v55 }
 0x38e   : > { %v947_v58 = vpop.f32.mrf.mxu0 }
 0x38f   : > { %v842_v59 = vadd.f32 %v839_v57, %v1127_v12 }
 0x391   : > { %843 = vst [vmem:[%s276_s21] sm:$0x3f] %v842_v59 }
 0x392 PF: > { %s17_s24 = sadd.s32 1, %s1022_s24  }
 0x393   : > { %p14_p4 = scmp.ge.s32.totalorder %s17_s24, 4  }
 0x395   :  { %16 = sbr.rel (!%p14_p4) target bundleno = 1 (0x1), region = 78 }

// kernel: _lambda_.9
= control target key start
LH: loop header
LB: loop body
LE: loop exit
PB: predicated region body
PF: predicated region fallthrough
CT: control target
= control target key end

     0   :  { %s1078_s24 = smov 0   ;;  %s1258_s0 = inlined_call_operand.vmem [shape: f32[2,16,128], index: 0, kind: input, shape index: {}]   ;;  %s1259_s1 = inlined_call_operand.vmem [shape: f32[16,16], index: 1, kind: input, shape index: {}]   ;;  %s1260_s2 = inlined_call_operand.vmem [shape: f32[16,144], index: 2, kind: input, shape index: {}]   ;;  %s1261_s3 = inlined_call_operand.vmem [shape: f32[6,16], index: 3, kind: input, shape index: {}]   ;;  %s1262_s4 = inlined_call_operand.vmem [shape: f32[16,2], index: 4, kind: input, shape index: {}]   ;;  %s1263_s5 = inlined_call_operand.vmem [shape: f32[16,4], index: 5, kind: input, shape index: {}]   ;;  %s1264_s6 = inlined_call_operand.vmem [shape: f32[6,2], index: 6, kind: input, shape index: {}]   ;;  %s1265_s7 = inlined_call_operand.vmem [shape: f32[2,6,128], index: 7, kind: output, shape index: {}]  }
   0x1 LB: > { %s897_s25 = sadd.s32 4294967295, %s1022_s24   ;;  %p901_p0 = scmp.ge.s32.totalorder %s1022_s24, 1  ;;  %s1022_s24 = sphi %s1078_s24, %s17_s24  }
   0x2   : > { %p237_p1 = scmp.lt.s32.totalorder %s1022_s24, 3 }
   0x4   : > { %p238_p2 = pnand %p901_p0, %p237_p1 }
   0x5   : > { %s1027_s13 = smov (!%p238_p2), 120   ;;  %s1028_s14 = smov (!%p238_p2), 127  }
   0x6   : > { %241 = sbr.rel (%p238_p2) target bundleno = 914 (0x392), region = 48  ;;  %p268_p3 = scmp.lt.s32.totalorder (!%p238_p2), %s897_s25, 1 }
   0x7   : > { %s1029_s21 = smov (!%p238_p2), 121   ;;  %s1030_s22 = smov (!%p238_p2), 1  }
   0x8   : > { %s1031_s23 = smov (!%p238_p2), 7   ;;  %s1032_s26 = smov (!%p238_p2), 8  }
   0x9   : > { %s1033_s27 = smov (!%p238_p2), 9   ;;  %s1034_s28 = smov (!%p238_p2), 119  }
   0xb   : > { %v283_v0 = vld [vmem:[%s1262_s4 + $0x8] sm:$0xff]  ;;  %v1024_v1 = vmov 1   ;;  %v1025_v2 = vmov 0   ;;  %v282_v3 = vld [vmem:[%s1262_s4] sm:$0xff]  ;;  %vm310_vm0 = vcmask 130048   ;;  %v1026_v7 = vmov 0.0  }
   0xc   : > { %971 = vset.pattern.permute.xlu1 %v1024_v1  ;;  %970 = vset.pattern.permute.xlu0 %v1025_v2  ;;  %v1096_v4 = vld [vmem:[%s1263_s5 + $0x8] sm:$0xff]  ;;  %v308_v5 = vld [vmem:[%s1259_s1] sm:$0xff]  ;;  %s1271_s25 = smov (!%p268_p3, %s897_s25), 1  ;;  %v277_v23 = vlaneseq  ;;  %v1035_v38 = vmov 2   ;;  %v1036_v39 = vmov 3   ;;  %vm601_vm2 = vcmask 982016  }
   0xd   : > { %301 = vperm.xlu1 %971, %v283_v0   ;;  %291 = vperm.xlu0 %970, %v283_v0   ;;  %v1107_v6 = vld [vmem:[%s1263_s5] sm:$0xff]  ;;  %s912_s15 = sshll.u32 %s1271_s25, 4  ;;  %v309_v20 = vld [vmem:[%s1259_s1 + $0x8] sm:$0xff]  ;;  %vm576_vm3 = vcmask 990208   ;;  %vm551_vm5 = vcmask 1039360   ;;  %vm524_vm7 = vcmask 7168  }
   0xe   : > { %938 = vmatprep.mubr.msk.f32.mxu0 %vm310_vm0, %v308_v5  ;;  %661 = vmatprep.subr.mxu1 %v1026_v7  ;;  %s272_s18 = scalar_lea.vmem %s1258_s0, %s912_s15  ;;  %v1137_v26 = vand.u32 127, %v277_v23  ;;  %v634_v37 = vld [vmem:[%s1260_s2 + $0x8] sm:$0xff]  ;;  %vm499_vm8 = vcmask 56320   ;;  %vm473_vm9 = vcmask 64512   ;;  %vm448_vm10 = vcmask 72704  }
   0xf   : > { %v281_v8 = vld [vmem:[%s272_s18 + $0x8] sm:$0xff]  ;;  %v1127_v12 = vld [vmem:[%s272_s18] sm:$0xff]  ;;  %907 = vmatprep.mubr.msk.f32.mxu1 %vm310_vm0, %v634_v37  ;;  %vm624_vm11 = vcmask 973824   ;;  %v636_v37 = vld [vmem:[%s1260_s2 + $0x18] sm:$0xff]  ;;  %vm1037_vm12 = vmmov 0   ;;  %s904_s18 = sshll.u32 %s1271_s25, 3 }
  0x10   : > { %vm418_vm1 = vcmp.lt.s32.totalorder %v1137_v26, 64  ;;  %v279_v52 = vand.u32 7, %v1137_v26 }
  0x11   : > { %297 = vperm.xlu1 %971, %v282_v3   ;;  %286 = vperm.xlu0 %970, %v282_v3  }
  0x12   : > { %vm1175_vm4 = vcmp.ge.s32.totalorder %v279_v52, 1  ;;  %vm1183_vm6 = vcmp.lt.s32.totalorder %v279_v52, 7 }
  0x15   : > { %401 = vperm.xlu0 %970, %v1096_v4   ;;  %972 = vset.pattern.permute.xlu1 %v1025_v2 }
  0x16   : > { %396 = vperm.xlu1 %972, %v1107_v6  }
  0x19   : > { %973 = vset.pattern.permute.xlu0 %v1024_v1 }
  0x1a   : > { %411 = vperm.xlu0 %973, %v1096_v4   ;;  %974 = vset.pattern.permute.xlu1 %v1024_v1 }
  0x1b   : > { %407 = vperm.xlu1 %974, %v1107_v6  }
  0x1e   : > { %976 = vrot.lane.b32.xlu0 %v1026_v7, %s1027_s13 }
  0x1f   : > { %981 = vrot.lane.b32.xlu1 %v1026_v7, %s1029_s21  ;;  %1010 = vset.pattern.permute.xlu0 %v1035_v38 }
  0x20   : > { %1011 = vset.pattern.permute.xlu1 %v1035_v38  ;;  %v635_v38 = vld [vmem:[%s1260_s2 + $0x10] sm:$0xff] }
  0x22   : > { %986 = vrot.lane.b32.xlu0 %v1026_v7, %s1028_s14 }
  0x26   : > { %991 = vrot.lane.b32.xlu0 %v1026_v7, %s1030_s22 }
  0x88   : > { %v302_v9 = vpop.permute.xlu1 %301  ;;  %v292_v10 = vpop.permute.xlu0 %291 }
  0x89   : > { %v295_v11 = vmul.f32 %v292_v10, %v281_v8 }
  0x8b   : > { %v305_v13 = vadd.f32 %v302_v9, %v295_v11 }
  0x8c   : > { %v287_v14 = vpop.permute.xlu0 %286  ;;  %v298_v17 = vpop.permute.xlu1 %297 }
  0x8d   : > { %v294_v15 = vmul.f32 %v287_v14, %v1127_v12  ;;  %v307_v16 = vmax.f32 %v305_v13, 0.0 }
  0x8f   : > { %v304_v18 = vadd.f32 %v298_v17, %v294_v15  ;;  %934 = vmatprep.subr.mxu0 %v307_v16 }
  0x90   : > { %935 = vmatpush3.msra.mxu0 %v307_v16  ;;  %v402_v21 = vpop.permute.xlu0 %401 }
  0x91   : > { %v306_v19 = vmax.f32 %v304_v18, 0.0  ;;  %v397_v22 = vpop.permute.xlu1 %396 }
  0x93   : > { %936 = vmatprep.subr.mxu0 %v306_v19 }
  0x94   : > { %937 = vmatpush3.msra.mxu0 %v306_v19 }
  0x95   : > { %939 = vmatmul.mubr.msk.f32.vlgmr.msra.gmra.mxu0 %vm310_vm0, %v309_v20  ;;  %941 = vmatprep.subr.mxu0 %v1026_v7  ;;  %v412_v25 = vpop.permute.xlu0 %411 }
  0x96   : > { %v408_v29 = vpop.permute.xlu1 %407  ;;  %945 = vmatprep.mubr.msk.f32.mxu0 %vm1037_vm12, %v1026_v7 }
  0x99   : > { %v977_v40 = vpop.permute.xlu0 %976 }
  0x9a   : > { %v982_v42 = vpop.permute.xlu1 %981  ;;  %v978_v44 = vunpack.i.l.bf16 %v977_v40  ;;  %v979_v53 = vunpack.i.h.bf16 %v977_v40 }
  0x9b   : > { %v983_v55 = vunpack.i.l.bf16 %v982_v42  ;;  %v984_v60 = vunpack.i.h.bf16 %v982_v42 }
  0x9d   : > { %v987_v41 = vpop.permute.xlu0 %986 }
  0x9e   : > { %v988_v59 = vunpack.i.l.bf16 %v987_v41  ;;  %v989_v1 = vunpack.i.h.bf16 %v987_v41 }
  0xa1   : > { %v992_v43 = vpop.permute.xlu0 %991 }
  0xa2   : > { %v994_v10 = vunpack.i.h.bf16 %v992_v43 }
 0x155   : > { %v940_v24 = vpop.f32.mrf.mxu0 }
 0x156   : > { %v405_v27 = vmul.f32 %v940_v24, %v402_v21 }
 0x157   : > { %v383_v28 = vpop.f32.mrf.mxu0 }
 0x158   : > { %v1139_v30 = vadd.f32 %v412_v25, %v405_v27  ;;  %v404_v31 = vmul.f32 %v397_v22, %v383_v28 }
 0x15a   : > { %v417_v32 = vmax.f32 %v1139_v30, 0.0  ;;  %v1143_v33 = vadd.f32 %v408_v29, %v404_v31 }
 0x15c   : > { %v422_v34 = vsel %vm418_vm1, %v417_v32, 0.0  ;;  %v416_v35 = vmax.f32 %v1143_v33, 0.0 }
 0x15d   : > { %572 = vrot.lane.b32.xlu0 %v422_v34, %s1029_s21  ;;  %597 = vrot.lane.b32.xlu1 %v422_v34, %s1027_s13 }
 0x15e   : > { %v421_v36 = vsel %vm418_vm1, %v416_v35, 0.0 }
 0x161   : > { %547 = vrot.lane.b32.xlu1 %v422_v34, %s1028_s14  ;;  %568 = vrot.lane.b32.xlu0 %v421_v36, %s1029_s21  ;;  %s276_s21 = scalar_lea.vmem %s1265_s7, %s904_s18 }
 0x165   : > { %522 = vrot.lane.b32.xlu1 %v422_v34, %s1030_s22  ;;  %497 = vrot.lane.b32.xlu0 %v422_v34, %s1031_s23 }
 0x169   : > { %1001 = vrot.lane.b32.xlu0 %v1026_v7, %s1032_s26  ;;  %593 = vrot.lane.b32.xlu1 %v421_v36, %s1027_s13 }
 0x16d   : > { %518 = vrot.lane.b32.xlu0 %v421_v36, %s1030_s22  ;;  %996 = vrot.lane.b32.xlu1 %v1026_v7, %s1031_s23 }
 0x171   : > { %446 = vrot.lane.b32.xlu0 %v422_v34, %s1033_s27  ;;  %543 = vrot.lane.b32.xlu1 %v421_v36, %s1028_s14 }
 0x175   : > { %467 = vrot.lane.b32.xlu0 %v421_v36, %s1032_s26  ;;  %471 = vrot.lane.b32.xlu1 %v422_v34, %s1032_s26 }
 0x179   : > { %620 = vrot.lane.b32.xlu0 %v422_v34, %s1034_s28  ;;  %1006 = vrot.lane.b32.xlu1 %v1026_v7, %s1033_s27 }
 0x17d   : > { %616 = vrot.lane.b32.xlu0 %v421_v36, %s1034_s28  ;;  %493 = vrot.lane.b32.xlu1 %v421_v36, %s1031_s23 }
 0x181   : > { %622 = vrot.lane.b32.xlu1 %v1026_v7, %s1034_s28  ;;  %745 = vperm.xlu0 %1010, %v1096_v4  }
 0x185   : > { %442 = vrot.lane.b32.xlu1 %v421_v36, %s1033_s27  ;;  %1013 = vset.pattern.permute.xlu0 %v1036_v39 }
 0x186   : > { %751 = vperm.xlu0 %1013, %v1107_v6  }
 0x189   : > { %618 = vrot.lane.b32.xlu1 %v1026_v7, %s1034_s28 }
 0x18a   : > { %1015 = vset.pattern.permute.xlu0 %v1025_v2 }
 0x18d   : > { %740 = vperm.xlu1 %1011, %v1107_v6   ;;  %v993_v6 = vunpack.i.l.bf16 %v992_v43 }
 0x191   : > { %1012 = vset.pattern.permute.xlu1 %v1036_v39  ;;  %v763_v39 = vld [vmem:[%s1264_s6] sm:$0x3f] }
 0x192   : > { %755 = vperm.xlu1 %1012, %v1096_v4  }
 0x196   : > { %1014 = vset.pattern.permute.xlu1 %v1025_v2 }
 0x197   : > { %766 = vperm.xlu1 %1014, %v763_v39  }
 0x1cf   : > { %v573_v45 = vpop.permute.xlu0 %572  ;;  %v598_v46 = vpop.permute.xlu1 %597 }
 0x1d0   : > { %v603_v47 = vsel %vm601_vm2, %v598_v46, %v978_v44  ;;  %v578_v61 = vsel %vm576_vm3, %v573_v45, %v983_v55 }
 0x1d1   : > { %662 = vmatpush1.msra.mxu1 %v603_v47 }
 0x1d2   : > { %663 = vmatprep.subr.mxu1 %v1026_v7 }
 0x1d3   : > { %v548_v48 = vpop.permute.xlu1 %547  ;;  %v569_v49 = vpop.permute.xlu0 %568 }
 0x1d4   : > { %v577_v63 = vsel %vm576_vm3, %v569_v49, %v984_v60  ;;  %v553_v2 = vsel %vm551_vm5, %v548_v48, %v988_v59 }
 0x1d7   : > { %v523_v50 = vpop.permute.xlu1 %522  ;;  %v498_v51 = vpop.permute.xlu0 %497 }
 0x1d8   : > { %v526_v11 = vsel %vm524_vm7, %v993_v6, %v523_v50 }
 0x1db   : > { %v594_v54 = vpop.permute.xlu1 %593  ;;  %v1002_v58 = vpop.permute.xlu0 %1001 }
 0x1dc   : > { %v602_v56 = vsel %vm601_vm2, %v594_v54, %v979_v53  ;;  %v1003_v16 = vunpack.i.l.bf16 %v1002_v58  ;;  %v1004_v21 = vunpack.i.h.bf16 %v1002_v58  ;;  %v762_v54 = vld [vmem:[%s1261_s3] sm:$0x3f] }
 0x1dd   : > { %664 = vmatpush1.msra.mxu1 %v602_v56 }
 0x1de   : > { %665 = vmatprep.subr.mxu1 %v1026_v7 }
 0x1df   : > { %913 = vmatpush1.msk.msra.mxu1 %vm1175_vm4, %v578_v61  ;;  %v997_v62 = vpop.permute.xlu1 %996  ;;  %v519_v3 = vpop.permute.xlu0 %518 }
 0x1e0   : > { %667 = vmatprep.subr.mxu1 %v1026_v7  ;;  %v998_v13 = vunpack.i.l.bf16 %v997_v62  ;;  %v525_v15 = vsel %vm524_vm7, %v994_v10, %v519_v3  ;;  %v999_v17 = vunpack.i.h.bf16 %v997_v62 }
 0x1e1   : > { %914 = vmatpush1.msk.msra.mxu1 %vm1175_vm4, %v577_v63 }
 0x1e2   : > { %669 = vmatprep.subr.mxu1 %v1026_v7  ;;  %v501_v18 = vsel %vm499_vm8, %v998_v13, %v498_v51 }
 0x1e3   : > { %915 = vmatpush1.msk.msra.mxu1 %vm1183_vm6, %v553_v2  ;;  %v544_v4 = vpop.permute.xlu1 %543  ;;  %v447_v9 = vpop.permute.xlu0 %446 }
 0x1e4   : > { %v552_v5 = vsel %vm551_vm5, %v544_v4, %v989_v1  ;;  %671 = vmatprep.subr.mxu1 %v1026_v7 }
 0x1e5   : > { %916 = vmatpush1.msk.msra.mxu1 %vm1183_vm6, %v552_v5 }
 0x1e6   : > { %673 = vmatprep.subr.mxu1 %v1026_v7 }
 0x1e7   : > { %917 = vmatpush1.msk.msra.mxu1 %vm418_vm1, %v417_v32  ;;  %v472_v8 = vpop.permute.xlu1 %471  ;;  %v468_v19 = vpop.permute.xlu0 %467 }
 0x1e8   : > { %675 = vmatprep.subr.mxu1 %v1026_v7  ;;  %v475_v24 = vsel %vm473_vm9, %v1003_v16, %v472_v8  ;;  %v474_v26 = vsel %vm473_vm9, %v1004_v21, %v468_v19 }
 0x1e9   : > { %918 = vmatpush1.msk.msra.mxu1 %vm418_vm1, %v416_v35  ;;  %v633_v35 = vld [vmem:[%s1260_s2] sm:$0xff] }
 0x1ea   : > { %677 = vmatprep.subr.mxu1 %v1026_v7 }
 0x1eb   : > { %919 = vmatpush1.msk.msra.mxu1 %vm1175_vm4, %v526_v11  ;;  %v1007_v14 = vpop.permute.xlu1 %1006  ;;  %v621_v27 = vpop.permute.xlu0 %620 }
 0x1ec   : > { %679 = vmatprep.subr.mxu1 %v1026_v7  ;;  %v1008_v23 = vunpack.i.l.bf16 %v1007_v14  ;;  %v1009_v28 = vunpack.i.h.bf16 %v1007_v14 }
 0x1ed   : > { %920 = vmatpush1.msk.msra.mxu1 %vm1175_vm4, %v525_v15 }
 0x1ee   : > { %681 = vmatprep.subr.mxu1 %v1026_v7  ;;  %v450_v29 = vsel %vm448_vm10, %v1008_v23, %v447_v9 }
 0x1ef   : > { %v494_v20 = vpop.permute.xlu1 %493  ;;  %921 = vmatpush1.msk.msra.mxu1 %vm1183_vm6, %v501_v18  ;;  %v617_v33 = vpop.permute.xlu0 %616 }
 0x1f0   : > { %v500_v22 = vsel %vm499_vm8, %v999_v17, %v494_v20  ;;  %683 = vmatprep.subr.mxu1 %v1026_v7 }
 0x1f1   : > { %922 = vmatpush1.msk.msra.mxu1 %vm1183_vm6, %v500_v22 }
 0x1f2   : > { %685 = vmatprep.subr.mxu1 %v1026_v7 }
 0x1f3   : > { %v623_v25 = vpop.permute.xlu1 %622  ;;  %686 = vmatpush1.msra.mxu1 %v475_v24 }
 0x1f4   : > { %687 = vmatprep.subr.mxu1 %v1026_v7  ;;  %v626_v32 = vsel %vm624_vm11, %v621_v27, %v623_v25 }
 0x1f5   : > { %688 = vmatpush1.msra.mxu1 %v474_v26 }
 0x1f6   : > { %689 = vmatprep.subr.mxu1 %v1026_v7 }
 0x1f7   : > { %v443_v30 = vpop.permute.xlu1 %442  ;;  %923 = vmatpush1.msk.msra.mxu1 %vm1175_vm4, %v450_v29 }
 0x1f8   : > { %v449_v31 = vsel %vm448_vm10, %v1009_v28, %v443_v30  ;;  %691 = vmatprep.subr.mxu1 %v1026_v7 }
 0x1f9   : > { %924 = vmatpush1.msk.msra.mxu1 %vm1175_vm4, %v449_v31 }
 0x1fa   : > { %721 = vmatprep.subr.mxu1 %v1026_v7 }
 0x1fb   : > { %v619_v34 = vpop.permute.xlu1 %618  ;;  %925 = vmatpush2.msk.msra.mxu1 %vm1183_vm6, %v626_v32 }
 0x1fc   : > { %v625_v36 = vsel %vm624_vm11, %v617_v33, %v619_v34  ;;  %723 = vmatprep.subr.mxu1 %v1026_v7  ;;  %v746_v40 = vpop.permute.xlu0 %745 }
 0x1fd   : > { %926 = vmatpush2.msk.msra.mxu1 %vm1183_vm6, %v625_v36 }
 0x1fe   : > { %726 = vmatmul.mubr.f32.vlgmr.msra.gmra.mxu1 %v633_v35 }
 0x1ff   : > { %908 = vmatprep.mubr.msk.f32.mxu1 %vm310_vm0, %v636_v37 }
 0x201   : > { %v752_v45 = vpop.permute.xlu0 %751 }
 0x202   : > { %731 = vmatmul.mubr.f32.gmra.mxu1 %v635_v38 }
 0x208   : > { %v741_v41 = vpop.permute.xlu1 %740 }
 0x20d   : > { %v756_v47 = vpop.permute.xlu1 %755 }
 0x212   : > { %v767_v55 = vpop.permute.xlu1 %766 }
 0x2be   : > { %v727_v42 = vpop.f32.mrf.mxu1 }
 0x2bf   : > { %v748_v44 = vmul.f32 %v741_v41, %v727_v42 }
 0x2c0   : > { %v729_v43 = vpop.f32.mrf.mxu1 }
 0x2c1   : > { %v758_v50 = vadd.f32 %v752_v45, %v748_v44 }
 0x2c2   : > { %v732_v46 = vpop.f32.mrf.mxu1 }
 0x2c3   : > { %v749_v48 = vmul.f32 %v746_v40, %v732_v46  ;;  %v760_v53 = vmax.f32 %v758_v50, 0.0 }
 0x2c4   : > { %v734_v49 = vpop.f32.mrf.mxu1 }
 0x2c5   : > { %v759_v51 = vadd.f32 %v756_v47, %v749_v48 }
 0x2c7   : > { %v761_v52 = vmax.f32 %v759_v51, 0.0 }
 0x2c9   : > { %942 = vmatpush3.msra.mxu0 %v761_v52 }
 0x2ca   : > { %943 = vmatprep.subr.mxu0 %v1026_v7 }
 0x2cb   : > { %944 = vmatpush3.msra.mxu0 %v760_v53 }
 0x2cc   : > { %946 = vmatmul.mubr.msk.f32.vlgmr.msra.gmra.mxu0 %vm310_vm0, %v762_v54 }
 0x38c   : > { %v838_v56 = vpop.f32.mrf.mxu0 }
 0x38d   : > { %v839_v57 = vadd.f32 %v838_v56, %v767_v55 }
 0x38e   : > { %v947_v58 = vpop.f32.mrf.mxu0 }
 0x38f   : > { %v842_v59 = vadd.f32 %v839_v57, %v1127_v12 }
 0x391   : > { %843 = vst [vmem:[%s276_s21] sm:$0x3f] %v842_v59 }
 0x392 PF: > { %s17_s24 = sadd.s32 1, %s1022_s24  }
 0x393   : > { %p14_p4 = scmp.ge.s32.totalorder %s17_s24, 4  }
 0x395   :  { %16 = sbr.rel (!%p14_p4) target bundleno = 1 (0x1), region = 78 }

// kernel: _lambda_.13
= control target key start
LH: loop header
LB: loop body
LE: loop exit
PB: predicated region body
PF: predicated region fallthrough
CT: control target
= control target key end

     0   :  { %s1200_s27 = smov 0   ;;  %s1397_s0 = inlined_call_operand.vmem [shape: f32[2,16,128], index: 0, kind: input, shape index: {}]   ;;  %s1398_s1 = inlined_call_operand.vmem [shape: f32[16,16], index: 1, kind: input, shape index: {}]   ;;  %s1399_s2 = inlined_call_operand.vmem [shape: f32[16,144], index: 2, kind: input, shape index: {}]   ;;  %s1400_s3 = inlined_call_operand.vmem [shape: f32[4,16], index: 3, kind: input, shape index: {}]   ;;  %s1401_s4 = inlined_call_operand.vmem [shape: f32[4,16], index: 4, kind: input, shape index: {}]   ;;  %s1402_s5 = inlined_call_operand.vmem [shape: f32[16,2], index: 5, kind: input, shape index: {}]   ;;  %s1403_s6 = inlined_call_operand.vmem [shape: f32[16,4], index: 6, kind: input, shape index: {}]   ;;  %s1404_s7 = inlined_call_operand.vmem [shape: f32[4,2], index: 7, kind: input, shape index: {}]   ;;  %s1405_s8 = inlined_call_operand.vmem [shape: f32[2,4,128], index: 8, kind: output, shape index: {}]  }
   0x1 LB: > { %s1002_s28 = sadd.s32 4294967295, %s1139_s27   ;;  %p1006_p0 = scmp.ge.s32.totalorder %s1139_s27, 1  ;;  %s1139_s27 = sphi %s1200_s27, %s18_s27  }
   0x2   : > { %p262_p1 = scmp.lt.s32.totalorder %s1139_s27, 3 }
   0x4   : > { %p263_p2 = pnand %p1006_p0, %p262_p1 }
   0x5   : > { %s1144_s17 = smov (!%p263_p2), 120   ;;  %s1145_s18 = smov (!%p263_p2), 127  }
   0x6   : > { %266 = sbr.rel (%p263_p2) target bundleno = 918 (0x396), region = 52  ;;  %p295_p3 = scmp.lt.s32.totalorder (!%p263_p2), %s1002_s28, 1 }
   0x7   : > { %s1146_s25 = smov (!%p263_p2), 121   ;;  %s1147_s26 = smov (!%p263_p2), 1  }
   0x8   : > { %s1148_s29 = smov (!%p263_p2), 7   ;;  %s1149_s30 = smov (!%p263_p2), 8  }
   0x9   : > { %s1150_s9 = smov (!%p263_p2), 9   ;;  %s1151_s10 = smov (!%p263_p2), 119  }
   0xb   : > { %v310_v0 = vld [vmem:[%s1402_s5 + $0x8] sm:$0xff]  ;;  %v1141_v1 = vmov 1   ;;  %v1142_v2 = vmov 0   ;;  %v309_v3 = vld [vmem:[%s1402_s5] sm:$0xff]  ;;  %vm337_vm0 = vcmask 130048   ;;  %v1143_v7 = vmov 0.0  }
   0xc   : > { %1087 = vset.pattern.permute.xlu1 %v1141_v1  ;;  %1086 = vset.pattern.permute.xlu0 %v1142_v2  ;;  %v1219_v4 = vld [vmem:[%s1403_s6 + $0x8] sm:$0xff]  ;;  %v335_v5 = vld [vmem:[%s1398_s1] sm:$0xff]  ;;  %s1411_s28 = smov (!%p295_p3, %s1002_s28), 1  ;;  %v304_v23 = vlaneseq  ;;  %v1152_v38 = vmov 2   ;;  %v1153_v39 = vmov 3   ;;  %vm628_vm2 = vcmask 982016  }
   0xd   : > { %328 = vperm.xlu1 %1087, %v310_v0   ;;  %318 = vperm.xlu0 %1086, %v310_v0   ;;  %v1230_v6 = vld [vmem:[%s1403_s6] sm:$0xff]  ;;  %s1018_s19 = sshll.u32 %s1411_s28, 4  ;;  %v336_v20 = vld [vmem:[%s1398_s1 + $0x8] sm:$0xff]  ;;  %vm603_vm3 = vcmask 990208   ;;  %vm578_vm5 = vcmask 1039360   ;;  %vm551_vm7 = vcmask 7168  }
   0xe   : > { %1047 = vmatprep.mubr.msk.f32.mxu0 %vm337_vm0, %v335_v5  ;;  %688 = vmatprep.subr.mxu1 %v1143_v7  ;;  %s299_s22 = scalar_lea.vmem %s1397_s0, %s1018_s19  ;;  %v1265_v26 = vand.u32 127, %v304_v23  ;;  %v661_v37 = vld [vmem:[%s1399_s2 + $0x8] sm:$0xff]  ;;  %vm526_vm8 = vcmask 56320   ;;  %vm500_vm9 = vcmask 64512   ;;  %vm475_vm10 = vcmask 72704  }
   0xf   : > { %v1252_v8 = vld [vmem:[%s299_s22 + $0x8] sm:$0xff]  ;;  %v1255_v12 = vld [vmem:[%s299_s22] sm:$0xff]  ;;  %1012 = vmatprep.mubr.msk.f32.mxu1 %vm337_vm0, %v661_v37  ;;  %vm651_vm11 = vcmask 973824   ;;  %vm1154_vm12 = vmmov 0  }
  0x10   : > { %vm445_vm1 = vcmp.lt.s32.totalorder %v1265_v26, 64  ;;  %v306_v52 = vand.u32 7, %v1265_v26  ;;  %v660_v37 = vld [vmem:[%s1399_s2] sm:$0xff] }
  0x11   : > { %324 = vperm.xlu1 %1087, %v309_v3   ;;  %313 = vperm.xlu0 %1086, %v309_v3  }
  0x12   : > { %vm1303_vm4 = vcmp.ge.s32.totalorder %v306_v52, 1  ;;  %vm1311_vm6 = vcmp.lt.s32.totalorder %v306_v52, 7 }
  0x15   : > { %428 = vperm.xlu0 %1086, %v1219_v4   ;;  %1088 = vset.pattern.permute.xlu1 %v1142_v2 }
  0x16   : > { %423 = vperm.xlu1 %1088, %v1230_v6  }
  0x19   : > { %1089 = vset.pattern.permute.xlu0 %v1141_v1 }
  0x1a   : > { %438 = vperm.xlu0 %1089, %v1219_v4   ;;  %1090 = vset.pattern.permute.xlu1 %v1141_v1 }
  0x1b   : > { %434 = vperm.xlu1 %1090, %v1230_v6  }
  0x1e   : > { %1092 = vrot.lane.b32.xlu0 %v1143_v7, %s1144_s17 }
  0x1f   : > { %1097 = vrot.lane.b32.xlu1 %v1143_v7, %s1146_s25  ;;  %1126 = vset.pattern.permute.xlu0 %v1152_v38 }
  0x20   : > { %1127 = vset.pattern.permute.xlu1 %v1152_v38 }
  0x22   : > { %1102 = vrot.lane.b32.xlu0 %v1143_v7, %s1145_s18 }
  0x26   : > { %1107 = vrot.lane.b32.xlu0 %v1143_v7, %s1147_s26 }
  0x88   : > { %v329_v9 = vpop.permute.xlu1 %328  ;;  %v319_v10 = vpop.permute.xlu0 %318 }
  0x89   : > { %v322_v11 = vmul.f32 %v319_v10, %v1252_v8 }
  0x8b   : > { %v332_v13 = vadd.f32 %v329_v9, %v322_v11 }
  0x8c   : > { %v314_v14 = vpop.permute.xlu0 %313  ;;  %v325_v17 = vpop.permute.xlu1 %324 }
  0x8d   : > { %v321_v15 = vmul.f32 %v314_v14, %v1255_v12  ;;  %v334_v16 = vmax.f32 %v332_v13, 0.0 }
  0x8f   : > { %v331_v18 = vadd.f32 %v325_v17, %v321_v15  ;;  %1043 = vmatprep.subr.mxu0 %v334_v16 }
  0x90   : > { %1044 = vmatpush3.msra.mxu0 %v334_v16  ;;  %v429_v21 = vpop.permute.xlu0 %428 }
  0x91   : > { %v333_v19 = vmax.f32 %v331_v18, 0.0  ;;  %v424_v22 = vpop.permute.xlu1 %423 }
  0x93   : > { %1045 = vmatprep.subr.mxu0 %v333_v19 }
  0x94   : > { %1046 = vmatpush3.msra.mxu0 %v333_v19 }
  0x95   : > { %1048 = vmatmul.mubr.msk.f32.vlgmr.msra.gmra.mxu0 %vm337_vm0, %v336_v20  ;;  %1050 = vmatprep.subr.mxu0 %v1143_v7  ;;  %v439_v25 = vpop.permute.xlu0 %438 }
  0x96   : > { %v435_v29 = vpop.permute.xlu1 %434  ;;  %1054 = vmatprep.mubr.msk.f32.mxu0 %vm1154_vm12, %v1143_v7 }
  0x99   : > { %v1093_v40 = vpop.permute.xlu0 %1092 }
  0x9a   : > { %v1098_v42 = vpop.permute.xlu1 %1097  ;;  %v1094_v44 = vunpack.i.l.bf16 %v1093_v40  ;;  %v1095_v53 = vunpack.i.h.bf16 %v1093_v40  ;;  %v662_v40 = vld [vmem:[%s1399_s2 + $0x10] sm:$0xff] }
  0x9b   : > { %v1099_v55 = vunpack.i.l.bf16 %v1098_v42  ;;  %v1100_v60 = vunpack.i.h.bf16 %v1098_v42 }
  0x9d   : > { %v1103_v41 = vpop.permute.xlu0 %1102 }
  0x9e   : > { %v1104_v59 = vunpack.i.l.bf16 %v1103_v41 }
  0xa1   : > { %v1108_v43 = vpop.permute.xlu0 %1107 }
  0xa2   : > { %v1109_v9 = vunpack.i.l.bf16 %v1108_v43  ;;  %v1110_v13 = vunpack.i.h.bf16 %v1108_v43 }
 0x155   : > { %v1049_v24 = vpop.f32.mrf.mxu0 }
 0x156   : > { %v432_v27 = vmul.f32 %v1049_v24, %v429_v21 }
 0x157   : > { %v410_v28 = vpop.f32.mrf.mxu0 }
 0x158   : > { %v1267_v30 = vadd.f32 %v439_v25, %v432_v27  ;;  %v431_v31 = vmul.f32 %v424_v22, %v410_v28 }
 0x15a   : > { %v444_v32 = vmax.f32 %v1267_v30, 0.0  ;;  %v1271_v33 = vadd.f32 %v435_v29, %v431_v31 }
 0x15c   : > { %v449_v34 = vsel %vm445_vm1, %v444_v32, 0.0  ;;  %v443_v35 = vmax.f32 %v1271_v33, 0.0 }
 0x15d   : > { %599 = vrot.lane.b32.xlu0 %v449_v34, %s1146_s25  ;;  %624 = vrot.lane.b32.xlu1 %v449_v34, %s1144_s17 }
 0x15e   : > { %v448_v36 = vsel %vm445_vm1, %v443_v35, 0.0 }
 0x161   : > { %574 = vrot.lane.b32.xlu1 %v449_v34, %s1145_s18  ;;  %595 = vrot.lane.b32.xlu0 %v448_v36, %s1146_s25  ;;  %s1009_s25 = sshll.u32 %s1411_s28, 2 }
 0x165   : > { %549 = vrot.lane.b32.xlu1 %v449_v34, %s1147_s26  ;;  %524 = vrot.lane.b32.xlu0 %v449_v34, %s1148_s29 }
 0x169   : > { %1117 = vrot.lane.b32.xlu0 %v1143_v7, %s1149_s30  ;;  %620 = vrot.lane.b32.xlu1 %v448_v36, %s1144_s17 }
 0x16d   : > { %545 = vrot.lane.b32.xlu0 %v448_v36, %s1147_s26  ;;  %1112 = vrot.lane.b32.xlu1 %v1143_v7, %s1148_s29 }
 0x171   : > { %473 = vrot.lane.b32.xlu0 %v449_v34, %s1150_s9  ;;  %570 = vrot.lane.b32.xlu1 %v448_v36, %s1145_s18 }
 0x175   : > { %494 = vrot.lane.b32.xlu0 %v448_v36, %s1149_s30  ;;  %498 = vrot.lane.b32.xlu1 %v449_v34, %s1149_s30  ;;  %s303_s30 = scalar_lea.vmem %s1405_s8, %s1009_s25 }
 0x179   : > { %647 = vrot.lane.b32.xlu0 %v449_v34, %s1151_s10  ;;  %1122 = vrot.lane.b32.xlu1 %v1143_v7, %s1150_s9 }
 0x17d   : > { %643 = vrot.lane.b32.xlu0 %v448_v36, %s1151_s10  ;;  %520 = vrot.lane.b32.xlu1 %v448_v36, %s1148_s29 }
 0x181   : > { %649 = vrot.lane.b32.xlu1 %v1143_v7, %s1151_s10  ;;  %772 = vperm.xlu0 %1126, %v1219_v4  }
 0x185   : > { %469 = vrot.lane.b32.xlu1 %v448_v36, %s1150_s9  ;;  %1129 = vset.pattern.permute.xlu0 %v1153_v39 }
 0x186   : > { %778 = vperm.xlu0 %1129, %v1230_v6  }
 0x189   : > { %645 = vrot.lane.b32.xlu1 %v1143_v7, %s1151_s10 }
 0x18a   : > { %1132 = vset.pattern.permute.xlu0 %v1141_v1 }
 0x18d   : > { %767 = vperm.xlu1 %1127, %v1230_v6  }
 0x191   : > { %1128 = vset.pattern.permute.xlu1 %v1153_v39  ;;  %v663_v39 = vld [vmem:[%s1399_s2 + $0x18] sm:$0xff] }
 0x192   : > { %782 = vperm.xlu1 %1128, %v1219_v4  }
 0x196   : > { %1130 = vset.pattern.permute.xlu1 %v1142_v2  ;;  %v1105_v2 = vunpack.i.h.bf16 %v1103_v41  ;;  %v790_v41 = vld [vmem:[%s1404_s7] sm:$0xf] }
 0x197   : > { %793 = vperm.xlu1 %1130, %v790_v41  }
 0x19b   : > { %1131 = vset.pattern.permute.xlu1 %v1141_v1  ;;  %v789_v1 = vld [vmem:[%s1400_s3] sm:$0xf] }
 0x19c   : > { %871 = vperm.xlu1 %1131, %v790_v41  }
 0x1cf   : > { %v600_v45 = vpop.permute.xlu0 %599  ;;  %v625_v46 = vpop.permute.xlu1 %624 }
 0x1d0   : > { %v630_v47 = vsel %vm628_vm2, %v625_v46, %v1094_v44  ;;  %v605_v61 = vsel %vm603_vm3, %v600_v45, %v1099_v55 }
 0x1d1   : > { %689 = vmatpush1.msra.mxu1 %v630_v47 }
 0x1d2   : > { %690 = vmatprep.subr.mxu1 %v1143_v7 }
 0x1d3   : > { %v575_v48 = vpop.permute.xlu1 %574  ;;  %v596_v49 = vpop.permute.xlu0 %595 }
 0x1d4   : > { %v604_v63 = vsel %vm603_vm3, %v596_v49, %v1100_v60  ;;  %v580_v3 = vsel %vm578_vm5, %v575_v48, %v1104_v59 }
 0x1d7   : > { %v550_v50 = vpop.permute.xlu1 %549  ;;  %v525_v51 = vpop.permute.xlu0 %524 }
 0x1d8   : > { %v553_v14 = vsel %vm551_vm7, %v1109_v9, %v550_v50 }
 0x1db   : > { %v621_v54 = vpop.permute.xlu1 %620  ;;  %v1118_v58 = vpop.permute.xlu0 %1117 }
 0x1dc   : > { %v629_v56 = vsel %vm628_vm2, %v621_v54, %v1095_v53  ;;  %v1119_v18 = vunpack.i.l.bf16 %v1118_v58  ;;  %v1120_v23 = vunpack.i.h.bf16 %v1118_v58 }
 0x1dd   : > { %691 = vmatpush1.msra.mxu1 %v629_v56  ;;  %v869_v56 = vld [vmem:[%s1401_s4] sm:$0xf] }
 0x1de   : > { %692 = vmatprep.subr.mxu1 %v1143_v7 }
 0x1df   : > { %1019 = vmatpush1.msk.msra.mxu1 %vm1303_vm4, %v605_v61  ;;  %v1113_v62 = vpop.permute.xlu1 %1112  ;;  %v546_v4 = vpop.permute.xlu0 %545 }
 0x1e0   : > { %694 = vmatprep.subr.mxu1 %v1143_v7  ;;  %v1114_v15 = vunpack.i.l.bf16 %v1113_v62  ;;  %v552_v17 = vsel %vm551_vm7, %v1110_v13, %v546_v4  ;;  %v1115_v19 = vunpack.i.h.bf16 %v1113_v62 }
 0x1e1   : > { %1020 = vmatpush1.msk.msra.mxu1 %vm1303_vm4, %v604_v63 }
 0x1e2   : > { %696 = vmatprep.subr.mxu1 %v1143_v7  ;;  %v528_v20 = vsel %vm526_vm8, %v1114_v15, %v525_v51 }
 0x1e3   : > { %1021 = vmatpush1.msk.msra.mxu1 %vm1311_vm6, %v580_v3  ;;  %v571_v5 = vpop.permute.xlu1 %570  ;;  %v474_v11 = vpop.permute.xlu0 %473 }
 0x1e4   : > { %v579_v6 = vsel %vm578_vm5, %v571_v5, %v1105_v2  ;;  %698 = vmatprep.subr.mxu1 %v1143_v7 }
 0x1e5   : > { %1022 = vmatpush1.msk.msra.mxu1 %vm1311_vm6, %v579_v6 }
 0x1e6   : > { %700 = vmatprep.subr.mxu1 %v1143_v7 }
 0x1e7   : > { %1023 = vmatpush1.msk.msra.mxu1 %vm445_vm1, %v444_v32  ;;  %v499_v10 = vpop.permute.xlu1 %498  ;;  %v495_v21 = vpop.permute.xlu0 %494 }
 0x1e8   : > { %702 = vmatprep.subr.mxu1 %v1143_v7  ;;  %v502_v26 = vsel %vm500_vm9, %v1119_v18, %v499_v10  ;;  %v501_v28 = vsel %vm500_vm9, %v1120_v23, %v495_v21 }
 0x1e9   : > { %1024 = vmatpush1.msk.msra.mxu1 %vm445_vm1, %v443_v35 }
 0x1ea   : > { %704 = vmatprep.subr.mxu1 %v1143_v7 }
 0x1eb   : > { %1025 = vmatpush1.msk.msra.mxu1 %vm1303_vm4, %v553_v14  ;;  %v1123_v16 = vpop.permute.xlu1 %1122  ;;  %v648_v29 = vpop.permute.xlu0 %647 }
 0x1ec   : > { %706 = vmatprep.subr.mxu1 %v1143_v7  ;;  %v1124_v25 = vunpack.i.l.bf16 %v1123_v16  ;;  %v1125_v30 = vunpack.i.h.bf16 %v1123_v16 }
 0x1ed   : > { %1026 = vmatpush1.msk.msra.mxu1 %vm1303_vm4, %v552_v17 }
 0x1ee   : > { %708 = vmatprep.subr.mxu1 %v1143_v7  ;;  %v477_v31 = vsel %vm475_vm10, %v1124_v25, %v474_v11 }
 0x1ef   : > { %v521_v22 = vpop.permute.xlu1 %520  ;;  %1027 = vmatpush1.msk.msra.mxu1 %vm1311_vm6, %v528_v20  ;;  %v644_v35 = vpop.permute.xlu0 %643 }
 0x1f0   : > { %v527_v24 = vsel %vm526_vm8, %v1115_v19, %v521_v22  ;;  %710 = vmatprep.subr.mxu1 %v1143_v7 }
 0x1f1   : > { %1028 = vmatpush1.msk.msra.mxu1 %vm1311_vm6, %v527_v24 }
 0x1f2   : > { %712 = vmatprep.subr.mxu1 %v1143_v7 }
 0x1f3   : > { %v650_v27 = vpop.permute.xlu1 %649  ;;  %713 = vmatpush1.msra.mxu1 %v502_v26 }
 0x1f4   : > { %714 = vmatprep.subr.mxu1 %v1143_v7  ;;  %v653_v34 = vsel %vm651_vm11, %v648_v29, %v650_v27 }
 0x1f5   : > { %715 = vmatpush1.msra.mxu1 %v501_v28 }
 0x1f6   : > { %716 = vmatprep.subr.mxu1 %v1143_v7 }
 0x1f7   : > { %v470_v32 = vpop.permute.xlu1 %469  ;;  %1029 = vmatpush1.msk.msra.mxu1 %vm1303_vm4, %v477_v31 }
 0x1f8   : > { %v476_v33 = vsel %vm475_vm10, %v1125_v30, %v470_v32  ;;  %718 = vmatprep.subr.mxu1 %v1143_v7 }
 0x1f9   : > { %1030 = vmatpush1.msk.msra.mxu1 %vm1303_vm4, %v476_v33 }
 0x1fa   : > { %748 = vmatprep.subr.mxu1 %v1143_v7 }
 0x1fb   : > { %v646_v36 = vpop.permute.xlu1 %645  ;;  %1031 = vmatpush2.msk.msra.mxu1 %vm1311_vm6, %v653_v34 }
 0x1fc   : > { %v652_v38 = vsel %vm651_vm11, %v644_v35, %v646_v36  ;;  %750 = vmatprep.subr.mxu1 %v1143_v7  ;;  %v773_v42 = vpop.permute.xlu0 %772 }
 0x1fd   : > { %1032 = vmatpush2.msk.msra.mxu1 %vm1311_vm6, %v652_v38 }
 0x1fe   : > { %753 = vmatmul.mubr.f32.vlgmr.msra.gmra.mxu1 %v660_v37 }
 0x1ff   : > { %1013 = vmatprep.mubr.msk.f32.mxu1 %vm337_vm0, %v663_v39 }
 0x201   : > { %v779_v47 = vpop.permute.xlu0 %778 }
 0x202   : > { %758 = vmatmul.mubr.f32.gmra.mxu1 %v662_v40 }
 0x208   : > { %v768_v43 = vpop.permute.xlu1 %767 }
 0x20d   : > { %v783_v49 = vpop.permute.xlu1 %782 }
 0x212   : > { %v794_v57 = vpop.permute.xlu1 %793 }
 0x217   : > { %v872_v60 = vpop.permute.xlu1 %871 }
 0x2be   : > { %v754_v44 = vpop.f32.mrf.mxu1 }
 0x2bf   : > { %v775_v46 = vmul.f32 %v768_v43, %v754_v44 }
 0x2c0   : > { %v756_v45 = vpop.f32.mrf.mxu1 }
 0x2c1   : > { %v785_v52 = vadd.f32 %v779_v47, %v775_v46 }
 0x2c2   : > { %v759_v48 = vpop.f32.mrf.mxu1 }
 0x2c3   : > { %v776_v50 = vmul.f32 %v773_v42, %v759_v48  ;;  %v787_v55 = vmax.f32 %v785_v52, 0.0 }
 0x2c4   : > { %v761_v51 = vpop.f32.mrf.mxu1 }
 0x2c5   : > { %v786_v53 = vadd.f32 %v783_v49, %v776_v50 }
 0x2c7   : > { %v788_v54 = vmax.f32 %v786_v53, 0.0 }
 0x2c9   : > { %1051 = vmatpush3.msra.mxu0 %v788_v54 }
 0x2ca   : > { %1052 = vmatprep.subr.mxu0 %v1143_v7 }
 0x2cb   : > { %1053 = vmatpush3.msra.mxu0 %v787_v55 }
 0x2cc   : > { %1055 = vmatmul.mubr.msk.f32.vlgmr.msra.gmra.mxu0 %vm337_vm0, %v789_v1  ;;  %1057 = vmatprep.subr.mxu0 %v1143_v7 }
 0x2cd   : > { %1058 = vmatpush3.msra.mxu0 %v1252_v8  ;;  %1061 = vmatprep.mubr.msk.f32.mxu0 %vm1154_vm12, %v1143_v7 }
 0x2ce   : > { %1059 = vmatprep.subr.mxu0 %v1143_v7 }
 0x2cf   : > { %1060 = vmatpush3.msra.mxu0 %v1255_v12 }
 0x2d0   : > { %1062 = vmatmul.mubr.msk.f32.vlgmr.msra.gmra.mxu0 %vm337_vm0, %v869_v56 }
 0x38c   : > { %v865_v58 = vpop.f32.mrf.mxu0 }
 0x38d   : > { %v866_v8 = vadd.f32 %v865_v58, %v794_v57 }
 0x38e   : > { %v1056_v59 = vpop.f32.mrf.mxu0 }
 0x390   : > { %v943_v61 = vpop.f32.mrf.mxu0 }
 0x391   : > { %v944_v62 = vadd.f32 %v943_v61, %v872_v60 }
 0x392   : > { %v1063_v63 = vpop.f32.mrf.mxu0 }
 0x393   : > { %v947_v0 = vadd.f32 %v944_v62, %v866_v8 }
 0x395   : > { %948 = vst [vmem:[%s303_s30] sm:$0xf] %v947_v0 }
 0x396 PF: > { %s18_s27 = sadd.s32 1, %s1139_s27  }
 0x397   : > { %p15_p4 = scmp.ge.s32.totalorder %s18_s27, 4  }
 0x399   :  { %17 = sbr.rel (!%p15_p4) target bundleno = 1 (0x1), region = 82 }

// kernel: _lambda_.7
= control target key start
LH: loop header
LB: loop body
LE: loop exit
PB: predicated region body
PF: predicated region fallthrough
CT: control target
= control target key end

     0   :  { %s1252_s24 = smov 0   ;;  %s1539_s0 = inlined_call_operand.vmem [shape: f32[2,16,256], index: 0, kind: input, shape index: {}]   ;;  %s1540_s1 = inlined_call_operand.vmem [shape: f32[16,16], index: 1, kind: input, shape index: {}]   ;;  %s1541_s2 = inlined_call_operand.vmem [shape: f32[16,144], index: 2, kind: input, shape index: {}]   ;;  %s1542_s3 = inlined_call_operand.vmem [shape: f32[4,16], index: 3, kind: input, shape index: {}]   ;;  %s1543_s4 = inlined_call_operand.vmem [shape: f32[16,2], index: 4, kind: input, shape index: {}]   ;;  %s1544_s5 = inlined_call_operand.vmem [shape: f32[16,4], index: 5, kind: input, shape index: {}]   ;;  %s1545_s6 = inlined_call_operand.vmem [shape: f32[4,2], index: 6, kind: input, shape index: {}]   ;;  %s1546_s7 = inlined_call_operand.vmem [shape: f32[2,4,256], index: 7, kind: output, shape index: {}]  }
   0x1 LB: > { %s1079_s25 = sadd.s32 4294967295, %s1197_s24   ;;  %p1083_p0 = scmp.ge.s32.totalorder %s1197_s24, 1  ;;  %s1197_s24 = sphi %s1252_s24, %s17_s24  }
   0x2   : > { %p237_p1 = scmp.lt.s32.totalorder %s1197_s24, 3 }
   0x4   : > { %p238_p2 = pnand %p1083_p0, %p237_p1 }
   0x5   : > { %s1202_s11 = smov (!%p238_p2), 112   ;;  %s1203_s12 = smov (!%p238_p2), 127  }
   0x6   : > { %241 = sbr.rel (%p238_p2) target bundleno = 945 (0x3b1), region = 48  ;;  %s1204_s13 = smov (!%p238_p2), 113  }
   0x7   : > { %p269_p3 = scmp.lt.s32.totalorder (!%p238_p2), %s1079_s25, 1  ;;  %s1205_s22 = smov (!%p238_p2), 15  }
   0x8   : > { %s1206_s23 = smov (!%p238_p2), 1   ;;  %s1207_s26 = smov (!%p238_p2), 16  }
   0x9   : > { %s1208_s27 = smov (!%p238_p2), 17   ;;  %s1209_s28 = smov (!%p238_p2), 111  }
   0xb   : > { %v289_v0 = vld [vmem:[%s1543_s4 + $0x8] sm:$0xff]  ;;  %v1199_v1 = vmov 1   ;;  %v1200_v2 = vmov 0   ;;  %v288_v3 = vld [vmem:[%s1543_s4] sm:$0xff]  ;;  %v1201_v5 = vmov 0.0   ;;  %s1556_s25 = smov (!%p269_p3, %s1079_s25), 1 }
   0xc   : > { %1143 = vset.pattern.permute.xlu1 %v1199_v1  ;;  %1142 = vset.pattern.permute.xlu0 %v1200_v2  ;;  %v1270_v4 = vld [vmem:[%s1544_s5 + $0x8] sm:$0xff]  ;;  %v1278_v6 = vld [vmem:[%s1544_s5] sm:$0xff]  ;;  %s1095_s14 = sshll.u32 %s1556_s25, 5  ;;  %vm322_vm0 = vcmask 130048   ;;  %v1210_v50 = vmov 2   ;;  %v1211_v51 = vmov 3  }
   0xd   : > { %309 = vperm.xlu1 %1143, %v289_v0   ;;  %297 = vperm.xlu0 %1142, %v289_v0   ;;  %s273_s17 = scalar_lea.vmem %s1539_s0, %s1095_s14  ;;  %v320_v27 = vld [vmem:[%s1540_s1] sm:$0xff]  ;;  %v321_v28 = vld [vmem:[%s1540_s1 + $0x8] sm:$0xff]  ;;  %vm727_vm1 = vcmask 916480   ;;  %vm686_vm3 = vcmask 924672   ;;  %vm645_vm6 = vcmask 1039360   ;;  %vm600_vm8 = vcmask 7168  }
   0xe   : > { %393 = vmatprep.mubr.f32.mxu0 %v1201_v5  ;;  %v286_v7 = vld [vmem:[%s273_s17 + $0x10] sm:$0xff]  ;;  %v287_v8 = vld [vmem:[%s273_s17 + $0x18] sm:$0xff]  ;;  %v1299_v13 = vld [vmem:[%s273_s17] sm:$0xff]  ;;  %vm559_vm9 = vcmask 121856   ;;  %vm476_vm10 = vcmask 138240   ;;  %vm764_vm11 = vcmask 908288  }
   0xf   : > { %v1301_v14 = vld [vmem:[%s273_s17 + $0x8] sm:$0xff]  ;;  %s1096_s18 = sshll.u32 %s1556_s25, 3 }
  0x10   : > { %v782_v49 = vld [vmem:[%s1541_s2 + $0x8] sm:$0xff]  ;;  %s278_s21 = scalar_lea.vmem %s1546_s7, %s1096_s18 }
  0x11   : > { %305 = vperm.xlu1 %1143, %v288_v3   ;;  %292 = vperm.xlu0 %1142, %v288_v3   ;;  %v279_v3 = vlaneseq }
  0x12   : > { %1090 = vmatprep.mubr.msk.f32.mxu1 %vm322_vm0, %v782_v49 }
  0x15   : > { %415 = vperm.xlu0 %1142, %v1270_v4   ;;  %1144 = vset.pattern.permute.xlu1 %v1200_v2 }
  0x16   : > { %410 = vperm.xlu1 %1144, %v1278_v6  }
  0x19   : > { %1145 = vset.pattern.permute.xlu0 %v1199_v1 }
  0x1a   : > { %427 = vperm.xlu0 %1145, %v1270_v4   ;;  %1146 = vset.pattern.permute.xlu1 %v1199_v1 }
  0x1b   : > { %423 = vperm.xlu1 %1146, %v1278_v6  }
  0x1e   : > { %1148 = vrot.lane.b32.xlu0 %v1201_v5, %s1202_s11 }
  0x1f   : > { %1153 = vrot.lane.b32.xlu1 %v1201_v5, %s1204_s13  ;;  %1188 = vset.pattern.permute.xlu0 %v1210_v50 }
  0x20   : > { %1187 = vset.pattern.permute.xlu1 %v1210_v50 }
  0x22   : > { %1158 = vrot.lane.b32.xlu0 %v1201_v5, %s1203_s12 }
  0x23   : > { %1168 = vrot.lane.b32.xlu1 %v1201_v5, %s1205_s22 }
  0x26   : > { %1163 = vrot.lane.b32.xlu0 %v1201_v5, %s1206_s23 }
  0x88   : > { %v310_v9 = vpop.permute.xlu1 %309  ;;  %v298_v10 = vpop.permute.xlu0 %297 }
  0x89   : > { %v302_v11 = vmul.f32 %v298_v10, %v286_v7  ;;  %v303_v12 = vmul.f32 %v298_v10, %v287_v8 }
  0x8b   : > { %v315_v15 = vadd.f32 %v310_v9, %v303_v12  ;;  %v314_v16 = vadd.f32 %v310_v9, %v302_v11 }
  0x8c   : > { %v293_v17 = vpop.permute.xlu0 %292  ;;  %v306_v22 = vpop.permute.xlu1 %305 }
  0x8d   : > { %v300_v18 = vmul.f32 %v293_v17, %v1299_v13  ;;  %v301_v19 = vmul.f32 %v293_v17, %v1301_v14  ;;  %v319_v20 = vmax.f32 %v315_v15, 0.0  ;;  %v318_v21 = vmax.f32 %v314_v16, 0.0 }
  0x8f   : > { %v312_v23 = vadd.f32 %v306_v22, %v300_v18  ;;  %v313_v24 = vadd.f32 %v306_v22, %v301_v19  ;;  %357 = vmatprep.subr.mxu0 %v319_v20 }
  0x90   : > { %358 = vmatpush1.msra.mxu0 %v318_v21  ;;  %v416_v39 = vpop.permute.xlu0 %415 }
  0x91   : > { %v317_v25 = vmax.f32 %v313_v24, 0.0  ;;  %v316_v26 = vmax.f32 %v312_v23, 0.0  ;;  %v411_v29 = vpop.permute.xlu1 %410  ;;  %v781_v24 = vld [vmem:[%s1541_s2] sm:$0xff] }
  0x93   : > { %359 = vmatprep.subr.mxu0 %v317_v25 }
  0x94   : > { %360 = vmatpush1.msra.mxu0 %v316_v26 }
  0x95   : > { %1088 = vmatmul.mubr.msk.f32.vlgmr.msra.gmra.mxu0 %vm322_vm0, %v320_v27  ;;  %v428_v42 = vpop.permute.xlu0 %427 }
  0x96   : > { %399 = vmatprep.mubr.f32.mxu0 %v1201_v5  ;;  %v424_v31 = vpop.permute.xlu1 %423 }
  0x99   : > { %1089 = vmatmul.mubr.msk.f32.gmra.mxu0 %vm322_vm0, %v321_v28  ;;  %v1149_v52 = vpop.permute.xlu0 %1148  ;;  %v937_v28 = vld [vmem:[%s1545_s6] sm:$0xf] }
  0x9a   : > { %1010 = vmatprep.mubr.f32.mxu0 %v1201_v5  ;;  %v1154_v53 = vpop.permute.xlu1 %1153  ;;  %v1150_v12 = vunpack.i.l.bf16 %v1149_v52  ;;  %v1151_v19 = vunpack.i.h.bf16 %v1149_v52 }
  0x9b   : > { %v1155_v22 = vunpack.i.l.bf16 %v1154_v53 }
  0x9d   : > { %v1391_v54 = vpop.permute.xlu0 %1158 }
  0x9e   : > { %v1393_v55 = vpop.permute.xlu1 %1168 }
  0xa1   : > { %v1395_v56 = vpop.permute.xlu0 %1163 }
  0xa2   : > { %v1165_v50 = vunpack.i.l.bf16 %v1395_v56 }
 0x155   : > { %v395_v30 = vpop.f32.mrf.mxu0 }
 0x156   : > { %v418_v32 = vmul.f32 %v411_v29, %v395_v30 }
 0x157   : > { %v397_v33 = vpop.f32.mrf.mxu0 }
 0x158   : > { %v430_v34 = vadd.f32 %v424_v31, %v418_v32  ;;  %v419_v36 = vmul.f32 %v411_v29, %v397_v33  ;;  %v1156_v29 = vunpack.i.h.bf16 %v1154_v53  ;;  %v1160_v32 = vunpack.i.l.bf16 %v1391_v54 }
 0x159   : > { %v401_v40 = vpop.f32.mrf.mxu0 }
 0x15a   : > { %v1319_v35 = vmax.f32 %v430_v34, 0.0  ;;  %v431_v37 = vadd.f32 %v424_v31, %v419_v36  ;;  %v420_v41 = vmul.f32 %v416_v39, %v401_v40 }
 0x15b   : > { %v403_v45 = vpop.f32.mrf.mxu0 }
 0x15c   : > { %674 = vrot.lane.b32.xlu0 %v1319_v35, %s1204_s13  ;;  %715 = vrot.lane.b32.xlu1 %v1319_v35, %s1202_s11  ;;  %v1329_v38 = vmax.f32 %v431_v37, 0.0  ;;  %v432_v43 = vadd.f32 %v428_v42, %v420_v41  ;;  %v421_v46 = vmul.f32 %v416_v39, %v403_v45  ;;  %v1161_v41 = vunpack.i.h.bf16 %v1391_v54 }
 0x15d   : > { %v1166_v54 = vunpack.i.h.bf16 %v1395_v56 }
 0x15e   : > { %v1343_v44 = vmax.f32 %v432_v43, 0.0  ;;  %v433_v47 = vadd.f32 %v428_v42, %v421_v46 }
 0x160   : > { %549 = vrot.lane.b32.xlu0 %v1319_v35, %s1205_s22  ;;  %633 = vrot.lane.b32.xlu1 %v1319_v35, %s1203_s12  ;;  %v1356_v48 = vmax.f32 %v433_v47, 0.0 }
 0x164   : > { %590 = vrot.lane.b32.xlu1 %v1319_v35, %s1206_s23  ;;  %717 = vrot.lane.b32.xlu0 %v1329_v38, %s1202_s11 }
 0x168   : > { %676 = vrot.lane.b32.xlu1 %v1329_v38, %s1204_s13  ;;  %635 = vrot.lane.b32.xlu0 %v1329_v38, %s1203_s12 }
 0x16c   : > { %551 = vrot.lane.b32.xlu1 %v1329_v38, %s1205_s22  ;;  %592 = vrot.lane.b32.xlu0 %v1329_v38, %s1206_s23 }
 0x170   : > { %680 = vrot.lane.b32.xlu0 %v1343_v44, %s1204_s13  ;;  %721 = vrot.lane.b32.xlu1 %v1343_v44, %s1202_s11 }
 0x174   : > { %596 = vrot.lane.b32.xlu0 %v1343_v44, %s1206_s23  ;;  %639 = vrot.lane.b32.xlu1 %v1343_v44, %s1203_s12 }
 0x178   : > { %513 = vrot.lane.b32.xlu0 %v1343_v44, %s1207_s26  ;;  %555 = vrot.lane.b32.xlu1 %v1343_v44, %s1205_s22 }
 0x17c   : > { %682 = vrot.lane.b32.xlu0 %v1356_v48, %s1204_s13  ;;  %723 = vrot.lane.b32.xlu1 %v1356_v48, %s1202_s11 }
 0x180   : > { %1173 = vrot.lane.b32.xlu0 %v1201_v5, %s1207_s26  ;;  %507 = vrot.lane.b32.xlu1 %v1319_v35, %s1207_s26 }
 0x184   : > { %509 = vrot.lane.b32.xlu0 %v1329_v38, %s1207_s26  ;;  %641 = vrot.lane.b32.xlu1 %v1356_v48, %s1203_s12 }
 0x188   : > { %466 = vrot.lane.b32.xlu0 %v1319_v35, %s1208_s27  ;;  %472 = vrot.lane.b32.xlu1 %v1343_v44, %s1208_s27 }
 0x18c   : > { %557 = vrot.lane.b32.xlu0 %v1356_v48, %s1205_s22  ;;  %598 = vrot.lane.b32.xlu1 %v1356_v48, %s1206_s23 }
 0x190   : > { %758 = vrot.lane.b32.xlu0 %v1343_v44, %s1209_s28  ;;  %1178 = vrot.lane.b32.xlu1 %v1201_v5, %s1208_s27 }
 0x194   : > { %474 = vrot.lane.b32.xlu0 %v1356_v48, %s1208_s27  ;;  %515 = vrot.lane.b32.xlu1 %v1356_v48, %s1207_s26 }
 0x198   : > { %760 = vrot.lane.b32.xlu0 %v1356_v48, %s1209_s28  ;;  %468 = vrot.lane.b32.xlu1 %v1329_v38, %s1208_s27 }
 0x19c   : > { %752 = vrot.lane.b32.xlu0 %v1319_v35, %s1209_s28  ;;  %1183 = vrot.lane.b32.xlu1 %v1201_v5, %s1209_s28 }
 0x1a0   : > { %754 = vrot.lane.b32.xlu1 %v1329_v38, %s1209_s28  ;;  %908 = vperm.xlu0 %1188, %v1278_v6  }
 0x1a4   : > { %913 = vperm.xlu1 %1187, %v1270_v4   ;;  %1190 = vset.pattern.permute.xlu0 %v1200_v2 }
 0x1a5   : > { %940 = vperm.xlu0 %1190, %v937_v28  }
 0x1a8   : > { %1189 = vset.pattern.permute.xlu1 %v1211_v51 }
 0x1a9   : > { %925 = vperm.xlu1 %1189, %v1270_v4  }
 0x1ad   : > { %921 = vperm.xlu1 %1189, %v1278_v6   ;;  %v280_v6 = vand.u32 127, %v279_v3 }
 0x1af   : > { %v281_v9 = vadd.s32 128, %v280_v6  ;;  %v282_v18 = vand.u32 15, %v280_v6 }
 0x1b1   : > { %v283_v15 = vand.u32 15, %v281_v9  ;;  %vm1419_vm4 = vcmp.ge.s32.totalorder %v282_v18, 1  ;;  %vm1434_vm7 = vcmp.lt.s32.totalorder %v282_v18, 15 }
 0x1b3   : > { %vm1411_vm2 = vcmp.ge.s32.totalorder %v283_v15, 1  ;;  %vm1428_vm5 = vcmp.lt.s32.totalorder %v283_v15, 15 }
 0x1ce   : > { %v675_v57 = vpop.permute.xlu0 %674  ;;  %v716_v58 = vpop.permute.xlu1 %715 }
 0x1d2   : > { %v1397_v59 = vpop.permute.xlu0 %549  ;;  %v634_v60 = vpop.permute.xlu1 %633 }
 0x1d6   : > { %v1399_v61 = vpop.permute.xlu1 %590  ;;  %v718_v62 = vpop.permute.xlu0 %717 }
 0x1d7   : > { %v729_v23 = vsel %vm727_vm1, %v718_v62, %v1151_v19  ;;  %v728_v27 = vsel %vm727_vm1, %v716_v58, %v718_v62 }
 0x1da   : > { %v677_v63 = vpop.permute.xlu1 %676  ;;  %v636_v0 = vpop.permute.xlu0 %635 }
 0x1db   : > { %v688_v33 = vsel %vm686_vm3, %v677_v63, %v1156_v29  ;;  %v687_v36 = vsel %vm686_vm3, %v675_v57, %v677_v63  ;;  %v647_v45 = vsel %vm645_vm6, %v636_v0, %v1161_v41  ;;  %v646_v46 = vsel %vm645_vm6, %v634_v60, %v636_v0 }
 0x1dc   : > { %v1171_v60 = vunpack.i.h.bf16 %v1393_v55 }
 0x1de   : > { %v1401_v1 = vpop.permute.xlu1 %551  ;;  %v1403_v2 = vpop.permute.xlu0 %592  ;;  %v560_v0 = vsel %vm559_vm9, %v1171_v60, %v1397_v59 }
 0x1e2   : > { %v681_v4 = vpop.permute.xlu0 %680  ;;  %v722_v5 = vpop.permute.xlu1 %721 }
 0x1e6   : > { %v1405_v7 = vpop.permute.xlu0 %596  ;;  %v640_v8 = vpop.permute.xlu1 %639 }
 0x1e7   : > { %v603_v57 = vsel %vm600_vm8, %v1165_v50, %v1405_v7 }
 0x1ea   : > { %v1407_v10 = vpop.permute.xlu0 %513  ;;  %v1409_v11 = vpop.permute.xlu1 %555 }
 0x1ee   : > { %v683_v16 = vpop.permute.xlu0 %682  ;;  %v724_v17 = vpop.permute.xlu1 %723 }
 0x1ef   : > { %v731_v20 = vsel %vm727_vm1, %v724_v17, %v1150_v12  ;;  %v730_v21 = vsel %vm727_vm1, %v722_v5, %v724_v17  ;;  %v690_v30 = vsel %vm686_vm3, %v683_v16, %v1155_v22  ;;  %v689_v31 = vsel %vm686_vm3, %v681_v4, %v683_v16 }
 0x1f0   : > { %827 = vmatprep.subr.mxu1 %v731_v20 }
 0x1f1   : > { %828 = vmatpush1.msra.mxu1 %v730_v21 }
 0x1f2   : > { %v1415_v25 = vpop.permute.xlu0 %1173  ;;  %829 = vmatprep.subr.mxu1 %v729_v23  ;;  %v1417_v26 = vpop.permute.xlu1 %507 }
 0x1f3   : > { %830 = vmatpush1.msra.mxu1 %v728_v27  ;;  %v1175_v63 = vunpack.i.l.bf16 %v1415_v25  ;;  %v783_v27 = vld [vmem:[%s1541_s2 + $0x10] sm:$0xff] }
 0x1f4   : > { %1097 = vmatprep.subr.msk.mxu1 %vm1411_vm2, %v690_v30 }
 0x1f5   : > { %1098 = vmatpush1.msk.msra.mxu1 %vm1419_vm4, %v689_v31 }
 0x1f6   : > { %v510_v37 = vpop.permute.xlu0 %509  ;;  %1099 = vmatprep.subr.msk.mxu1 %vm1411_vm2, %v688_v33  ;;  %v642_v39 = vpop.permute.xlu1 %641 }
 0x1f7   : > { %v648_v42 = vsel %vm645_vm6, %v640_v8, %v642_v39  ;;  %v649_v43 = vsel %vm645_vm6, %v642_v39, %v1160_v32  ;;  %1100 = vmatpush1.msk.msra.mxu1 %vm1419_vm4, %v687_v36 }
 0x1f8   : > { %1101 = vmatprep.subr.msk.mxu1 %vm1428_vm5, %v649_v43 }
 0x1f9   : > { %1102 = vmatpush1.msk.msra.mxu1 %vm1434_vm7, %v648_v42 }
 0x1fa   : > { %v467_v47 = vpop.permute.xlu0 %466  ;;  %1103 = vmatprep.subr.msk.mxu1 %vm1428_vm5, %v647_v45  ;;  %v473_v49 = vpop.permute.xlu1 %472 }
 0x1fb   : > { %1104 = vmatpush1.msk.msra.mxu1 %vm1434_vm7, %v646_v46 }
 0x1fc   : > { %839 = vmatprep.subr.mxu1 %v1356_v48  ;;  %v601_v48 = vsel %vm600_vm8, %v1166_v54, %v1399_v61 }
 0x1fd   : > { %840 = vmatpush1.msra.mxu1 %v1343_v44  ;;  %v602_v44 = vsel %vm600_vm8, %v1399_v61, %v1403_v2  ;;  %v561_v61 = vsel %vm559_vm9, %v1397_v59, %v1401_v1  ;;  %v1176_v2 = vunpack.i.h.bf16 %v1415_v25  ;;  %v519_v1 = vsel %vm322_vm0, %v1175_v63, %v1407_v10 }
 0x1fe   : > { %v558_v51 = vpop.permute.xlu0 %557  ;;  %841 = vmatprep.subr.mxu1 %v1329_v38  ;;  %v599_v52 = vpop.permute.xlu1 %598  ;;  %v1170_v38 = vunpack.i.l.bf16 %v1393_v55  ;;  %v518_v59 = vsel %vm322_vm0, %v1417_v26, %v510_v37 }
 0x1ff   : > { %v604_v53 = vsel %vm600_vm8, %v1405_v7, %v599_v52  ;;  %842 = vmatpush1.msra.mxu1 %v1319_v35  ;;  %v563_v56 = vsel %vm559_vm9, %v1409_v11, %v558_v51  ;;  %v517_v8 = vsel %vm322_vm0, %v1176_v2, %v1417_v26  ;;  %v784_v26 = vld [vmem:[%s1541_s2 + $0x18] sm:$0xff] }
 0x200   : > { %1105 = vmatprep.subr.msk.mxu1 %vm1411_vm2, %v604_v53  ;;  %v562_v62 = vsel %vm559_vm9, %v1170_v38, %v1409_v11  ;;  %v936_v53 = vld [vmem:[%s1542_s3] sm:$0xf] }
 0x201   : > { %1106 = vmatpush1.msk.msra.mxu1 %vm1419_vm4, %v603_v57 }
 0x202   : > { %v759_v58 = vpop.permute.xlu0 %758  ;;  %1107 = vmatprep.subr.msk.mxu1 %vm1411_vm2, %v602_v44  ;;  %v1179_v35 = vpop.permute.xlu1 %1178 }
 0x203   : > { %1108 = vmatpush1.msk.msra.mxu1 %vm1419_vm4, %v601_v48  ;;  %v1180_v5 = vunpack.i.l.bf16 %v1179_v35  ;;  %v1181_v6 = vunpack.i.h.bf16 %v1179_v35 }
 0x204   : > { %1109 = vmatprep.subr.msk.mxu1 %vm1428_vm5, %v563_v56 }
 0x205   : > { %1110 = vmatpush1.msk.msra.mxu1 %vm1434_vm7, %v562_v62  ;;  %v477_v16 = vsel %vm476_vm10, %v1181_v6, %v467_v47 }
 0x206   : > { %v475_v3 = vpop.permute.xlu0 %474  ;;  %1111 = vmatprep.subr.msk.mxu1 %vm1428_vm5, %v561_v61  ;;  %v516_v55 = vpop.permute.xlu1 %515 }
 0x207   : > { %1112 = vmatpush1.msk.msra.mxu1 %vm1434_vm7, %v560_v0  ;;  %v520_v4 = vsel %vm322_vm0, %v1407_v10, %v516_v55  ;;  %v480_v9 = vsel %vm476_vm10, %v473_v49, %v475_v3  ;;  %v479_v10 = vsel %vm476_vm10, %v1180_v5, %v473_v49 }
 0x208   : > { %851 = vmatprep.subr.mxu1 %v520_v4 }
 0x209   : > { %852 = vmatpush1.msra.mxu1 %v519_v1 }
 0x20a   : > { %853 = vmatprep.subr.mxu1 %v518_v59  ;;  %v469_v7 = vpop.permute.xlu1 %468  ;;  %v761_v11 = vpop.permute.xlu0 %760 }
 0x20b   : > { %854 = vmatpush1.msra.mxu1 %v517_v8  ;;  %v478_v12 = vsel %vm476_vm10, %v467_v47, %v469_v7  ;;  %v767_v20 = vsel %vm764_vm11, %v759_v58, %v761_v11 }
 0x20c   : > { %1113 = vmatprep.subr.msk.mxu1 %vm1411_vm2, %v480_v9 }
 0x20d   : > { %1114 = vmatpush1.msk.msra.mxu1 %vm1419_vm4, %v479_v10 }
 0x20e   : > { %v1184_v15 = vpop.permute.xlu1 %1183  ;;  %1115 = vmatprep.subr.msk.mxu1 %vm1411_vm2, %v478_v12  ;;  %v753_v21 = vpop.permute.xlu0 %752 }
 0x20f   : > { %v1185_v17 = vunpack.i.l.bf16 %v1184_v15  ;;  %1116 = vmatpush1.msk.msra.mxu1 %vm1419_vm4, %v477_v16  ;;  %v1186_v18 = vunpack.i.h.bf16 %v1184_v15 }
 0x211   : > { %v768_v19 = vsel %vm764_vm11, %v761_v11, %v1185_v17 }
 0x212   : > { %v755_v22 = vpop.permute.xlu1 %754  ;;  %1117 = vmatprep.subr.msk.mxu1 %vm1428_vm5, %v768_v19 }
 0x213   : > { %v765_v23 = vsel %vm764_vm11, %v753_v21, %v755_v22  ;;  %v766_v25 = vsel %vm764_vm11, %v755_v22, %v1186_v18  ;;  %1118 = vmatpush2.msk.msra.mxu1 %vm1434_vm7, %v767_v20 }
 0x214   : > { %1119 = vmatprep.subr.msk.mxu1 %vm1428_vm5, %v766_v25 }
 0x215   : > { %1120 = vmatpush2.msk.msra.mxu1 %vm1434_vm7, %v765_v23 }
 0x216   : > { %892 = vmatmul.mubr.f32.vlgmr.msra.gmra.mxu1 %v781_v24 }
 0x217   : > { %1091 = vmatprep.mubr.msk.f32.mxu1 %vm322_vm0, %v784_v26 }
 0x21a   : > { %898 = vmatmul.mubr.f32.gmra.mxu1 %v783_v27 }
 0x21b   : > { %v909_v33 = vpop.permute.xlu0 %908 }
 0x21f   : > { %v914_v29 = vpop.permute.xlu1 %913 }
 0x220   : > { %v941_v54 = vpop.permute.xlu0 %940 }
 0x224   : > { %v926_v31 = vpop.permute.xlu1 %925 }
 0x228   : > { %v922_v41 = vpop.permute.xlu1 %921 }
 0x2d6   : > { %v893_v30 = vpop.f32.mrf.mxu1 }
 0x2d7   : > { %v916_v39 = vmul.f32 %v909_v33, %v893_v30 }
 0x2d8   : > { %v895_v32 = vpop.f32.mrf.mxu1 }
 0x2d9   : > { %v917_v36 = vmul.f32 %v909_v33, %v895_v32  ;;  %v928_v47 = vadd.f32 %v922_v41, %v916_v39 }
 0x2da   : > { %v899_v34 = vpop.f32.mrf.mxu1 }
 0x2db   : > { %v918_v37 = vmul.f32 %v914_v29, %v899_v34  ;;  %v929_v45 = vadd.f32 %v922_v41, %v917_v36  ;;  %v932_v52 = vmax.f32 %v928_v47, 0.0 }
 0x2dc   : > { %v901_v40 = vpop.f32.mrf.mxu1 }
 0x2dd   : > { %v919_v42 = vmul.f32 %v914_v29, %v901_v40  ;;  %v930_v43 = vadd.f32 %v926_v31, %v918_v37  ;;  %v933_v51 = vmax.f32 %v929_v45, 0.0 }
 0x2df   : > { %v931_v46 = vadd.f32 %v926_v31, %v919_v42  ;;  %v934_v50 = vmax.f32 %v930_v43, 0.0 }
 0x2e1   : > { %v935_v49 = vmax.f32 %v931_v46, 0.0 }
 0x2e3   : > { %974 = vmatprep.subr.mxu0 %v935_v49 }
 0x2e4   : > { %975 = vmatpush1.msra.mxu0 %v934_v50 }
 0x2e5   : > { %976 = vmatprep.subr.mxu0 %v933_v51 }
 0x2e6   : > { %977 = vmatpush1.msra.mxu0 %v932_v52 }
 0x2e7   : > { %1092 = vmatmul.mubr.msk.f32.vlgmr.msra.gmra.mxu0 %vm322_vm0, %v936_v53 }
 0x3a7   : > { %v1012_v57 = vpop.f32.mrf.mxu0 }
 0x3a8   : > { %v1013_v44 = vadd.f32 %v1012_v57, %v941_v54 }
 0x3a9   : > { %v1014_v38 = vpop.f32.mrf.mxu0 }
 0x3aa   : > { %v1015_v48 = vadd.f32 %v1014_v38, %v941_v54  ;;  %v1017_v58 = vadd.f32 %v1013_v44, %v1299_v13 }
 0x3ac   : > { %v1018_v35 = vadd.f32 %v1015_v48, %v1301_v14 }
 0x3ae   : > { %v1021_v56 = vcombine.low %v1017_v58, %v1018_v35 }
 0x3b0   : > { %1023 = vst [vmem:[%s278_s21] sm:$0xff] %v1021_v56 }
 0x3b1 PF: > { %s17_s24 = sadd.s32 1, %s1197_s24  }
 0x3b2   : > { %p14_p4 = scmp.ge.s32.totalorder %s17_s24, 4  }
 0x3b4   :  { %16 = sbr.rel (!%p14_p4) target bundleno = 1 (0x1), region = 78 }

</bundles_post_ra>
